<compile_context>
chip_gen: v6e
topology: v6e:2x2x1
jax: 0.10.0
libtpu: 0.0.40
codegen_flags: <defaults>
</compile_context>

<pallas_src>
import functools

import jax
import jax.numpy as jnp
from jax import lax
from jax.experimental import pallas as pl
from jax.experimental.pallas import tpu as pltpu

_VMEM_LIMIT = 64 * 1024 * 1024
_MASK_VALUE = jnp.float32(-1e30)  # finite "masked" value (no NaN on all-masked rows)


# ----------------------------------------------------------------------------
# Dense projection kernel (fused QKV projection and output projection)
# ----------------------------------------------------------------------------
def _linear_kernel(x_ref, w_ref, b_ref, o_ref):
    # x: (tm, K) bf16, w: (K, tn) bf16, b: (1, tn) f32 -> o: (tm, tn)
    o_ref[...] = (
        jnp.dot(x_ref[...], w_ref[...], preferred_element_type=jnp.float32)
        + b_ref[...]
    ).astype(o_ref.dtype)


def _pick_tn(K, N, itemsize, budget):
    """Largest lane-aligned N tile whose (K, tn) weight block fits `budget`."""
    if K * N * itemsize <= budget or N <= 128:
        return N
    tn = max(128, (budget // (K * itemsize)) // 128 * 128)
    return min(tn, N)


def linear(x, w, b, *, block_m=256, out_dtype=jnp.float32,
           weight_vmem_budget=16 * 1024 * 1024):
    """y = x @ w + b.

    x is expected in bf16, w in bf16 (MXU-native), b in f32; accumulation is
    f32.  Tiled over rows (activations stream) and, if the weight would exceed
    `weight_vmem_budget`, over output columns so the (K, tn) weight block stays
    bounded (important on v7x's 64 MiB VMEM).  With a single N tile the weight
    block index is constant, so it stays VMEM-resident across row tiles.
    Ragged last tiles (M % tm != 0) are handled by Pallas block masking.
    """
    M, K = x.shape
    Kw, N = w.shape
    assert K == Kw
    tm = min(block_m, M)
    tn = _pick_tn(K, N, jnp.dtype(w.dtype).itemsize, weight_vmem_budget)
    b2 = b.reshape(1, N).astype(jnp.float32)
    return pl.pallas_call(
        _linear_kernel,
        out_shape=jax.ShapeDtypeStruct((M, N), out_dtype),
        grid=(pl.cdiv(M, tm), pl.cdiv(N, tn)),
        in_specs=[
            pl.BlockSpec((tm, K), lambda i, j: (i, 0)),   # activation tile streams
            pl.BlockSpec((K, tn), lambda i, j: (0, j)),   # weight column block
            pl.BlockSpec((1, tn), lambda i, j: (0, j)),   # bias column block
        ],
        out_specs=pl.BlockSpec((tm, tn), lambda i, j: (i, j)),
        compiler_params=pltpu.CompilerParams(
            dimension_semantics=("parallel", "parallel"),
            vmem_limit_bytes=_VMEM_LIMIT),
    )(x, w, b2)


# ----------------------------------------------------------------------------
# Attention kernels
# ----------------------------------------------------------------------------
def _attn_probs_kernel(*refs, hp, dh, has_mask):
    """Query-tiled attention that also materializes the attention probs.

    Blocks: q (tq, hp*dh), k/v (S, hp*dh), bias (hp, tq, S), mask (1, S),
    ctx (tq, hp*dh), probs (hp, tq, S).  `hp` heads are packed per block so
    the lane dimension stays >= 128 even for head_dim 64.
    """
    if has_mask:
        q_ref, k_ref, v_ref, bias_ref, mask_ref, ctx_ref, probs_ref = refs
    else:
        q_ref, k_ref, v_ref, bias_ref, ctx_ref, probs_ref = refs
        mask_ref = None

    for p in range(hp):                                   # static unroll
        q = q_ref[:, p * dh:(p + 1) * dh]                 # (tq, dh) bf16
        k = k_ref[:, p * dh:(p + 1) * dh]                 # (S,  dh) bf16
        v = v_ref[:, p * dh:(p + 1) * dh]                 # (S,  dh) bf16
        # scores[i, j] = sum_d q[i, d] * k[j, d] -- contract last dims, no
        # explicit K transpose; bf16 operands, f32 accumulation on the MXU.
        s = lax.dot_general(q, k, (((1,), (1,)), ((), ())),
                            preferred_element_type=jnp.float32)
        s = s + bias_ref[p].astype(jnp.float32)
        if mask_ref is not None:
            s = s + mask_ref[...]
        m = jnp.max(s, axis=-1, keepdims=True)
        e = jnp.exp(s - m)
        denom = jnp.sum(e, axis=-1, keepdims=True)
        probs = e * pl.reciprocal(denom, approx=True)     # EUP vrcp slot
        probs_ref[p] = probs
        ctx_ref[:, p * dh:(p + 1) * dh] = jnp.dot(
            probs.astype(v.dtype), v,
            preferred_element_type=jnp.float32).astype(ctx_ref.dtype)


def _attn_flash_kernel(*refs, hp, dh, has_mask):
    """Flash-style attention: KV-tiled online softmax, no probs output."""
    if has_mask:
        q_ref, k_ref, v_ref, bias_ref, mask_ref = refs[:5]
        rest = refs[5:]
    else:
        q_ref, k_ref, v_ref, bias_ref = refs[:4]
        mask_ref = None
        rest = refs[4:]
    ctx_ref, m_sc, l_sc, acc_sc = rest

    kv = pl.program_id(3)

    @pl.when(kv == 0)
    def _():
        m_sc[...] = jnp.full(m_sc.shape, -jnp.inf, dtype=m_sc.dtype)
        l_sc[...] = jnp.zeros(l_sc.shape, dtype=l_sc.dtype)
        acc_sc[...] = jnp.zeros(acc_sc.shape, dtype=acc_sc.dtype)

    for p in range(hp):                                   # static unroll
        q = q_ref[:, p * dh:(p + 1) * dh]                 # (tq, dh) bf16
        k = k_ref[:, p * dh:(p + 1) * dh]                 # (tk, dh) bf16
        v = v_ref[:, p * dh:(p + 1) * dh]                 # (tk, dh) bf16
        s = lax.dot_general(q, k, (((1,), (1,)), ((), ())),
                            preferred_element_type=jnp.float32)
        s = s + bias_ref[p].astype(jnp.float32)
        if mask_ref is not None:
            s = s + mask_ref[...]
        m_old = m_sc[p]
        m_new = jnp.maximum(m_old, jnp.max(s, axis=-1, keepdims=True))
        alpha = jnp.exp(m_old - m_new)
        pexp = jnp.exp(s - m_new)
        l_sc[p] = alpha * l_sc[p] + jnp.sum(pexp, axis=-1, keepdims=True)
        acc_sc[p] = alpha * acc_sc[p] + jnp.dot(
            pexp.astype(v.dtype), v, preferred_element_type=jnp.float32)
        m_sc[p] = m_new

    @pl.when(kv == pl.num_programs(3) - 1)
    def _():
        for p in range(hp):
            ctx_ref[:, p * dh:(p + 1) * dh] = (
                acc_sc[p] * pl.reciprocal(l_sc[p], approx=True)
            ).astype(ctx_ref.dtype)


def _head_pack(num_heads, head_dim):
    """Pack heads so the lane dimension of q/k/v/ctx blocks is >= 128."""
    if head_dim >= 128 and head_dim % 128 == 0:
        return 1
    if head_dim < 128 and 128 % head_dim == 0 and num_heads % (128 // head_dim) == 0:
        return 128 // head_dim
    # TODO(synk): odd head_dim (not a divisor/multiple of 128) falls back to
    # un-packed blocks (masked partial stores / possible lowering limits).
    return 1


def attention_core(qkv, bias, add_mask, num_heads, head_dim, *,
                   return_probs=True, block_q=128, block_kv=128):
    """qkv: (B, S, 3D) fused bf16 projections; bias: (H, S, S); mask: (B,1,S) or None."""
    B, S, threeD = qkv.shape
    H, Dh = num_heads, head_dim
    D = H * Dh
    assert threeD == 3 * D

    hp = _head_pack(H, Dh)
    G = H // hp                       # number of head groups in the grid
    hpd = hp * Dh                     # lane width of a q/k/v/ctx block
    tq = min(block_q, S)
    assert S % tq == 0, "S must be a multiple of block_q"
    nq = S // tq
    has_mask = add_mask is not None

    # Head-group slicing is expressed purely in the index maps: q of group g
    # lives at block index g (width hpd), k at G+g, v at 2G+g of the fused 3D axis.
    common = pltpu.CompilerParams  # noqa: (readability)

    if return_probs:
        in_specs = [
            pl.BlockSpec((None, tq, hpd), lambda b, g, qi: (b, qi, g)),
            pl.BlockSpec((None, S, hpd), lambda b, g, qi: (b, 0, G + g)),
            pl.BlockSpec((None, S, hpd), lambda b, g, qi: (b, 0, 2 * G + g)),
            pl.BlockSpec((hp, tq, S), lambda b, g, qi: (g, qi, 0)),
        ]
        inputs = [qkv, qkv, qkv, bias]
        if has_mask:
            in_specs.append(pl.BlockSpec((None, 1, S), lambda b, g, qi: (b, 0, 0)))
            inputs.append(add_mask)
        out_shape = (jax.ShapeDtypeStruct((B, S, D), jnp.bfloat16),
                     jax.ShapeDtypeStruct((B, H, S, S), jnp.float32))
        out_specs = (
            pl.BlockSpec((None, tq, hpd), lambda b, g, qi: (b, qi, g)),
            pl.BlockSpec((None, hp, tq, S), lambda b, g, qi: (b, g, qi, 0)),
        )
        kernel = functools.partial(_attn_probs_kernel, hp=hp, dh=Dh,
                                   has_mask=has_mask)
        ctx, probs = pl.pallas_call(
            kernel,
            out_shape=out_shape,
            # grid (B, G, nq): K/V blocks depend only on (b, g) so they stay
            # VMEM-resident across the inner q-tile axis.
            grid=(B, G, nq),
            in_specs=in_specs,
            out_specs=out_specs,
            compiler_params=common(
                dimension_semantics=("parallel", "parallel", "parallel"),
                vmem_limit_bytes=_VMEM_LIMIT),
        )(*inputs)
        return ctx, probs

    # Flash path: KV tiling + online softmax, no (S,S)/(B,H,S,S) materialization.
    tk = min(block_kv, S)
    assert S % tk == 0, "S must be a multiple of block_kv"
    nkv = S // tk
    in_specs = [
        pl.BlockSpec((None, tq, hpd), lambda b, g, qi, kv: (b, qi, g)),
        pl.BlockSpec((None, tk, hpd), lambda b, g, qi, kv: (b, kv, G + g)),
        pl.BlockSpec((None, tk, hpd), lambda b, g, qi, kv: (b, kv, 2 * G + g)),
        pl.BlockSpec((hp, tq, tk), lambda b, g, qi, kv: (g, qi, kv)),
    ]
    inputs = [qkv, qkv, qkv, bias]
    if has_mask:
        in_specs.append(pl.BlockSpec((None, 1, tk), lambda b, g, qi, kv: (b, 0, kv)))
        inputs.append(add_mask)
    kernel = functools.partial(_attn_flash_kernel, hp=hp, dh=Dh,
                               has_mask=has_mask)
    ctx = pl.pallas_call(
        kernel,
        out_shape=jax.ShapeDtypeStruct((B, S, D), jnp.bfloat16),
        grid=(B, G, nq, nkv),
        in_specs=in_specs,
        out_specs=pl.BlockSpec((None, tq, hpd), lambda b, g, qi, kv: (b, qi, g)),
        scratch_shapes=[pltpu.VMEM((hp, tq, 1), jnp.float32),   # running max
                        pltpu.VMEM((hp, tq, 1), jnp.float32),   # running denom
                        pltpu.VMEM((hp, tq, Dh), jnp.float32)], # output accumulator
        compiler_params=common(
            dimension_semantics=("parallel", "parallel", "parallel", "arbitrary"),
            vmem_limit_bytes=_VMEM_LIMIT),
    )(*inputs)
    return ctx, None


# ----------------------------------------------------------------------------
# T5 relative-position-bias glue (tiny integer/log table, plain JAX)
# ----------------------------------------------------------------------------
def _relative_position_bucket(relative_position, bidirectional=True,
                              num_buckets=32, max_distance=128):
    ret = jnp.zeros_like(relative_position)
    n = -relative_position
    if bidirectional:
        num_buckets //= 2
        ret = ret + (n < 0).astype(jnp.int32) * num_buckets
        n = jnp.abs(n)
    else:
        n = jnp.maximum(n, 0)
    max_exact = num_buckets // 2
    is_small = n < max_exact
    val_if_large = max_exact + (
        jnp.log(jnp.maximum(n, 1).astype(jnp.float32) / max_exact)
        / jnp.log(jnp.float32(max_distance / max_exact))
        * (num_buckets - max_exact)
    ).astype(jnp.int32)
    val_if_large = jnp.minimum(val_if_large, num_buckets - 1)
    ret = ret + jnp.where(is_small, n, val_if_large)
    return ret


def relative_position_bias(emb_weight, q_len, k_len, bidirectional=True,
                           num_buckets=32, max_distance=128):
    q_pos = jnp.arange(q_len, dtype=jnp.int32)
    k_pos = jnp.arange(k_len, dtype=jnp.int32)
    rel = k_pos[None, :] - q_pos[:, None]                       # (Sq, Sk)
    buckets = _relative_position_bucket(rel, bidirectional, num_buckets,
                                        max_distance)
    bias = emb_weight[buckets]                                  # (Sq, Sk, H)
    return jnp.transpose(bias, (2, 0, 1))                       # (H, Sq, Sk)


# ----------------------------------------------------------------------------
# T5Attention forward (fused-parameter layout, bf16 MXU operands)
# ----------------------------------------------------------------------------
def t5_attention_forward(params, hidden_states, attention_mask=None,
                         rel_bias=None, *, num_heads, num_buckets=32,
                         max_distance=128, return_probs=True,
                         block_q=128, block_kv=128, block_m=256):
    B, S, D = hidden_states.shape
    H = num_heads
    Dh = D // H

    x2d = hidden_states.reshape(B * S, D).astype(jnp.bfloat16)

    # One fused projection: x @ [Wq | Wk | Wv] -> (B*S, 3D), stored bf16.
    qkv = linear(x2d, params["wqkv"], params["bqkv"], block_m=block_m,
                 out_dtype=jnp.bfloat16).reshape(B, S, 3 * D)

    if rel_bias is None:
        # Fallback; callers should precompute this once per (S, params).
        rel_bias = relative_position_bias(
            params["rel_emb"], S, S, True, num_buckets,
            max_distance).astype(jnp.bfloat16)

    add_mask = None
    if attention_mask is not None:
        # torch masked_fill semantics: True == mask out. Large finite negative
        # instead of -inf so fully-masked rows can't produce NaNs.
        add_mask = jnp.where(attention_mask.reshape(B, 1, S).astype(bool),
                             _MASK_VALUE, jnp.float32(0.0))

    ctx, probs = attention_core(qkv, rel_bias, add_mask, H, Dh,
                                return_probs=return_probs,
                                block_q=block_q, block_kv=block_kv)

    # attention dropout on probs: eval-mode identity
    out = linear(ctx.reshape(B * S, D), params["wo"], params["bo"],
                 block_m=block_m, out_dtype=jnp.float32).reshape(B, S, D)
    return out, probs


# ----------------------------------------------------------------------------
# Parameter setup, pure-jnp reference, demo
# ----------------------------------------------------------------------------
def init_params(key, d_model, num_heads, num_buckets):
    ks = jax.random.split(key, 9)
    bound = 1.0 / (d_model ** 0.5)

    def lin(kw, kb):
        w = jax.random.uniform(kw, (d_model, d_model), jnp.float32, -bound, bound)
        b = jax.random.uniform(kb, (d_model,), jnp.float32, -bound, bound)
        return w, b

    wq, bq = lin(ks[0], ks[1])
    wk, bk = lin(ks[2], ks[3])
    wv, bv = lin(ks[4], ks[5])
    wo, bo = lin(ks[6], ks[7])
    rel_emb = jax.random.normal(ks[8], (num_buckets, num_heads), jnp.float32)
    return dict(wq=wq, bq=bq, wk=wk, bk=bk, wv=wv, bv=bv, wo=wo, bo=bo,
                rel_emb=rel_emb)


def fuse_qkv_params(params):
    """One-time parameter setup: fused (D, 3D) QKV weight + bf16 MXU weights."""
    return dict(
        wqkv=jnp.concatenate([params["wq"], params["wk"], params["wv"]],
                             axis=1).astype(jnp.bfloat16),
        bqkv=jnp.concatenate([params["bq"], params["bk"], params["bv"]],
                             axis=0).astype(jnp.float32),
        wo=params["wo"].astype(jnp.bfloat16),
        bo=params["bo"].astype(jnp.float32),
        rel_emb=params["rel_emb"])


def reference_forward(params, hidden_states, attention_mask, num_heads,
                      num_buckets, max_distance):
    """Pure-jnp reference with the same numerics (bf16 MXU operands, f32 acc)."""
    B, S, D = hidden_states.shape
    Dh = D // num_heads
    bf, f32 = jnp.bfloat16, jnp.float32
    x = hidden_states.reshape(B * S, D).astype(bf)

    def proj(w, b):
        y = jnp.dot(x, w.astype(bf), preferred_element_type=f32) + b
        return y.astype(bf).reshape(B, S, D)

    q, k, v = proj(params["wq"], params["bq"]), proj(params["wk"], params["bk"]), \
        proj(params["wv"], params["bv"])
    sh = lambda t: jnp.transpose(t.reshape(B, S, num_heads, Dh), (0, 2, 1, 3))
    qh, kh, vh = sh(q), sh(k), sh(v)
    scores = jnp.einsum("bhqd,bhkd->bhqk", qh, kh, preferred_element_type=f32)
    bias = relative_position_bias(params["rel_emb"], S, S, True, num_buckets,
                                  max_distance)
    scores = scores + bias.astype(bf).astype(f32)[None]
    if attention_mask is not None:
        scores = scores + jnp.where(attention_mask[:, None, None, :],
                                    _MASK_VALUE, f32(0.0))
    probs = jax.nn.softmax(scores, axis=-1)
    ctx = jnp.einsum("bhqk,bhkd->bhqd", probs.astype(bf), vh,
                     preferred_element_type=f32)
    merged = jnp.transpose(ctx, (0, 2, 1, 3)).reshape(B * S, D).astype(bf)
    out = (jnp.dot(merged, params["wo"].astype(bf), preferred_element_type=f32)
           + params["bo"]).reshape(B, S, D)
    return out, probs


if __name__ == "__main__":
    # Dh = 128 -> head pack of 1 (lane-dense blocks); S = 256 exercises both
    # the query-tile (2 steps) and flash KV-tile (2 steps) grids.
    B, S, D, H = 2, 256, 256, 2
    NUM_BUCKETS, MAX_DIST = 32, 128

    key = jax.random.PRNGKey(0)
    k_param, k_input = jax.random.split(key)
    params = init_params(k_param, D, H, NUM_BUCKETS)
    fused_params = fuse_qkv_params(params)
    hidden = jax.random.normal(k_input, (B, S, D), jnp.float32)

    # Precompute the relative-position bias once (bf16) per the perf review.
    rel_bias = relative_position_bias(params["rel_emb"], S, S, True,
                                      NUM_BUCKETS, MAX_DIST).astype(jnp.bfloat16)

    fwd = functools.partial(t5_attention_forward, num_heads=H,
                            num_buckets=NUM_BUCKETS, max_distance=MAX_DIST)
    fwd_probs = jax.jit(functools.partial(fwd, return_probs=True))
    fwd_flash = jax.jit(functools.partial(fwd, return_probs=False))

    # --- unmasked path (no-mask kernel variant) ------------------------------
    out, probs = fwd_probs(fused_params, hidden, None, rel_bias)
    out = jax.block_until_ready(out)
    probs = jax.block_until_ready(probs)

    ref_out, ref_probs = reference_forward(params, hidden, None, H,
                                           NUM_BUCKETS, MAX_DIST)
    assert out.shape == (B, S, D) and probs.shape == (B, H, S, S)
    assert jnp.allclose(out, ref_out, atol=2e-2, rtol=2e-2)
    assert jnp.allclose(probs, ref_probs, atol=5e-3)

    # --- masked path (True == mask out, matching torch masked_fill) ---------
    attn_mask = jnp.zeros((B, S), dtype=bool).at[1, S - 64:].set(True)
    out_m, probs_m = fwd_probs(fused_params, hidden, attn_mask, rel_bias)
    out_m = jax.block_until_ready(out_m)
    probs_m = jax.block_until_ready(probs_m)

    ref_out_m, ref_probs_m = reference_forward(params, hidden, attn_mask, H,
                                               NUM_BUCKETS, MAX_DIST)
    assert jnp.allclose(out_m, ref_out_m, atol=2e-2, rtol=2e-2)
    assert jnp.allclose(probs_m, ref_probs_m, atol=5e-3)
    # masked key positions receive (numerically) zero probability
    assert float(jnp.max(probs_m[1, :, :, S - 64:])) < 1e-6

    # --- flash (KV-tiled, no probs materialization) path ---------------------
    out_f, probs_none = fwd_flash(fused_params, hidden, attn_mask, rel_bias)
    out_f = jax.block_until_ready(out_f)
    assert probs_none is None
    assert jnp.allclose(out_f, out_m, atol=2e-2, rtol=2e-2)

    out_fu, _ = fwd_flash(fused_params, hidden, None, rel_bias)
    out_fu = jax.block_until_ready(out_fu)
    assert jnp.allclose(out_fu, out, atol=2e-2, rtol=2e-2)

    print("KERNEL_OK")
</pallas_src>

<mosaic_0001>
module attributes {stable_mosaic.version = 11 : i64} {
  func.func @_linear_kernel(%arg0: i32, %arg1: i32, %arg2: memref<256x256xbf16, #tpu.memory_space<vmem>>, %arg3: memref<256x768xbf16, #tpu.memory_space<vmem>>, %arg4: memref<1x768xf32, #tpu.memory_space<vmem>>, %arg5: memref<256x768xbf16, #tpu.memory_space<vmem>>) attributes {dimension_semantics = [#tpu.dimension_semantics<parallel>, #tpu.dimension_semantics<parallel>], iteration_bounds = array<i64: 2, 1>, scalar_prefetch = 0 : i64, scratch_operands = 0 : i64, tpu.core_type = #tpu.core_type<tc>, window_params = [{transform_indices = @transform_0, window_bounds = array<i64: 256, 256>}, {transform_indices = @transform_1, window_bounds = array<i64: 256, 768>}, {transform_indices = @transform_2, window_bounds = array<i64: 1, 768>}, {transform_indices = @transform_3, window_bounds = array<i64: 256, 768>}]} {
    %c0 = arith.constant 0 : index
    %c0_0 = arith.constant 0 : index
    %0 = vector.load %arg2[%c0, %c0_0] : memref<256x256xbf16, #tpu.memory_space<vmem>>, vector<256x256xbf16>
    %c0_1 = arith.constant 0 : index
    %c0_2 = arith.constant 0 : index
    %1 = vector.load %arg3[%c0_1, %c0_2] : memref<256x768xbf16, #tpu.memory_space<vmem>>, vector<256x768xbf16>
    %cst = arith.constant dense<0.000000e+00> : vector<256x768xf32>
    %2 = tpu.matmul %0, %1, %cst {dimension_numbers = #tpu.dot_dimension_numbers<[1], [0], [0], [1], [0, 0, 1, 1], [], []>} : vector<256x256xbf16>, vector<256x768xbf16>, vector<256x768xf32> -> vector<256x768xf32>
    %c0_3 = arith.constant 0 : index
    %c0_4 = arith.constant 0 : index
    %3 = vector.load %arg4[%c0_3, %c0_4] : memref<1x768xf32, #tpu.memory_space<vmem>>, vector<1x768xf32>
    %4 = vector.broadcast %3 : vector<1x768xf32> to vector<256x768xf32>
    %5 = arith.addf %2, %4 : vector<256x768xf32>
    %6 = arith.truncf %5 : vector<256x768xf32> to vector<256x768xbf16>
    %c0_5 = arith.constant 0 : index
    %c0_6 = arith.constant 0 : index
    %7 = vector.load %arg5[%c0_5, %c0_6] : memref<256x768xbf16, #tpu.memory_space<vmem>>, vector<256x768xbf16>
    tpu.vector_store %arg5[%c0_5, %c0_6], %6 {strides = array<i32>} : memref<256x768xbf16, #tpu.memory_space<vmem>>, vector<256x768xbf16>,
    return
  }
  func.func @transform_0(%arg0: i32, %arg1: i32) -> (i32, i32) {
    %c0_i32 = arith.constant 0 : i32
    %c0_i32_0 = arith.constant 0 : i32
    return %arg0, %c0_i32 : i32, i32
  }
  func.func @transform_1(%arg0: i32, %arg1: i32) -> (i32, i32) {
    %c0_i32 = arith.constant 0 : i32
    %c0_i32_0 = arith.constant 0 : i32
    return %c0_i32, %arg1 : i32, i32
  }
  func.func @transform_2(%arg0: i32, %arg1: i32) -> (i32, i32) {
    %c0_i32 = arith.constant 0 : i32
    %c0_i32_0 = arith.constant 0 : i32
    return %c0_i32, %arg1 : i32, i32
  }
  func.func @transform_3(%arg0: i32, %arg1: i32) -> (i32, i32) {
    %c0_i32 = arith.constant 0 : i32
    return %arg0, %arg1 : i32, i32
  }
}

module attributes {stable_mosaic.version = 11 : i64} {
  func.func @_attn_probs_kernel(%arg0: i32, %arg1: i32, %arg2: i32, %arg3: memref<1x128x128xbf16, #tpu.memory_space<vmem>>, %arg4: memref<1x256x128xbf16, #tpu.memory_space<vmem>>, %arg5: memref<1x256x128xbf16, #tpu.memory_space<vmem>>, %arg6: memref<1x128x256xbf16, #tpu.memory_space<vmem>>, %arg7: memref<1x128x128xbf16, #tpu.memory_space<vmem>>, %arg8: memref<1x1x128x256xf32, #tpu.memory_space<vmem>>) attributes {dimension_semantics = [#tpu.dimension_semantics<parallel>, #tpu.dimension_semantics<parallel>, #tpu.dimension_semantics<parallel>], iteration_bounds = array<i64: 2, 2, 2>, scalar_prefetch = 0 : i64, scratch_operands = 0 : i64, tpu.core_type = #tpu.core_type<tc>, window_params = [{transform_indices = @transform_0, window_bounds = array<i64: 1, 128, 128>}, {transform_indices = @transform_1, window_bounds = array<i64: 1, 256, 128>}, {transform_indices = @transform_2, window_bounds = array<i64: 1, 256, 128>}, {transform_indices = @transform_3, window_bounds = array<i64: 1, 128, 256>}, {transform_indices = @transform_4, window_bounds = array<i64: 1, 128, 128>}, {transform_indices = @transform_5, window_bounds = array<i64: 1, 1, 128, 256>}]} {
    %c0 = arith.constant 0 : index
    %c0_0 = arith.constant 0 : index
    %c0_1 = arith.constant 0 : index
    %0 = vector.load %arg3[%c0, %c0_0, %c0_1] : memref<1x128x128xbf16, #tpu.memory_space<vmem>>, vector<1x128x128xbf16>
    %1 = vector.shape_cast %0 : vector<1x128x128xbf16> to vector<128x128xbf16>
    %c0_2 = arith.constant 0 : index
    %c0_3 = arith.constant 0 : index
    %c0_4 = arith.constant 0 : index
    %2 = vector.load %arg4[%c0_2, %c0_3, %c0_4] : memref<1x256x128xbf16, #tpu.memory_space<vmem>>, vector<1x256x128xbf16>
    %3 = vector.shape_cast %2 : vector<1x256x128xbf16> to vector<256x128xbf16>
    %c0_5 = arith.constant 0 : index
    %c0_6 = arith.constant 0 : index
    %c0_7 = arith.constant 0 : index
    %4 = vector.load %arg5[%c0_5, %c0_6, %c0_7] : memref<1x256x128xbf16, #tpu.memory_space<vmem>>, vector<1x256x128xbf16>
    %5 = vector.shape_cast %4 : vector<1x256x128xbf16> to vector<256x128xbf16>
    %cst = arith.constant dense<0.000000e+00> : vector<128x256xf32>
    %6 = tpu.matmul %1, %3, %cst {dimension_numbers = #tpu.dot_dimension_numbers<[1], [1], [0], [0], [0, 0, 1, 0], [], []>} : vector<128x128xbf16>, vector<256x128xbf16>, vector<128x256xf32> -> vector<128x256xf32>
    %c0_8 = arith.constant 0 : index
    %c0_9 = arith.constant 0 : index
    %c0_10 = arith.constant 0 : index
    %7 = vector.load %arg6[%c0_8, %c0_9, %c0_10] : memref<1x128x256xbf16, #tpu.memory_space<vmem>>, vector<1x128x256xbf16>
    %8 = vector.shape_cast %7 : vector<1x128x256xbf16> to vector<128x256xbf16>
    %9 = arith.extf %8 : vector<128x256xbf16> to vector<128x256xf32>
    %10 = arith.addf %6, %9 : vector<128x256xf32>
    %cst_11 = arith.constant dense<0xFF800000> : vector<128xf32>
    %11 = vector.multi_reduction <maximumf>, %10, %cst_11 [1] : vector<128x256xf32> to vector<128xf32>
    %12 = vector.shape_cast %11 : vector<128xf32> to vector<128x1xf32>
    %13 = vector.broadcast %12 : vector<128x1xf32> to vector<128x256xf32>
    %14 = arith.subf %10, %13 : vector<128x256xf32>
    %15 = math.exp %14 : vector<128x256xf32>
    %cst_12 = arith.constant dense<0.000000e+00> : vector<128xf32>
    %16 = vector.multi_reduction <add>, %15, %cst_12 [1] : vector<128x256xf32> to vector<128xf32>
    %17 = vector.shape_cast %16 : vector<128xf32> to vector<128x1xf32>
    %18 = tpu.reciprocal %17 {approx = true} : vector<128x1xf32> -> vector<128x1xf32>
    %19 = vector.broadcast %18 : vector<128x1xf32> to vector<128x256xf32>
    %20 = arith.mulf %15, %19 : vector<128x256xf32>
    %c0_13 = arith.constant 0 : index
    %c0_14 = arith.constant 0 : index
    %c0_15 = arith.constant 0 : index
    %c0_16 = arith.constant 0 : index
    %21 = vector.load %arg8[%c0_13, %c0_14, %c0_15, %c0_16] : memref<1x1x128x256xf32, #tpu.memory_space<vmem>>, vector<1x1x128x256xf32>
    %22 = vector.shape_cast %21 : vector<1x1x128x256xf32> to vector<128x256xf32>
    %23 = vector.shape_cast %20 : vector<128x256xf32> to vector<1x1x128x256xf32>
    tpu.vector_store %arg8[%c0_13, %c0_14, %c0_15, %c0_16], %23 {strides = array<i32>} : memref<1x1x128x256xf32, #tpu.memory_space<vmem>>, vector<1x1x128x256xf32>,
    %24 = arith.truncf %20 : vector<128x256xf32> to vector<128x256xbf16>
    %cst_17 = arith.constant dense<0.000000e+00> : vector<128x128xf32>
    %25 = tpu.matmul %24, %5, %cst_17 {dimension_numbers = #tpu.dot_dimension_numbers<[1], [0], [0], [1], [0, 0, 1, 1], [], []>} : vector<128x256xbf16>, vector<256x128xbf16>, vector<128x128xf32> -> vector<128x128xf32>
    %26 = arith.truncf %25 : vector<128x128xf32> to vector<128x128xbf16>
    %c0_18 = arith.constant 0 : index
    %c0_19 = arith.constant 0 : index
    %c0_20 = arith.constant 0 : index
    %27 = vector.load %arg7[%c0_18, %c0_19, %c0_20] : memref<1x128x128xbf16, #tpu.memory_space<vmem>>, vector<1x128x128xbf16>
    %28 = vector.shape_cast %27 : vector<1x128x128xbf16> to vector<128x128xbf16>
    %29 = vector.shape_cast %26 : vector<128x128xbf16> to vector<1x128x128xbf16>
    tpu.vector_store %arg7[%c0_18, %c0_19, %c0_20], %29 {strides = array<i32>} : memref<1x128x128xbf16, #tpu.memory_space<vmem>>, vector<1x128x128xbf16>,
    return
  }
  func.func @transform_0(%arg0: i32, %arg1: i32, %arg2: i32) -> (i32, i32, i32) {
    %c0_i32 = arith.constant 0 : i32
    return %arg0, %arg2, %arg1 : i32, i32, i32
  }
  func.func @transform_1(%arg0: i32, %arg1: i32, %arg2: i32) -> (i32, i32, i32) {
    %c2_i32 = arith.constant 2 : i32
    %0 = arith.addi %c2_i32, %arg1 : i32
    %c0_i32 = arith.constant 0 : i32
    %c0_i32_0 = arith.constant 0 : i32
    return %arg0, %c0_i32, %0 : i32, i32, i32
  }
  func.func @transform_2(%arg0: i32, %arg1: i32, %arg2: i32) -> (i32, i32, i32) {
    %c4_i32 = arith.constant 4 : i32
    %0 = arith.addi %c4_i32, %arg1 : i32
    %c0_i32 = arith.constant 0 : i32
    %c0_i32_0 = arith.constant 0 : i32
    return %arg0, %c0_i32, %0 : i32, i32, i32
  }
  func.func @transform_3(%arg0: i32, %arg1: i32, %arg2: i32) -> (i32, i32, i32) {
    %c0_i32 = arith.constant 0 : i32
    %c0_i32_0 = arith.constant 0 : i32
    return %arg1, %arg2, %c0_i32 : i32, i32, i32
  }
  func.func @transform_4(%arg0: i32, %arg1: i32, %arg2: i32) -> (i32, i32, i32) {
    %c0_i32 = arith.constant 0 : i32
    return %arg0, %arg2, %arg1 : i32, i32, i32
  }
  func.func @transform_5(%arg0: i32, %arg1: i32, %arg2: i32) -> (i32, i32, i32, i32) {
    %c0_i32 = arith.constant 0 : i32
    %c0_i32_0 = arith.constant 0 : i32
    return %arg0, %arg1, %arg2, %c0_i32 : i32, i32, i32, i32
  }
}

module attributes {stable_mosaic.version = 11 : i64} {
  func.func @_linear_kernel(%arg0: i32, %arg1: i32, %arg2: memref<256x256xbf16, #tpu.memory_space<vmem>>, %arg3: memref<256x256xbf16, #tpu.memory_space<vmem>>, %arg4: memref<1x256xf32, #tpu.memory_space<vmem>>, %arg5: memref<256x256xf32, #tpu.memory_space<vmem>>) attributes {dimension_semantics = [#tpu.dimension_semantics<parallel>, #tpu.dimension_semantics<parallel>], iteration_bounds = array<i64: 2, 1>, scalar_prefetch = 0 : i64, scratch_operands = 0 : i64, tpu.core_type = #tpu.core_type<tc>, window_params = [{transform_indices = @transform_0, window_bounds = array<i64: 256, 256>}, {transform_indices = @transform_1, window_bounds = array<i64: 256, 256>}, {transform_indices = @transform_2, window_bounds = array<i64: 1, 256>}, {transform_indices = @transform_3, window_bounds = array<i64: 256, 256>}]} {
    %c0 = arith.constant 0 : index
    %c0_0 = arith.constant 0 : index
    %0 = vector.load %arg2[%c0, %c0_0] : memref<256x256xbf16, #tpu.memory_space<vmem>>, vector<256x256xbf16>
    %c0_1 = arith.constant 0 : index
    %c0_2 = arith.constant 0 : index
    %1 = vector.load %arg3[%c0_1, %c0_2] : memref<256x256xbf16, #tpu.memory_space<vmem>>, vector<256x256xbf16>
    %cst = arith.constant dense<0.000000e+00> : vector<256x256xf32>
    %2 = tpu.matmul %0, %1, %cst {dimension_numbers = #tpu.dot_dimension_numbers<[1], [0], [0], [1], [0, 0, 1, 1], [], []>} : vector<256x256xbf16>, vector<256x256xbf16>, vector<256x256xf32> -> vector<256x256xf32>
    %c0_3 = arith.constant 0 : index
    %c0_4 = arith.constant 0 : index
    %3 = vector.load %arg4[%c0_3, %c0_4] : memref<1x256xf32, #tpu.memory_space<vmem>>, vector<1x256xf32>
    %4 = vector.broadcast %3 : vector<1x256xf32> to vector<256x256xf32>
    %5 = arith.addf %2, %4 : vector<256x256xf32>
    %c0_5 = arith.constant 0 : index
    %c0_6 = arith.constant 0 : index
    %6 = vector.load %arg5[%c0_5, %c0_6] : memref<256x256xf32, #tpu.memory_space<vmem>>, vector<256x256xf32>
    tpu.vector_store %arg5[%c0_5, %c0_6], %5 {strides = array<i32>} : memref<256x256xf32, #tpu.memory_space<vmem>>, vector<256x256xf32>,
    return
  }
  func.func @transform_0(%arg0: i32, %arg1: i32) -> (i32, i32) {
    %c0_i32 = arith.constant 0 : i32
    %c0_i32_0 = arith.constant 0 : i32
    return %arg0, %c0_i32 : i32, i32
  }
  func.func @transform_1(%arg0: i32, %arg1: i32) -> (i32, i32) {
    %c0_i32 = arith.constant 0 : i32
    %c0_i32_0 = arith.constant 0 : i32
    return %c0_i32, %arg1 : i32, i32
  }
  func.func @transform_2(%arg0: i32, %arg1: i32) -> (i32, i32) {
    %c0_i32 = arith.constant 0 : i32
    %c0_i32_0 = arith.constant 0 : i32
    return %c0_i32, %arg1 : i32, i32
  }
  func.func @transform_3(%arg0: i32, %arg1: i32) -> (i32, i32) {
    %c0_i32 = arith.constant 0 : i32
    return %arg0, %arg1 : i32, i32
  }
}

</mosaic_0001>

<bundles_post_ra>
// kernel: t5_attention_forward.5
= control target key start
LH: loop header
LB: loop body
LE: loop exit
PB: predicated region body
PF: predicated region fallthrough
CT: control target
= control target key end

     0   :  { %8 = vsyncpa [#allocation3], 0  ;;  %s1756_s0 = inlined_call_operand.vmem [shape: bf16[512,256], index: 0, kind: input, shape index: {}]   ;;  %s1757_s1 = inlined_call_operand.vmem [shape: bf16[256,256], index: 1, kind: input, shape index: {}]   ;;  %s1758_s2 = inlined_call_operand.vmem [shape: f32[1,256], index: 2, kind: input, shape index: {}]   ;;  %s1759_s3 = inlined_call_operand.hbm [shape: f32[512,256], index: 3, kind: output, shape index: {}]  }
   0x1   :  { %10 = vsyncpa [#allocation3 + $0x1], 0  ;;  %s1371_s12 = smov 0   ;;  %s1373_s13 = smov 0  }
   0x2   :  { %s1375_s14 = smov 0   ;;  %s1377_s15 = smov 0  }
   0x3   :  { %s1379_s16 = smov 0   ;;  %s1381_s17 = smov 0  }
   0x4 LB: > { %s1001_s18 = sadd.s32 4294967295, %s1346_s17   ;;  %s1002_s19 = sadd.s32 4294967294, %s1346_s17   ;;  %s1346_s17 = sphi %s1381_s17, %s16_s17   ;;  %s1342_s16 = sphi %s1379_s16, %s1766_s16   ;;  %s1338_s15 = sphi %s1377_s15, %s1765_s15   ;;  %s1334_s14 = sphi %s1375_s14, %s1764_s14   ;;  %s1330_s13 = sphi %s1373_s13, %s1763_s13   ;;  %s1326_s12 = sphi %s1371_s12, %s1762_s12  }
   0x5   : > { %s28_s20 = sadd.s32 1, %s1342_s16  ;;  %s115_s21 = sadd.s32 1, %s1334_s14 }
   0x6   : > { %p30_p0 = scmp.ge.s32.totalorder %s28_s20, 2  ;;  %p125_p1 = scmp.ne.s32.totalorder %s1334_s14, %s1330_s13 }
   0x7   : > { %p126_p2 = scmp.eq.s32.totalorder %s1001_s18, 1  ;;  %p131_p3 = scmp.ne.s32.totalorder %s1330_s13, %s1326_s12 }
   0x8   : > { %s1768_s20 = smov (%p30_p0, %s28_s20), 0  ;;  %p132_p5 = scmp.eq.s32.totalorder %s1002_s19, 1 }
   0x9   : > { %p1411_p4 = por %p126_p2, %p125_p1  ;;  %s110_s23 = ssub.s32 %s1342_s16, %s1768_s20 }
   0xa   : > { %p1007_p6 = scmp.ge.s32.totalorder %s1346_s17, 1  ;;  %p113_p7 = scmp.eq.s32.totalorder %s110_s23, 0 }
   0xb   : > { %p1418_p8 = por %p132_p5, %p131_p3  ;;  %p177_p9 = scmp.lt.s32.totalorder %s1346_s17, 3 }
   0xc   : > { %s1424_s25 = scalar_select %p113_p7, %s1334_s14, %s115_s21  }
   0xd   : > { %p178_p10 = pnand %p1007_p6, %p177_p9 }
   0xe   : > { %s1009_s9 = sshll.u32 (!%p178_p10), %s1338_s15, 5  ;;  %s208_s29 = sand.u32 (!%p178_p10), 1, %s1330_s13  }
   0xf   : > { %181 = sbr.rel (%p178_p10) target bundleno = 356 (0x164), region = 32  ;;  %p212_p11 = scmp.lt.s32.totalorder (!%p178_p10), %s1009_s9, 63 }
  0x10   : > { %s1084_s6 = sshll.u32 (!%p178_p10), %s1338_s15, 13  ;;  %s1711_s15 = scalar_lea.sflag (!%p178_p10), [#allocation3], %s208_s29 }
  0x11   : > { %s1699_s18 = scalar_lea.hbm (!%p178_p10), %s1759_s3, %s1084_s6 }
  0x14   : > { %v1174_v0 = vld [vmem:[%s1757_s1 + $0x74] ss:$8 sps:$4 sm:$0xff]   ;;  %v1176_v1 = vld [vmem:[%s1757_s1 + $0x70] ss:$8 sps:$4 sm:$0xff]   ;;  %v1177_v2 = vld [vmem:[%s1757_s1 + $0x64] ss:$8 sps:$4 sm:$0xff]  }
  0x15   : > { %627 = vmatprep.subr.bf16.mxu0 %v1174_v0  ;;  %1085 = vmatprep.subr.bf16.mxu1 %v1174_v0  ;;  %v1179_v3 = vld [vmem:[%s1757_s1 + $0x60] ss:$8 sps:$4 sm:$0xff]   ;;  %v1180_v4 = vld [vmem:[%s1757_s1 + $0x54] ss:$8 sps:$4 sm:$0xff]   ;;  %v1182_v5 = vld [vmem:[%s1757_s1 + $0x50] ss:$8 sps:$4 sm:$0xff]   ;;  %v297_v0 = vlaneseq }
  0x16   : > { %628 = vmatpush1.bf16.msra.mxu0 %v1176_v1  ;;  %1101 = vmatpush1.bf16.msra.mxu1 %v1176_v1  ;;  %v1183_v6 = vld [vmem:[%s1757_s1 + $0x44] ss:$8 sps:$4 sm:$0xff]   ;;  %v1185_v7 = vld [vmem:[%s1757_s1 + $0x40] ss:$8 sps:$4 sm:$0xff]   ;;  %v1186_v8 = vld [vmem:[%s1757_s1 + $0x34] ss:$8 sps:$4 sm:$0xff]  }
  0x17   : > { %629 = vmatprep.subr.bf16.mxu0 %v1177_v2  ;;  %1086 = vmatprep.subr.bf16.mxu1 %v1177_v2  ;;  %s1770_s9 = smov (!%p212_p11, %s1009_s9), 63  ;;  %v1188_v9 = vld [vmem:[%s1757_s1 + $0x30] ss:$8 sps:$4 sm:$0xff]   ;;  %v1189_v10 = vld [vmem:[%s1757_s1 + $0x24] ss:$8 sps:$4 sm:$0xff]   ;;  %v298_v1 = vshrl.u32 %v297_v0, 7 }
  0x18   : > { %s1082_s5 = sshll.u32 %s1770_s9, 3  ;;  %v1191_v11 = vld [vmem:[%s1757_s1 + $0x20] ss:$8 sps:$4 sm:$0xff]   ;;  %v1192_v12 = vld [vmem:[%s1757_s1 + $0x14] ss:$8 sps:$4 sm:$0xff]   ;;  %s1348_s9 = smov [#allocation2]  }
  0x19   : > { %s1466_s11 = scalar_lea.vmem %s1756_s0, %s1082_s5  ;;  %v1194_v14 = vld [vmem:[%s1757_s1 + $0x10] ss:$8 sps:$4 sm:$0xff]   ;;  %v1195_v16 = vld [vmem:[%s1757_s1 + $0x4] ss:$8 sps:$4 sm:$0xff]   ;;  %v1197_v17 = vld [vmem:[%s1757_s1] ss:$8 sps:$4 sm:$0xff]  }
  0x1a   : > { %630 = vmatpush1.bf16.msra.mxu0 %v1179_v3  ;;  %1102 = vmatpush1.bf16.msra.mxu1 %v1179_v3  ;;  %v1224_v13 = vld [vmem:[%s1466_s11 + $0x4] ss:$8 sps:$4 sm:$0xff]   ;;  %v1198_v18 = vld [vmem:[%s1757_s1 + $0xf4] ss:$8 sps:$4 sm:$0xff]   ;;  %v1200_v19 = vld [vmem:[%s1757_s1 + $0xf0] ss:$8 sps:$4 sm:$0xff]  }
  0x1b   : > { %631 = vmatprep.subr.bf16.mxu0 %v1180_v4  ;;  %1087 = vmatprep.subr.bf16.mxu1 %v1180_v4  ;;  %v1227_v15 = vld [vmem:[%s1466_s11 + $0x84] ss:$8 sps:$4 sm:$0xff]   ;;  %v1203_v21 = vld [vmem:[%s1757_s1 + $0xe0] ss:$8 sps:$4 sm:$0xff]   ;;  %v1204_v22 = vld [vmem:[%s1757_s1 + $0xd4] ss:$8 sps:$4 sm:$0xff]  }
  0x1c   : > { %659 = vmatprep.mubr.bf16.mxu0 %v1224_v13  ;;  %739 = vmatprep.mubr.bf16.mxu1 %v1227_v15  ;;  %v1201_v20 = vld [vmem:[%s1757_s1 + $0xe4] ss:$8 sps:$4 sm:$0xff]   ;;  %v1206_v23 = vld [vmem:[%s1757_s1 + $0xd0] ss:$8 sps:$4 sm:$0xff]   ;;  %v1209_v25 = vld [vmem:[%s1757_s1 + $0xc0] ss:$8 sps:$4 sm:$0xff]  }
  0x1d   : > { %v1207_v24 = vld [vmem:[%s1757_s1 + $0xc4] ss:$8 sps:$4 sm:$0xff]   ;;  %v1210_v26 = vld [vmem:[%s1757_s1 + $0xb4] ss:$8 sps:$4 sm:$0xff]   ;;  %v1212_v27 = vld [vmem:[%s1757_s1 + $0xb0] ss:$8 sps:$4 sm:$0xff]  }
  0x1e   : > { %632 = vmatpush1.bf16.msra.mxu0 %v1182_v5  ;;  %1103 = vmatpush1.bf16.msra.mxu1 %v1182_v5  ;;  %v1213_v28 = vld [vmem:[%s1757_s1 + $0xa4] ss:$8 sps:$4 sm:$0xff]   ;;  %v1215_v29 = vld [vmem:[%s1757_s1 + $0xa0] ss:$8 sps:$4 sm:$0xff]   ;;  %v1216_v30 = vld [vmem:[%s1757_s1 + $0x94] ss:$8 sps:$4 sm:$0xff]  }
  0x1f   : > { %633 = vmatprep.subr.bf16.mxu0 %v1183_v6  ;;  %1088 = vmatprep.subr.bf16.mxu1 %v1183_v6  ;;  %v1218_v31 = vld [vmem:[%s1757_s1 + $0x90] ss:$8 sps:$4 sm:$0xff]   ;;  %v1219_v32 = vld [vmem:[%s1757_s1 + $0x84] ss:$8 sps:$4 sm:$0xff]   ;;  %v1221_v33 = vld [vmem:[%s1757_s1 + $0x80] ss:$8 sps:$4 sm:$0xff]  }
  0x20   : > { %v1222_v34 = vld [vmem:[%s1466_s11] ss:$8 sps:$4 sm:$0xff]   ;;  %v1228_v36 = vld [vmem:[%s1466_s11 + $0x14] ss:$8 sps:$4 sm:$0xff]   ;;  %v1232_v38 = vld [vmem:[%s1466_s11 + $0x10] ss:$8 sps:$4 sm:$0xff]  }
  0x21   : > { %v1225_v35 = vld [vmem:[%s1466_s11 + $0x80] ss:$8 sps:$4 sm:$0xff]   ;;  %v1230_v37 = vld [vmem:[%s1466_s11 + $0x94] ss:$8 sps:$4 sm:$0xff]   ;;  %v1233_v39 = vld [vmem:[%s1466_s11 + $0x90] ss:$8 sps:$4 sm:$0xff]  }
  0x22   : > { %634 = vmatpush1.bf16.msra.mxu0 %v1185_v7  ;;  %1104 = vmatpush1.bf16.msra.mxu1 %v1185_v7  ;;  %v1234_v40 = vld [vmem:[%s1466_s11 + $0x24] ss:$8 sps:$4 sm:$0xff]   ;;  %v1238_v42 = vld [vmem:[%s1466_s11 + $0x20] ss:$8 sps:$4 sm:$0xff]   ;;  %v1240_v44 = vld [vmem:[%s1466_s11 + $0x34] ss:$8 sps:$4 sm:$0xff]  }
  0x23   : > { %635 = vmatprep.subr.bf16.mxu0 %v1186_v8  ;;  %1089 = vmatprep.subr.bf16.mxu1 %v1186_v8  ;;  %v1236_v41 = vld [vmem:[%s1466_s11 + $0xa4] ss:$8 sps:$4 sm:$0xff]   ;;  %v1239_v43 = vld [vmem:[%s1466_s11 + $0xa0] ss:$8 sps:$4 sm:$0xff]   ;;  %v1242_v45 = vld [vmem:[%s1466_s11 + $0xb4] ss:$8 sps:$4 sm:$0xff]  }
  0x24   : > { %v1244_v46 = vld [vmem:[%s1466_s11 + $0x30] ss:$8 sps:$4 sm:$0xff]   ;;  %v1246_v48 = vld [vmem:[%s1466_s11 + $0x44] ss:$8 sps:$4 sm:$0xff]   ;;  %v1250_v50 = vld [vmem:[%s1466_s11 + $0x40] ss:$8 sps:$4 sm:$0xff]  }
  0x25   : > { %v1245_v47 = vld [vmem:[%s1466_s11 + $0xb0] ss:$8 sps:$4 sm:$0xff]   ;;  %v1248_v49 = vld [vmem:[%s1466_s11 + $0xc4] ss:$8 sps:$4 sm:$0xff]   ;;  %v1251_v51 = vld [vmem:[%s1466_s11 + $0xc0] ss:$8 sps:$4 sm:$0xff]  }
  0x26   : > { %636 = vmatpush1.bf16.msra.mxu0 %v1188_v9  ;;  %1105 = vmatpush1.bf16.msra.mxu1 %v1188_v9  ;;  %v1252_v52 = vld [vmem:[%s1466_s11 + $0x54] ss:$8 sps:$4 sm:$0xff]   ;;  %v1256_v54 = vld [vmem:[%s1466_s11 + $0x50] ss:$8 sps:$4 sm:$0xff]   ;;  %v1258_v56 = vld [vmem:[%s1466_s11 + $0x64] ss:$8 sps:$4 sm:$0xff]  }
  0x27   : > { %637 = vmatprep.subr.bf16.mxu0 %v1189_v10  ;;  %1090 = vmatprep.subr.bf16.mxu1 %v1189_v10  ;;  %v1254_v53 = vld [vmem:[%s1466_s11 + $0xd4] ss:$8 sps:$4 sm:$0xff]   ;;  %v1257_v55 = vld [vmem:[%s1466_s11 + $0xd0] ss:$8 sps:$4 sm:$0xff]   ;;  %v1260_v57 = vld [vmem:[%s1466_s11 + $0xe4] ss:$8 sps:$4 sm:$0xff]  }
  0x28   : > { %v1262_v58 = vld [vmem:[%s1466_s11 + $0x60] ss:$8 sps:$4 sm:$0xff]   ;;  %v1264_v60 = vld [vmem:[%s1466_s11 + $0x74] ss:$8 sps:$4 sm:$0xff]   ;;  %v1268_v62 = vld [vmem:[%s1466_s11 + $0x70] ss:$8 sps:$4 sm:$0xff]  }
  0x29   : > { %v1263_v59 = vld [vmem:[%s1466_s11 + $0xe0] ss:$8 sps:$4 sm:$0xff]   ;;  %v1266_v61 = vld [vmem:[%s1466_s11 + $0xf4] ss:$8 sps:$4 sm:$0xff]   ;;  %v1269_v63 = vld [vmem:[%s1466_s11 + $0xf0] ss:$8 sps:$4 sm:$0xff]  }
  0x2a   : > { %638 = vmatpush1.bf16.msra.mxu0 %v1191_v11  ;;  %1106 = vmatpush1.bf16.msra.mxu1 %v1191_v11  ;;  %v299_v2 = vsub.s32 0, %v298_v1  ;;  %v295_v3 = vld [vmem:[%s1758_s2] sm:$0x3]  ;;  %v303_v4 = vsub.s32 1, %v298_v1  ;;  %s1008_s5 = sshll.u32 %s208_s29, 9  ;;  %s1274_s21 = sshll.u32 %s1348_s9, 4  ;;  %s1275_s21 = int_to_ptr.vmem [resolvable:$false] %s1274_s21 }
  0x2b   : > { %639 = vmatprep.subr.bf16.mxu0 %v1192_v12  ;;  %1091 = vmatprep.subr.bf16.mxu1 %v1192_v12  ;;  %s1572_s11 = scalar_lea.vmem [#allocation2], %s1008_s5  ;;  %s1276_s23 = scalar_lea.vmem %s1275_s21, 16384 }
  0x2c   : > { %v1566_v5 = vrot.slane %v295_v3, %v299_v2  ;;  %v1568_v6 = vrot.slane %v295_v3, %v303_v4  ;;  %s901_s7 = sshll.u32 %s1572_s11, 4  ;;  %s1701_s7 = int_to_ptr.vmem [resolvable:$true] %s901_s7 }
  0x2d   : > { %s1270_s19 = scalar_lea.vmem %s1701_s7, 8192  ;;  %p1277_p1 = scmp.lt.s32.totalorder %s1701_s7, %s1275_s21 }
  0x2e   : > { %640 = vmatpush1.bf16.msra.mxu0 %v1194_v14  ;;  %1107 = vmatpush1.bf16.msra.mxu1 %v1194_v14  ;;  %p1271_p12 = scmp.ne.s32.totalorder %s1701_s7, %s1270_s19  ;;  %p1278_p2 = scmp.lt.s32.totalorder %s1276_s23, %s1270_s19 }
  0x2f   : > { %641 = vmatprep.subr.bf16.mxu0 %v1195_v16  ;;  %1092 = vmatprep.subr.bf16.mxu1 %v1195_v16 }
  0x30   : > { %p1272_p13 = pnand %p1271_p12, %p1411_p4  ;;  %p1279_p3 = por %p1278_p2, %p1277_p1 }
  0x32   : > { %642 = vmatpush1.bf16.msra.mxu0 %v1197_v17  ;;  %1108 = vmatpush1.bf16.msra.mxu1 %v1197_v17  ;;  %p1273_p0 = pneg %p1272_p13 }
  0x33   : > { %643 = vmatprep.subr.bf16.mxu0 %v1198_v18  ;;  %1093 = vmatprep.subr.bf16.mxu1 %v1198_v18 }
  0x34   : > { %p1280_p5 = pnand %p1279_p3, %p1273_p0 }
  0x36   : > { %644 = vmatpush2.bf16.msra.mxu0 %v1200_v19  ;;  %1109 = vmatpush2.bf16.msra.mxu1 %v1200_v19 }
  0x37   : > { %645 = vmatprep.subr.bf16.mxu0 %v1201_v20  ;;  %1094 = vmatprep.subr.bf16.mxu1 %v1201_v20 }
  0x3a   : > { %646 = vmatpush2.bf16.msra.mxu0 %v1203_v21  ;;  %1110 = vmatpush2.bf16.msra.mxu1 %v1203_v21 }
  0x3b   : > { %647 = vmatprep.subr.bf16.mxu0 %v1204_v22  ;;  %1095 = vmatprep.subr.bf16.mxu1 %v1204_v22 }
  0x3e   : > { %648 = vmatpush2.bf16.msra.mxu0 %v1206_v23  ;;  %1111 = vmatpush2.bf16.msra.mxu1 %v1206_v23 }
  0x3f   : > { %649 = vmatprep.subr.bf16.mxu0 %v1207_v24  ;;  %1096 = vmatprep.subr.bf16.mxu1 %v1207_v24 }
  0x42   : > { %650 = vmatpush2.bf16.msra.mxu0 %v1209_v25  ;;  %1112 = vmatpush2.bf16.msra.mxu1 %v1209_v25 }
  0x43   : > { %651 = vmatprep.subr.bf16.mxu0 %v1210_v26  ;;  %1097 = vmatprep.subr.bf16.mxu1 %v1210_v26 }
  0x46   : > { %652 = vmatpush2.bf16.msra.mxu0 %v1212_v27  ;;  %1113 = vmatpush2.bf16.msra.mxu1 %v1212_v27 }
  0x47   : > { %653 = vmatprep.subr.bf16.mxu0 %v1213_v28  ;;  %1098 = vmatprep.subr.bf16.mxu1 %v1213_v28 }
  0x4a   : > { %654 = vmatpush2.bf16.msra.mxu0 %v1215_v29  ;;  %1114 = vmatpush2.bf16.msra.mxu1 %v1215_v29 }
  0x4b   : > { %655 = vmatprep.subr.bf16.mxu0 %v1216_v30  ;;  %1099 = vmatprep.subr.bf16.mxu1 %v1216_v30 }
  0x4e   : > { %656 = vmatpush2.bf16.msra.mxu0 %v1218_v31  ;;  %1115 = vmatpush2.bf16.msra.mxu1 %v1218_v31 }
  0x4f   : > { %657 = vmatprep.subr.bf16.mxu0 %v1219_v32  ;;  %1100 = vmatprep.subr.bf16.mxu1 %v1219_v32 }
  0x52   : > { %658 = vmatpush2.bf16.msra.mxu0 %v1221_v33  ;;  %1116 = vmatpush2.bf16.msra.mxu1 %v1221_v33 }
  0x55   : > { %660 = vmatmul.mubr.bf16.vlgmr.msra.gmra.mxu0 %v1222_v34  ;;  %740 = vmatmul.mubr.bf16.vlgmr.msra.gmra.mxu1 %v1225_v35 }
  0x56   : > { %669 = vmatprep.mubr.bf16.mxu0 %v1228_v36  ;;  %749 = vmatprep.mubr.bf16.mxu1 %v1230_v37 }
  0x5d   : > { %670 = vmatmul.mubr.bf16.gmra.mxu0 %v1232_v38  ;;  %750 = vmatmul.mubr.bf16.gmra.mxu1 %v1233_v39 }
  0x5e   : > { %679 = vmatprep.mubr.bf16.mxu0 %v1234_v40  ;;  %759 = vmatprep.mubr.bf16.mxu1 %v1236_v41 }
  0x65   : > { %680 = vmatmul.mubr.bf16.gmra.mxu0 %v1238_v42  ;;  %760 = vmatmul.mubr.bf16.gmra.mxu1 %v1239_v43 }
  0x66   : > { %689 = vmatprep.mubr.bf16.mxu0 %v1240_v44  ;;  %769 = vmatprep.mubr.bf16.mxu1 %v1242_v45 }
  0x6d   : > { %690 = vmatmul.mubr.bf16.gmra.mxu0 %v1244_v46  ;;  %770 = vmatmul.mubr.bf16.gmra.mxu1 %v1245_v47 }
  0x6e   : > { %699 = vmatprep.mubr.bf16.mxu0 %v1246_v48  ;;  %779 = vmatprep.mubr.bf16.mxu1 %v1248_v49 }
  0x75   : > { %700 = vmatmul.mubr.bf16.gmra.mxu0 %v1250_v50  ;;  %780 = vmatmul.mubr.bf16.gmra.mxu1 %v1251_v51 }
  0x76   : > { %709 = vmatprep.mubr.bf16.mxu0 %v1252_v52  ;;  %789 = vmatprep.mubr.bf16.mxu1 %v1254_v53 }
  0x7d   : > { %710 = vmatmul.mubr.bf16.gmra.mxu0 %v1256_v54  ;;  %790 = vmatmul.mubr.bf16.gmra.mxu1 %v1257_v55 }
  0x7e   : > { %719 = vmatprep.mubr.bf16.mxu0 %v1258_v56  ;;  %799 = vmatprep.mubr.bf16.mxu1 %v1260_v57 }
  0x85   : > { %720 = vmatmul.mubr.bf16.gmra.mxu0 %v1262_v58  ;;  %800 = vmatmul.mubr.bf16.gmra.mxu1 %v1263_v59 }
  0x86   : > { %729 = vmatprep.mubr.bf16.mxu0 %v1264_v60  ;;  %809 = vmatprep.mubr.bf16.mxu1 %v1266_v61 }
  0x8d   : > { %730 = vmatmul.mubr.bf16.gmra.mxu0 %v1268_v62  ;;  %810 = vmatmul.mubr.bf16.gmra.mxu1 %v1269_v63 }
 0x115   : > { %v661_v7 = vpop.f32.mrf.mxu0  ;;  %v741_v8 = vpop.f32.mrf.mxu1 }
 0x116   : > { %v662_v9 = vadd.f32 %v661_v7, %v1566_v5  ;;  %v742_v10 = vadd.f32 %v741_v8, %v1566_v5 }
 0x117   : > { %v663_v11 = vpop.f32.mrf.mxu0  ;;  %v743_v12 = vpop.f32.mrf.mxu1 }
 0x118   : > { %820 = vst [vmem:[%s1572_s11] sm:$0xff] %v662_v9  ;;  %852 = vst [vmem:[%s1572_s11 + $0x100] sm:$0xff] %v742_v10  ;;  %v664_v13 = vadd.f32 %v663_v11, %v1568_v6  ;;  %v744_v14 = vadd.f32 %v743_v12, %v1568_v6 }
 0x119   : > { %v665_v15 = vpop.f32.mrf.mxu0  ;;  %v745_v16 = vpop.f32.mrf.mxu1 }
 0x11a   : > { %821 = vst [vmem:[%s1572_s11 + $0x8] sm:$0xff] %v664_v13  ;;  %853 = vst [vmem:[%s1572_s11 + $0x108] sm:$0xff] %v744_v14  ;;  %v666_v17 = vadd.f32 %v665_v15, %v1566_v5  ;;  %v746_v18 = vadd.f32 %v745_v16, %v1566_v5 }
 0x11b   : > { %v667_v19 = vpop.f32.mrf.mxu0  ;;  %v747_v20 = vpop.f32.mrf.mxu1 }
 0x11c   : > { %822 = vst [vmem:[%s1572_s11 + $0x10] sm:$0xff] %v666_v17  ;;  %854 = vst [vmem:[%s1572_s11 + $0x110] sm:$0xff] %v746_v18  ;;  %v668_v21 = vadd.f32 %v667_v19, %v1568_v6  ;;  %v748_v22 = vadd.f32 %v747_v20, %v1568_v6 }
 0x11d   : > { %v671_v23 = vpop.f32.mrf.mxu0  ;;  %v751_v24 = vpop.f32.mrf.mxu1 }
 0x11e   : > { %823 = vst [vmem:[%s1572_s11 + $0x18] sm:$0xff] %v668_v21  ;;  %855 = vst [vmem:[%s1572_s11 + $0x118] sm:$0xff] %v748_v22  ;;  %v672_v25 = vadd.f32 %v671_v23, %v1566_v5  ;;  %v752_v26 = vadd.f32 %v751_v24, %v1566_v5 }
 0x11f   : > { %v673_v27 = vpop.f32.mrf.mxu0  ;;  %v753_v28 = vpop.f32.mrf.mxu1 }
 0x120   : > { %824 = vst [vmem:[%s1572_s11 + $0x20] sm:$0xff] %v672_v25  ;;  %856 = vst [vmem:[%s1572_s11 + $0x120] sm:$0xff] %v752_v26  ;;  %v674_v29 = vadd.f32 %v673_v27, %v1568_v6  ;;  %v754_v30 = vadd.f32 %v753_v28, %v1568_v6 }
 0x121   : > { %v675_v31 = vpop.f32.mrf.mxu0  ;;  %v755_v32 = vpop.f32.mrf.mxu1 }
 0x122   : > { %825 = vst [vmem:[%s1572_s11 + $0x28] sm:$0xff] %v674_v29  ;;  %857 = vst [vmem:[%s1572_s11 + $0x128] sm:$0xff] %v754_v30  ;;  %v676_v33 = vadd.f32 %v675_v31, %v1566_v5  ;;  %v756_v34 = vadd.f32 %v755_v32, %v1566_v5 }
 0x123   : > { %v677_v35 = vpop.f32.mrf.mxu0  ;;  %v757_v36 = vpop.f32.mrf.mxu1 }
 0x124   : > { %826 = vst [vmem:[%s1572_s11 + $0x30] sm:$0xff] %v676_v33  ;;  %858 = vst [vmem:[%s1572_s11 + $0x130] sm:$0xff] %v756_v34  ;;  %v678_v37 = vadd.f32 %v677_v35, %v1568_v6  ;;  %v758_v38 = vadd.f32 %v757_v36, %v1568_v6 }
 0x125   : > { %v681_v39 = vpop.f32.mrf.mxu0  ;;  %v761_v40 = vpop.f32.mrf.mxu1 }
 0x126   : > { %827 = vst [vmem:[%s1572_s11 + $0x38] sm:$0xff] %v678_v37  ;;  %859 = vst [vmem:[%s1572_s11 + $0x138] sm:$0xff] %v758_v38  ;;  %v682_v41 = vadd.f32 %v681_v39, %v1566_v5  ;;  %v762_v42 = vadd.f32 %v761_v40, %v1566_v5 }
 0x127   : > { %v683_v43 = vpop.f32.mrf.mxu0  ;;  %v763_v44 = vpop.f32.mrf.mxu1 }
 0x128   : > { %828 = vst [vmem:[%s1572_s11 + $0x40] sm:$0xff] %v682_v41  ;;  %860 = vst [vmem:[%s1572_s11 + $0x140] sm:$0xff] %v762_v42  ;;  %v684_v45 = vadd.f32 %v683_v43, %v1568_v6  ;;  %v764_v46 = vadd.f32 %v763_v44, %v1568_v6 }
 0x129   : > { %v685_v47 = vpop.f32.mrf.mxu0  ;;  %v765_v48 = vpop.f32.mrf.mxu1 }
 0x12a   : > { %829 = vst [vmem:[%s1572_s11 + $0x48] sm:$0xff] %v684_v45  ;;  %861 = vst [vmem:[%s1572_s11 + $0x148] sm:$0xff] %v764_v46  ;;  %v686_v49 = vadd.f32 %v685_v47, %v1566_v5  ;;  %v766_v50 = vadd.f32 %v765_v48, %v1566_v5 }
 0x12b   : > { %v687_v51 = vpop.f32.mrf.mxu0  ;;  %v767_v52 = vpop.f32.mrf.mxu1 }
 0x12c   : > { %830 = vst [vmem:[%s1572_s11 + $0x50] sm:$0xff] %v686_v49  ;;  %862 = vst [vmem:[%s1572_s11 + $0x150] sm:$0xff] %v766_v50  ;;  %v688_v53 = vadd.f32 %v687_v51, %v1568_v6  ;;  %v768_v54 = vadd.f32 %v767_v52, %v1568_v6 }
 0x12d   : > { %v691_v55 = vpop.f32.mrf.mxu0  ;;  %v771_v56 = vpop.f32.mrf.mxu1 }
 0x12e   : > { %831 = vst [vmem:[%s1572_s11 + $0x58] sm:$0xff] %v688_v53  ;;  %863 = vst [vmem:[%s1572_s11 + $0x158] sm:$0xff] %v768_v54  ;;  %v692_v57 = vadd.f32 %v691_v55, %v1566_v5  ;;  %v772_v58 = vadd.f32 %v771_v56, %v1566_v5 }
 0x12f   : > { %v693_v59 = vpop.f32.mrf.mxu0  ;;  %v773_v60 = vpop.f32.mrf.mxu1 }
 0x130   : > { %832 = vst [vmem:[%s1572_s11 + $0x60] sm:$0xff] %v692_v57  ;;  %864 = vst [vmem:[%s1572_s11 + $0x160] sm:$0xff] %v772_v58  ;;  %v694_v61 = vadd.f32 %v693_v59, %v1568_v6  ;;  %v774_v62 = vadd.f32 %v773_v60, %v1568_v6 }
 0x131   : > { %v695_v63 = vpop.f32.mrf.mxu0  ;;  %v775_v0 = vpop.f32.mrf.mxu1 }
 0x132   : > { %833 = vst [vmem:[%s1572_s11 + $0x68] sm:$0xff] %v694_v61  ;;  %865 = vst [vmem:[%s1572_s11 + $0x168] sm:$0xff] %v774_v62  ;;  %v696_v1 = vadd.f32 %v695_v63, %v1566_v5  ;;  %v776_v2 = vadd.f32 %v775_v0, %v1566_v5 }
 0x133   : > { %v697_v3 = vpop.f32.mrf.mxu0  ;;  %v777_v4 = vpop.f32.mrf.mxu1 }
 0x134   : > { %834 = vst [vmem:[%s1572_s11 + $0x70] sm:$0xff] %v696_v1  ;;  %866 = vst [vmem:[%s1572_s11 + $0x170] sm:$0xff] %v776_v2  ;;  %v698_v7 = vadd.f32 %v697_v3, %v1568_v6  ;;  %v778_v8 = vadd.f32 %v777_v4, %v1568_v6 }
 0x135   : > { %v701_v9 = vpop.f32.mrf.mxu0  ;;  %v781_v10 = vpop.f32.mrf.mxu1 }
 0x136   : > { %835 = vst [vmem:[%s1572_s11 + $0x78] sm:$0xff] %v698_v7  ;;  %867 = vst [vmem:[%s1572_s11 + $0x178] sm:$0xff] %v778_v8  ;;  %v702_v11 = vadd.f32 %v701_v9, %v1566_v5  ;;  %v782_v12 = vadd.f32 %v781_v10, %v1566_v5 }
 0x137   : > { %v703_v13 = vpop.f32.mrf.mxu0  ;;  %v783_v14 = vpop.f32.mrf.mxu1 }
 0x138   : > { %836 = vst [vmem:[%s1572_s11 + $0x80] sm:$0xff] %v702_v11  ;;  %868 = vst [vmem:[%s1572_s11 + $0x180] sm:$0xff] %v782_v12  ;;  %v704_v15 = vadd.f32 %v703_v13, %v1568_v6  ;;  %v784_v16 = vadd.f32 %v783_v14, %v1568_v6 }
 0x139   : > { %v705_v17 = vpop.f32.mrf.mxu0  ;;  %v785_v18 = vpop.f32.mrf.mxu1 }
 0x13a   : > { %837 = vst [vmem:[%s1572_s11 + $0x88] sm:$0xff] %v704_v15  ;;  %869 = vst [vmem:[%s1572_s11 + $0x188] sm:$0xff] %v784_v16  ;;  %v706_v19 = vadd.f32 %v705_v17, %v1566_v5  ;;  %v786_v20 = vadd.f32 %v785_v18, %v1566_v5 }
 0x13b   : > { %v707_v21 = vpop.f32.mrf.mxu0  ;;  %v787_v22 = vpop.f32.mrf.mxu1 }
 0x13c   : > { %838 = vst [vmem:[%s1572_s11 + $0x90] sm:$0xff] %v706_v19  ;;  %870 = vst [vmem:[%s1572_s11 + $0x190] sm:$0xff] %v786_v20  ;;  %v708_v23 = vadd.f32 %v707_v21, %v1568_v6  ;;  %v788_v24 = vadd.f32 %v787_v22, %v1568_v6 }
 0x13d   : > { %v711_v25 = vpop.f32.mrf.mxu0  ;;  %v791_v26 = vpop.f32.mrf.mxu1 }
 0x13e   : > { %839 = vst [vmem:[%s1572_s11 + $0x98] sm:$0xff] %v708_v23  ;;  %871 = vst [vmem:[%s1572_s11 + $0x198] sm:$0xff] %v788_v24  ;;  %v712_v27 = vadd.f32 %v711_v25, %v1566_v5  ;;  %v792_v28 = vadd.f32 %v791_v26, %v1566_v5 }
 0x13f   : > { %v713_v29 = vpop.f32.mrf.mxu0  ;;  %v793_v30 = vpop.f32.mrf.mxu1 }
 0x140   : > { %840 = vst [vmem:[%s1572_s11 + $0xa0] sm:$0xff] %v712_v27  ;;  %872 = vst [vmem:[%s1572_s11 + $0x1a0] sm:$0xff] %v792_v28  ;;  %v714_v31 = vadd.f32 %v713_v29, %v1568_v6  ;;  %v794_v32 = vadd.f32 %v793_v30, %v1568_v6 }
 0x141   : > { %v715_v33 = vpop.f32.mrf.mxu0  ;;  %v795_v34 = vpop.f32.mrf.mxu1 }
 0x142   : > { %841 = vst [vmem:[%s1572_s11 + $0xa8] sm:$0xff] %v714_v31  ;;  %873 = vst [vmem:[%s1572_s11 + $0x1a8] sm:$0xff] %v794_v32  ;;  %v716_v35 = vadd.f32 %v715_v33, %v1566_v5  ;;  %v796_v36 = vadd.f32 %v795_v34, %v1566_v5 }
 0x143   : > { %v717_v37 = vpop.f32.mrf.mxu0  ;;  %v797_v38 = vpop.f32.mrf.mxu1 }
 0x144   : > { %842 = vst [vmem:[%s1572_s11 + $0xb0] sm:$0xff] %v716_v35  ;;  %874 = vst [vmem:[%s1572_s11 + $0x1b0] sm:$0xff] %v796_v36  ;;  %v718_v39 = vadd.f32 %v717_v37, %v1568_v6  ;;  %v798_v40 = vadd.f32 %v797_v38, %v1568_v6 }
 0x145   : > { %v721_v41 = vpop.f32.mrf.mxu0  ;;  %v801_v42 = vpop.f32.mrf.mxu1 }
 0x146   : > { %843 = vst [vmem:[%s1572_s11 + $0xb8] sm:$0xff] %v718_v39  ;;  %875 = vst [vmem:[%s1572_s11 + $0x1b8] sm:$0xff] %v798_v40  ;;  %v722_v43 = vadd.f32 %v721_v41, %v1566_v5  ;;  %v802_v44 = vadd.f32 %v801_v42, %v1566_v5 }
 0x147   : > { %v723_v45 = vpop.f32.mrf.mxu0  ;;  %v803_v46 = vpop.f32.mrf.mxu1 }
 0x148   : > { %844 = vst [vmem:[%s1572_s11 + $0xc0] sm:$0xff] %v722_v43  ;;  %876 = vst [vmem:[%s1572_s11 + $0x1c0] sm:$0xff] %v802_v44  ;;  %v724_v47 = vadd.f32 %v723_v45, %v1568_v6  ;;  %v804_v48 = vadd.f32 %v803_v46, %v1568_v6 }
 0x149   : > { %v725_v49 = vpop.f32.mrf.mxu0  ;;  %v805_v50 = vpop.f32.mrf.mxu1 }
 0x14a   : > { %845 = vst [vmem:[%s1572_s11 + $0xc8] sm:$0xff] %v724_v47  ;;  %877 = vst [vmem:[%s1572_s11 + $0x1c8] sm:$0xff] %v804_v48  ;;  %v726_v51 = vadd.f32 %v725_v49, %v1566_v5  ;;  %v806_v52 = vadd.f32 %v805_v50, %v1566_v5 }
 0x14b   : > { %v727_v53 = vpop.f32.mrf.mxu0  ;;  %v807_v54 = vpop.f32.mrf.mxu1 }
 0x14c   : > { %846 = vst [vmem:[%s1572_s11 + $0xd0] sm:$0xff] %v726_v51  ;;  %878 = vst [vmem:[%s1572_s11 + $0x1d0] sm:$0xff] %v806_v52  ;;  %v728_v55 = vadd.f32 %v727_v53, %v1568_v6  ;;  %v808_v56 = vadd.f32 %v807_v54, %v1568_v6 }
 0x14d   : > { %v731_v57 = vpop.f32.mrf.mxu0  ;;  %v811_v58 = vpop.f32.mrf.mxu1 }
 0x14e   : > { %847 = vst [vmem:[%s1572_s11 + $0xd8] sm:$0xff] %v728_v55  ;;  %879 = vst [vmem:[%s1572_s11 + $0x1d8] sm:$0xff] %v808_v56  ;;  %v732_v59 = vadd.f32 %v731_v57, %v1566_v5  ;;  %v812_v60 = vadd.f32 %v811_v58, %v1566_v5 }
 0x14f   : > { %v733_v61 = vpop.f32.mrf.mxu0  ;;  %v813_v62 = vpop.f32.mrf.mxu1 }
 0x150   : > { %848 = vst [vmem:[%s1572_s11 + $0xe0] sm:$0xff] %v732_v59  ;;  %880 = vst [vmem:[%s1572_s11 + $0x1e0] sm:$0xff] %v812_v60  ;;  %v734_v63 = vadd.f32 %v733_v61, %v1568_v6  ;;  %v814_v0 = vadd.f32 %v813_v62, %v1568_v6 }
 0x151   : > { %v735_v1 = vpop.f32.mrf.mxu0  ;;  %v815_v2 = vpop.f32.mrf.mxu1 }
 0x152   : > { %849 = vst [vmem:[%s1572_s11 + $0xe8] sm:$0xff] %v734_v63  ;;  %881 = vst [vmem:[%s1572_s11 + $0x1e8] sm:$0xff] %v814_v0  ;;  %v736_v3 = vadd.f32 %v735_v1, %v1566_v5  ;;  %v816_v4 = vadd.f32 %v815_v2, %v1566_v5 }
 0x153   : > { %v737_v7 = vpop.f32.mrf.mxu0  ;;  %v817_v8 = vpop.f32.mrf.mxu1 }
 0x154   : > { %850 = vst [vmem:[%s1572_s11 + $0xf0] sm:$0xff] %v736_v3  ;;  %882 = vst [vmem:[%s1572_s11 + $0x1f0] sm:$0xff] %v816_v4  ;;  %v738_v9 = vadd.f32 %v737_v7, %v1568_v6  ;;  %v818_v10 = vadd.f32 %v817_v8, %v1568_v6 }
 0x156   : > { %851 = vst [vmem:[%s1572_s11 + $0xf8] sm:$0xff] %v738_v9  ;;  %883 = vst [vmem:[%s1572_s11 + $0x1f8] sm:$0xff] %v818_v10 }
 0x157   : > { %1283 = shalt.err (!%p1280_p5)
}
 0x158   : > { %s1284_s26 = scalar_lea.hbm %s1699_s18, 8192  ;;  %s1288_s29 = scalar_lea.hbm %s1759_s3, 16384 }
 0x159   : > { %p1285_p6 = scmp.ne.s32.totalorder %s1699_s18, %s1284_s26  ;;  %p1289_p10 = scmp.lt.s32.totalorder %s1699_s18, %s1759_s3 }
 0x15a   : > { %p1290_p11 = scmp.lt.s32.totalorder %s1288_s29, %s1284_s26 }
 0x15b   : > { %p1286_p7 = pnand %p1285_p6, %p1411_p4 }
 0x15c   : > { %p1291_p12 = por %p1290_p11, %p1289_p10 }
 0x15d   : > { %p1287_p9 = pneg %p1286_p7 }
 0x15f   : > { %p1292_p13 = pnand %p1291_p12, %p1287_p9 }
 0x161   : > { %1295 = shalt.err (!%p1292_p13)
}
 0x162   : > { %s1349_s5 = smov 256   ;;  %s1350_s11 = smov 16  }
 0x163   : > { %1117 = dma.vmem_to_hbm [thread:$0]  (%p1411_p4), %s1701_s7, 8192, %s1699_s18, %s1711_s15, %s1349_s5, %s1349_s5, %s1350_s11  }
 0x164 PF: > { %p1123_p0 = scmp.ge.s32.totalorder %s1346_s17, 2  ;;  %s916_s6 = sand.u32 1, %s1326_s12  }
 0x165   : > { %s917_s8 = scalar_lea.sflag [#allocation3], %s916_s6 }
 0x166   : > { %p1120_p1 = pnand %p1123_p0, %p1418_p8 }
 0x168   : > { %p1121_p2 = pneg %p1120_p1 }
 0x16a   : > { %1321 = dma.done.wait (%p1121_p2), %s917_s8, 8192  }
 0x16b   : > { %1323 = vsyncadd (%p1121_p2), %s917_s8, 4294959104  ;;  %s16_s17 = sadd.s32 1, %s1346_s17   ;;  %s1762_s12 = smov %s1330_s13 }
 0x16c   : > { %p13_p3 = scmp.ge.s32.totalorder %s16_s17, 4   ;;  %s1763_s13 = smov %s1334_s14 }
 0x16d   : > { %s1764_s14 = smov %s1424_s25  ;;  %s1765_s15 = smov %s1342_s16 }
 0x16e   : > { %s1766_s16 = smov %s1768_s20  ;;  %15 = sbr.rel (!%p13_p3) target bundleno = 4 (0x4), region = 73 }
 0x173   :  { %922 = vsyncpa [#allocation3], 1 }
 0x174   :  { %924 = vsyncpa [#allocation3 + $0x1], 1 }

// kernel: t5_attention_forward.4
= control target key start
LH: loop header
LB: loop body
LE: loop exit
PB: predicated region body
PF: predicated region fallthrough
CT: control target
= control target key end

     0   :  { %s3713_s0 = inlined_call_operand.vmem [shape: bf16[2,256,768], index: 0, kind: input, shape index: {}, may-alias: {0,1,2}]   ;;  %s3714_s1 = inlined_call_operand.vmem [shape: bf16[2,256,768], index: 1, kind: input, shape index: {}, may-alias: {0,1,2}]   ;;  %s3715_s2 = inlined_call_operand.vmem [shape: bf16[2,256,768], index: 2, kind: input, shape index: {}, may-alias: {0,1,2}]   ;;  %s3716_s3 = inlined_call_operand.vmem [shape: bf16[2,256,256], index: 3, kind: input, shape index: {}]   ;;  %s3717_s4 = inlined_call_operand.vmem [shape: bf16[2,256,256], index: 4, kind: output, shape index: {0}]   ;;  %s3718_s5 = inlined_call_operand.hbm [shape: f32[2,2,256,256], index: 5, kind: output, shape index: {1}]  }
   0x1   :  { %3725 = sst [smem:[#allocation19_spill]] %s3713_s0 }
   0x2   :  { %3726 = sst [smem:[#allocation20_spill]] %s3714_s1 }
   0x3   :  { %3727 = sst [smem:[#allocation21_spill]] %s3715_s2 }
   0x4   :  { %3728 = sst [smem:[#allocation22_spill]] %s3716_s3 }
   0x5   :  { %3729 = sst [smem:[#allocation23_spill]] %s3717_s4 }
   0x6   :  { %3730 = sst [smem:[#allocation24_spill]] %s3718_s5 }
   0x7   :  { %11 = vsyncpa [#allocation7], 0 }
   0x8   :  { %13 = vsyncpa [#allocation7 + $0x1], 0  ;;  %s2853_s18 = smov 0   ;;  %s2855_s19 = smov 0  }
   0x9   :  { %s2857_s20 = smov 0   ;;  %s2859_s21 = smov 0  }
   0xa   :  { %s2861_s22 = smov 0   ;;  %s2863_s23 = smov 0  }
   0xb   :  { %s2865_s24 = smov 0   ;;  %s2867_s25 = smov 0  }
   0xc   :  { %s2869_s26 = smov 0   ;;  %s2871_s27 = smov 0  }
   0xd   :  { %s2873_s28 = smov 0   ;;  %s2875_s29 = smov 0  }
   0xe   :  { %s2877_s30 = smov 0   ;;  %s2879_s6 = smov 0  }
   0xf   :  { %s2881_s7 = smov 0   ;;  %s2883_s8 = smov 0  }
  0x10 LB: > { %3731 = sst [smem:[#allocation9_spill]] %s2778_s23  ;;  %s31_s11 = sadd.s32 1, %s2806_s30  ;;  %s2818_s8 = sphi %s2883_s8, %s19_s8   ;;  %s2814_s7 = sphi %s2881_s7, %s3788_s7   ;;  %s2810_s6 = sphi %s2879_s6, %s3787_s6   ;;  %s2806_s30 = sphi %s2877_s30, %s3786_s30   ;;  %s2802_s29 = sphi %s2875_s29, %s3785_s29   ;;  %s2798_s28 = sphi %s2873_s28, %s3784_s28   ;;  %s2794_s27 = sphi %s2871_s27, %s3783_s27   ;;  %s2790_s26 = sphi %s2869_s26, %s3782_s26   ;;  %s2786_s25 = sphi %s2867_s25, %s3781_s25   ;;  %s2782_s24 = sphi %s2865_s24, %s3780_s24   ;;  %s2778_s23 = sphi %s2863_s23, %s3779_s23   ;;  %s2774_s22 = sphi %s2861_s22, %s3778_s22   ;;  %s2770_s21 = sphi %s2859_s21, %s3777_s21   ;;  %s2766_s20 = sphi %s2857_s20, %s3776_s20   ;;  %s2762_s19 = sphi %s2855_s19, %s3775_s19   ;;  %s2758_s18 = sphi %s2853_s18, %s3773_s18  }
  0x11   : > { %3732 = sst [smem:[#allocation10_spill]] %s2794_s27  ;;  %s34_s12 = sadd.s32 1, %s2810_s6 }
  0x12   : > { %3733 = sst [smem:[#allocation11_spill]] %s2798_s28  ;;  %p32_p0 = scmp.ge.s32.totalorder %s31_s11, 2 }
  0x13   : > { %3734 = sst [smem:[#allocation12_spill]] %s2802_s29  ;;  %s38_s13 = sadd.s32 1, %s2814_s7 }
  0x14   : > { %p56_p1 = scmp.ne.s32.totalorder %s2790_s26, %s2786_s25  ;;  %s3790_s11 = smov (%p32_p0, %s31_s11), 0 }
  0x15   : > { %3735 = sst [smem:[#allocation13_spill]] %s3790_s11  ;;  %s3792_s12 = smov (!%p32_p0, %s34_s12), %s2810_s6 }
  0x16   : > { %s2946_s15 = ssub.s32 %s2806_s30, %s3790_s11  ;;  %p57_p2 = scmp.eq.s32.totalorder %s2818_s8, 0 }
  0x17   : > { %p36_p3 = scmp.ge.s32.totalorder %s3792_s12, 2  ;;  %s72_s16 = sadd.s32 2, %s2810_s6 }
  0x18   : > { %p2955_p4 = por %p57_p2, %p56_p1  ;;  %s79_s10 = sadd.s32 1, %s2782_s24 }
  0x19   : > { %s3794_s12 = smov (%p36_p3, %s3792_s12), 0  ;;  %s3796_s13 = smov (!%p36_p3, %s38_s13), %s2814_s7 }
  0x1a   : > { %3737 = sst [smem:[#allocation14_spill]] %s3794_s12  ;;  %s2965_s9 = ssub.s32 %s2810_s6, %s3794_s12 }
  0x1b   : > { %s73_s14 = sadd.s32 2, %s3794_s12  ;;  %p40_p5 = scmp.ge.s32.totalorder %s3796_s13, 2 }
  0x1c   : > { %s75_s11 = ssub.s32 %s72_s16, %s73_s14  ;;  %p86_p6 = scmp.ne.s32.totalorder %s2782_s24, %s2778_s23 }
  0x1d   : > { %s102_s5 = sadd.s32 4, %s2810_s6  ;;  %s3798_s13 = smov (%p40_p5, %s3796_s13), 0 }
  0x1e   : > { %3738 = sst [smem:[#allocation15_spill]] %s3798_s13  ;;  %p2975_p7 = por %p86_p6, %p57_p2 }
  0x1f   : > { %s103_s29 = sadd.s32 4, %s3794_s12  ;;  %s42_s3 = ssub.s32 %s2814_s7, %s3798_s13 }
  0x20   : > { %s105_s14 = ssub.s32 %s102_s5, %s103_s29  ;;  %s44_s16 = sor.u32 %s2946_s15, %s42_s3 }
  0x21   : > { %s76_s28 = sor.u32 %s75_s11, %s42_s3  ;;  %s46_s27 = sor.u32 %s2965_s9, %s44_s16 }
  0x22   : > { %p77_p8 = scmp.eq.s32.totalorder %s76_s28, 0  ;;  %p47_p9 = scmp.eq.s32.totalorder %s46_s27, 0 }
  0x23   : > { %s106_s23 = sor.u32 %s105_s14, %s42_s3  ;;  %s3741_s12 = sadd.s32 1, %s2790_s26 }
  0x24   : > { %s2985_s2 = scalar_select %p77_p8, %s2782_s24, %s79_s10  }
  0x25   : > { %s2990_s13 = scalar_select %p47_p9, %s2790_s26, %s3741_s12  }
  0x26   : > { %3740 = sst [smem:[#allocation16_spill]] %s2985_s2  ;;  %p107_p10 = scmp.eq.s32.totalorder %s106_s23, 0 }
  0x27   : > { %3742 = sst [smem:[#allocation17_spill]] %s2990_s13  ;;  %s109_s5 = sadd.s32 1, %s2774_s22 }
  0x28   : > { %p116_p11 = scmp.ne.s32.totalorder %s2774_s22, %s2770_s21  ;;  %s3743_s29 = sadd.s32 4294967295, %s2818_s8  }
  0x29   : > { %p178_p12 = scmp.eq.s32.totalorder %s3743_s29, 7  ;;  %s192_s10 = sor.u32 %s2965_s9, %s42_s3 }
  0x2a   : > { %s2998_s11 = scalar_select %p107_p10, %s2774_s22, %s109_s5  }
  0x2b   : > { %p3002_p13 = por %p116_p11, %p57_p2  ;;  %p3009_p0 = por %p178_p12, %p56_p1 }
  0x2c   : > { %3744 = sst [smem:[#allocation18_spill]] %s2998_s11  ;;  %s197_s12 = sadd.s32 1, %s2766_s20 }
  0x2d   : > { %s194_s14 = sor.u32 %s192_s10, %s2946_s15  ;;  %p207_p3 = scmp.ne.s32.totalorder %s2766_s20, %s2762_s19 }
  0x2e   : > { %p195_p5 = scmp.eq.s32.totalorder %s194_s14, 0  ;;  %p213_p6 = scmp.ne.s32.totalorder %s2762_s19, %s2758_s18 }
  0x2f   : > { %p3020_p8 = por %p207_p3, %p178_p12  ;;  %s3748_s16 = sadd.s32 4294967294, %s2818_s8  }
  0x30   : > { %p214_p2 = scmp.eq.s32.totalorder %s3748_s16, 7  ;;  %p2074_p1 = scmp.ge.s32.totalorder %s2818_s8, 8 }
  0x31   : > { %s3027_s5 = scalar_select %p195_p5, %s2766_s20, %s197_s12  }
  0x32   : > { %p3029_p9 = por %p214_p2, %p213_p6  ;;  %230 = sbr.rel (%p2074_p1) target bundleno = 137 (0x89), region = 16 }
  0x37   : > { %233 = sbr.rel (!%p2955_p4) target bundleno = 75 (0x4b), region = 20  ;;  %s235_s3 = sand.u32 (%p2955_p4), 1, %s2790_s26  }
  0x38   : > { %s2387_s9 = smul.u32 (%p2955_p4), 96, %s2806_s30  ;;  %s2075_s15 = sshll.u32 (%p2955_p4), %s235_s3, 6 }
  0x39   : > { %s2388_s10 = smul.u32 (%p2955_p4), 192, %s2814_s7  ;;  %s3750_s0 = sld [smem:[#allocation19_spill]] (%p2955_p4) }
  0x3a   : > { %s240_s12 = sadd.s32 (%p2955_p4), %s2810_s6, %s2387_s9  ;;  %s237_s17 = scalar_lea.vmem (%p2955_p4), [#allocation2], %s2075_s15 }
  0x3b   : > { %s242_s14 = sadd.s32 (%p2955_p4), %s2388_s10, %s240_s12 }
  0x3c   : > { %s2078_s16 = sshll.u32 %s242_s14, 2 }
  0x3f   : > { %s3043_s11 = scalar_lea.vmem %s3750_s0, %s2078_s16 }
  0x40   : > { %v261_v0 = vld [vmem:[%s3043_s11] sm:$0xf]  ;;  %v263_v1 = vld [vmem:[%s3043_s11 + $0x18] sm:$0xf]  ;;  %v265_v2 = vld [vmem:[%s3043_s11 + $0x30] sm:$0xf] }
  0x41   : > { %262 = vst [vmem:[%s237_s17] sm:$0xf] %v261_v0  ;;  %264 = vst [vmem:[%s237_s17 + $0x4] sm:$0xf] %v263_v1  ;;  %v267_v3 = vld [vmem:[%s3043_s11 + $0x48] sm:$0xf] }
  0x42   : > { %266 = vst [vmem:[%s237_s17 + $0x8] sm:$0xf] %v265_v2  ;;  %v269_v4 = vld [vmem:[%s3043_s11 + $0x60] sm:$0xf]  ;;  %v271_v5 = vld [vmem:[%s3043_s11 + $0x78] sm:$0xf] }
  0x43   : > { %268 = vst [vmem:[%s237_s17 + $0xc] sm:$0xf] %v267_v3  ;;  %270 = vst [vmem:[%s237_s17 + $0x10] sm:$0xf] %v269_v4  ;;  %v273_v6 = vld [vmem:[%s3043_s11 + $0x90] sm:$0xf] }
  0x44   : > { %272 = vst [vmem:[%s237_s17 + $0x14] sm:$0xf] %v271_v5  ;;  %v275_v7 = vld [vmem:[%s3043_s11 + $0xa8] sm:$0xf]  ;;  %v277_v8 = vld [vmem:[%s3043_s11 + $0xc0] sm:$0xf] }
  0x45   : > { %274 = vst [vmem:[%s237_s17 + $0x18] sm:$0xf] %v273_v6  ;;  %276 = vst [vmem:[%s237_s17 + $0x1c] sm:$0xf] %v275_v7  ;;  %v279_v9 = vld [vmem:[%s3043_s11 + $0xd8] sm:$0xf] }
  0x46   : > { %278 = vst [vmem:[%s237_s17 + $0x20] sm:$0xf] %v277_v8  ;;  %v281_v10 = vld [vmem:[%s3043_s11 + $0xf0] sm:$0xf]  ;;  %v283_v11 = vld [vmem:[%s3043_s11 + $0x108] sm:$0xf] }
  0x47   : > { %280 = vst [vmem:[%s237_s17 + $0x24] sm:$0xf] %v279_v9  ;;  %282 = vst [vmem:[%s237_s17 + $0x28] sm:$0xf] %v281_v10  ;;  %v285_v12 = vld [vmem:[%s3043_s11 + $0x120] sm:$0xf] }
  0x48   : > { %284 = vst [vmem:[%s237_s17 + $0x2c] sm:$0xf] %v283_v11  ;;  %v287_v13 = vld [vmem:[%s3043_s11 + $0x138] sm:$0xf]  ;;  %v289_v14 = vld [vmem:[%s3043_s11 + $0x150] sm:$0xf] }
  0x49   : > { %286 = vst [vmem:[%s237_s17 + $0x30] sm:$0xf] %v285_v12  ;;  %288 = vst [vmem:[%s237_s17 + $0x34] sm:$0xf] %v287_v13  ;;  %v291_v15 = vld [vmem:[%s3043_s11 + $0x168] sm:$0xf] }
  0x4a   : > { %290 = vst [vmem:[%s237_s17 + $0x38] sm:$0xf] %v289_v14  ;;  %292 = vst [vmem:[%s237_s17 + $0x3c] sm:$0xf] %v291_v15 }
  0x4b PF: > { %348 = sbr.rel (!%p2975_p7) target bundleno = 106 (0x6a), region = 61  ;;  %s350_s2 = sand.u32 (%p2975_p7), 1, %s2782_s24  }
  0x4c   : > { %s1923_s13 = smul.u32 (%p2975_p7), 192, %s2814_s7  ;;  %s2079_s3 = sshll.u32 (%p2975_p7), %s350_s2, 7 }
  0x4d   : > { %s3751_s1 = sld [smem:[#allocation20_spill]] (%p2975_p7)  ;;  %s3074_s4 = scalar_lea.vmem (%p2975_p7), [#allocation3], %s2079_s3 }
  0x4e   : > { %s1924_s9 = sadd.s32 (%p2975_p7), %s2810_s6, %s1923_s13 }
  0x4f   : > { %s2080_s15 = sshll.u32 (%p2975_p7), %s1924_s9, 2 }
  0x53   : > { %s3069_s14 = scalar_lea.vmem %s3751_s1, %s2080_s15 }
  0x54   : > { %v2081_v16 = vld [vmem:[%s3069_s14 + $0x8] sm:$0xf]  ;;  %v2082_v17 = vld [vmem:[%s3069_s14 + $0x20] sm:$0xf]  ;;  %v2083_v18 = vld [vmem:[%s3069_s14 + $0x38] sm:$0xf] }
  0x55   : > { %375 = vst [vmem:[%s3074_s4] sm:$0xf] %v2081_v16  ;;  %377 = vst [vmem:[%s3074_s4 + $0x4] sm:$0xf] %v2082_v17  ;;  %v2084_v19 = vld [vmem:[%s3069_s14 + $0x50] sm:$0xf] }
  0x56   : > { %379 = vst [vmem:[%s3074_s4 + $0x8] sm:$0xf] %v2083_v18  ;;  %v2085_v20 = vld [vmem:[%s3069_s14 + $0x68] sm:$0xf]  ;;  %v2086_v21 = vld [vmem:[%s3069_s14 + $0x80] sm:$0xf] }
  0x57   : > { %381 = vst [vmem:[%s3074_s4 + $0xc] sm:$0xf] %v2084_v19  ;;  %383 = vst [vmem:[%s3074_s4 + $0x10] sm:$0xf] %v2085_v20  ;;  %v2087_v22 = vld [vmem:[%s3069_s14 + $0x98] sm:$0xf] }
  0x58   : > { %385 = vst [vmem:[%s3074_s4 + $0x14] sm:$0xf] %v2086_v21  ;;  %v2088_v23 = vld [vmem:[%s3069_s14 + $0xb0] sm:$0xf]  ;;  %v2089_v24 = vld [vmem:[%s3069_s14 + $0xc8] sm:$0xf] }
  0x59   : > { %387 = vst [vmem:[%s3074_s4 + $0x18] sm:$0xf] %v2087_v22  ;;  %389 = vst [vmem:[%s3074_s4 + $0x1c] sm:$0xf] %v2088_v23  ;;  %v2090_v25 = vld [vmem:[%s3069_s14 + $0xe0] sm:$0xf] }
  0x5a   : > { %391 = vst [vmem:[%s3074_s4 + $0x20] sm:$0xf] %v2089_v24  ;;  %v2091_v26 = vld [vmem:[%s3069_s14 + $0xf8] sm:$0xf]  ;;  %v2092_v27 = vld [vmem:[%s3069_s14 + $0x110] sm:$0xf] }
  0x5b   : > { %393 = vst [vmem:[%s3074_s4 + $0x24] sm:$0xf] %v2090_v25  ;;  %395 = vst [vmem:[%s3074_s4 + $0x28] sm:$0xf] %v2091_v26  ;;  %v2093_v28 = vld [vmem:[%s3069_s14 + $0x128] sm:$0xf] }
  0x5c   : > { %397 = vst [vmem:[%s3074_s4 + $0x2c] sm:$0xf] %v2092_v27  ;;  %v2094_v29 = vld [vmem:[%s3069_s14 + $0x140] sm:$0xf]  ;;  %v2095_v30 = vld [vmem:[%s3069_s14 + $0x158] sm:$0xf] }
  0x5d   : > { %399 = vst [vmem:[%s3074_s4 + $0x30] sm:$0xf] %v2093_v28  ;;  %401 = vst [vmem:[%s3074_s4 + $0x34] sm:$0xf] %v2094_v29  ;;  %v2096_v31 = vld [vmem:[%s3069_s14 + $0x170] sm:$0xf] }
  0x5e   : > { %403 = vst [vmem:[%s3074_s4 + $0x38] sm:$0xf] %v2095_v30  ;;  %v2097_v32 = vld [vmem:[%s3069_s14 + $0x188] sm:$0xf]  ;;  %v2098_v33 = vld [vmem:[%s3069_s14 + $0x1a0] sm:$0xf] }
  0x5f   : > { %405 = vst [vmem:[%s3074_s4 + $0x3c] sm:$0xf] %v2096_v31  ;;  %407 = vst [vmem:[%s3074_s4 + $0x40] sm:$0xf] %v2097_v32  ;;  %v2099_v34 = vld [vmem:[%s3069_s14 + $0x1b8] sm:$0xf] }
  0x60   : > { %409 = vst [vmem:[%s3074_s4 + $0x44] sm:$0xf] %v2098_v33  ;;  %v2100_v35 = vld [vmem:[%s3069_s14 + $0x1d0] sm:$0xf]  ;;  %v2101_v36 = vld [vmem:[%s3069_s14 + $0x1e8] sm:$0xf] }
  0x61   : > { %411 = vst [vmem:[%s3074_s4 + $0x48] sm:$0xf] %v2099_v34  ;;  %413 = vst [vmem:[%s3074_s4 + $0x4c] sm:$0xf] %v2100_v35  ;;  %v2102_v37 = vld [vmem:[%s3069_s14 + $0x200] sm:$0xf] }
  0x62   : > { %415 = vst [vmem:[%s3074_s4 + $0x50] sm:$0xf] %v2101_v36  ;;  %v2103_v38 = vld [vmem:[%s3069_s14 + $0x218] sm:$0xf]  ;;  %v2104_v39 = vld [vmem:[%s3069_s14 + $0x230] sm:$0xf] }
  0x63   : > { %417 = vst [vmem:[%s3074_s4 + $0x54] sm:$0xf] %v2102_v37  ;;  %419 = vst [vmem:[%s3074_s4 + $0x58] sm:$0xf] %v2103_v38  ;;  %v2105_v40 = vld [vmem:[%s3069_s14 + $0x248] sm:$0xf] }
  0x64   : > { %421 = vst [vmem:[%s3074_s4 + $0x5c] sm:$0xf] %v2104_v39  ;;  %v2106_v41 = vld [vmem:[%s3069_s14 + $0x260] sm:$0xf]  ;;  %v2107_v42 = vld [vmem:[%s3069_s14 + $0x278] sm:$0xf] }
  0x65   : > { %423 = vst [vmem:[%s3074_s4 + $0x60] sm:$0xf] %v2105_v40  ;;  %425 = vst [vmem:[%s3074_s4 + $0x64] sm:$0xf] %v2106_v41  ;;  %v2108_v43 = vld [vmem:[%s3069_s14 + $0x290] sm:$0xf] }
  0x66   : > { %427 = vst [vmem:[%s3074_s4 + $0x68] sm:$0xf] %v2107_v42  ;;  %v2109_v44 = vld [vmem:[%s3069_s14 + $0x2a8] sm:$0xf]  ;;  %v2110_v45 = vld [vmem:[%s3069_s14 + $0x2c0] sm:$0xf] }
  0x67   : > { %429 = vst [vmem:[%s3074_s4 + $0x6c] sm:$0xf] %v2108_v43  ;;  %431 = vst [vmem:[%s3074_s4 + $0x70] sm:$0xf] %v2109_v44  ;;  %v2111_v46 = vld [vmem:[%s3069_s14 + $0x2d8] sm:$0xf] }
  0x68   : > { %433 = vst [vmem:[%s3074_s4 + $0x74] sm:$0xf] %v2110_v45  ;;  %v2112_v47 = vld [vmem:[%s3069_s14 + $0x2f0] sm:$0xf]  ;;  %435 = vst [vmem:[%s3074_s4 + $0x78] sm:$0xf] %v2111_v46 }
  0x69   : > { %437 = vst [vmem:[%s3074_s4 + $0x7c] sm:$0xf] %v2112_v47 }
  0x6a PF: > { %525 = sbr.rel (!%p3002_p13) target bundleno = 137 (0x89), region = 102  ;;  %s527_s11 = sand.u32 (%p3002_p13), 1, %s2774_s22  }
  0x6b   : > { %s1930_s16 = smul.u32 (%p3002_p13), 192, %s2814_s7  ;;  %s2113_s17 = sshll.u32 (%p3002_p13), %s527_s11, 7 }
  0x6c   : > { %s3752_s15 = sld [smem:[#allocation21_spill]] (%p3002_p13)  ;;  %s3150_s27 = scalar_lea.vmem (%p3002_p13), [#allocation4], %s2113_s17 }
  0x6d   : > { %s1931_s2 = sadd.s32 (%p3002_p13), %s2810_s6, %s1930_s16 }
  0x6e   : > { %s2114_s13 = sshll.u32 (%p3002_p13), %s1931_s2, 2 }
  0x72   : > { %s3145_s10 = scalar_lea.vmem %s3752_s15, %s2114_s13 }
  0x73   : > { %v2115_v48 = vld [vmem:[%s3145_s10 + $0x10] sm:$0xf]  ;;  %v2116_v49 = vld [vmem:[%s3145_s10 + $0x28] sm:$0xf]  ;;  %v2117_v50 = vld [vmem:[%s3145_s10 + $0x40] sm:$0xf] }
  0x74   : > { %552 = vst [vmem:[%s3150_s27] sm:$0xf] %v2115_v48  ;;  %554 = vst [vmem:[%s3150_s27 + $0x4] sm:$0xf] %v2116_v49  ;;  %v2118_v51 = vld [vmem:[%s3145_s10 + $0x58] sm:$0xf] }
  0x75   : > { %556 = vst [vmem:[%s3150_s27 + $0x8] sm:$0xf] %v2117_v50  ;;  %v2119_v52 = vld [vmem:[%s3145_s10 + $0x70] sm:$0xf]  ;;  %v2120_v53 = vld [vmem:[%s3145_s10 + $0x88] sm:$0xf] }
  0x76   : > { %558 = vst [vmem:[%s3150_s27 + $0xc] sm:$0xf] %v2118_v51  ;;  %560 = vst [vmem:[%s3150_s27 + $0x10] sm:$0xf] %v2119_v52  ;;  %v2121_v54 = vld [vmem:[%s3145_s10 + $0xa0] sm:$0xf] }
  0x77   : > { %562 = vst [vmem:[%s3150_s27 + $0x14] sm:$0xf] %v2120_v53  ;;  %v2122_v55 = vld [vmem:[%s3145_s10 + $0xb8] sm:$0xf]  ;;  %v2123_v56 = vld [vmem:[%s3145_s10 + $0xd0] sm:$0xf] }
  0x78   : > { %564 = vst [vmem:[%s3150_s27 + $0x18] sm:$0xf] %v2121_v54  ;;  %566 = vst [vmem:[%s3150_s27 + $0x1c] sm:$0xf] %v2122_v55  ;;  %v2124_v57 = vld [vmem:[%s3145_s10 + $0xe8] sm:$0xf] }
  0x79   : > { %568 = vst [vmem:[%s3150_s27 + $0x20] sm:$0xf] %v2123_v56  ;;  %v2125_v58 = vld [vmem:[%s3145_s10 + $0x100] sm:$0xf]  ;;  %v2126_v59 = vld [vmem:[%s3145_s10 + $0x118] sm:$0xf] }
  0x7a   : > { %570 = vst [vmem:[%s3150_s27 + $0x24] sm:$0xf] %v2124_v57  ;;  %572 = vst [vmem:[%s3150_s27 + $0x28] sm:$0xf] %v2125_v58  ;;  %v2127_v60 = vld [vmem:[%s3145_s10 + $0x130] sm:$0xf] }
  0x7b   : > { %574 = vst [vmem:[%s3150_s27 + $0x2c] sm:$0xf] %v2126_v59  ;;  %v2128_v61 = vld [vmem:[%s3145_s10 + $0x148] sm:$0xf]  ;;  %v2129_v62 = vld [vmem:[%s3145_s10 + $0x160] sm:$0xf] }
  0x7c   : > { %576 = vst [vmem:[%s3150_s27 + $0x30] sm:$0xf] %v2127_v60  ;;  %578 = vst [vmem:[%s3150_s27 + $0x34] sm:$0xf] %v2128_v61  ;;  %v2130_v63 = vld [vmem:[%s3145_s10 + $0x178] sm:$0xf] }
  0x7d   : > { %580 = vst [vmem:[%s3150_s27 + $0x38] sm:$0xf] %v2129_v62  ;;  %v2131_v0 = vld [vmem:[%s3145_s10 + $0x190] sm:$0xf]  ;;  %v2132_v1 = vld [vmem:[%s3145_s10 + $0x1a8] sm:$0xf] }
  0x7e   : > { %582 = vst [vmem:[%s3150_s27 + $0x3c] sm:$0xf] %v2130_v63  ;;  %584 = vst [vmem:[%s3150_s27 + $0x40] sm:$0xf] %v2131_v0  ;;  %v2133_v2 = vld [vmem:[%s3145_s10 + $0x1c0] sm:$0xf] }
  0x7f   : > { %586 = vst [vmem:[%s3150_s27 + $0x44] sm:$0xf] %v2132_v1  ;;  %v2134_v3 = vld [vmem:[%s3145_s10 + $0x1d8] sm:$0xf]  ;;  %v2135_v4 = vld [vmem:[%s3145_s10 + $0x1f0] sm:$0xf] }
  0x80   : > { %588 = vst [vmem:[%s3150_s27 + $0x48] sm:$0xf] %v2133_v2  ;;  %590 = vst [vmem:[%s3150_s27 + $0x4c] sm:$0xf] %v2134_v3  ;;  %v2136_v5 = vld [vmem:[%s3145_s10 + $0x208] sm:$0xf] }
  0x81   : > { %592 = vst [vmem:[%s3150_s27 + $0x50] sm:$0xf] %v2135_v4  ;;  %v2137_v6 = vld [vmem:[%s3145_s10 + $0x220] sm:$0xf]  ;;  %v2138_v7 = vld [vmem:[%s3145_s10 + $0x238] sm:$0xf] }
  0x82   : > { %594 = vst [vmem:[%s3150_s27 + $0x54] sm:$0xf] %v2136_v5  ;;  %596 = vst [vmem:[%s3150_s27 + $0x58] sm:$0xf] %v2137_v6  ;;  %v2139_v8 = vld [vmem:[%s3145_s10 + $0x250] sm:$0xf] }
  0x83   : > { %598 = vst [vmem:[%s3150_s27 + $0x5c] sm:$0xf] %v2138_v7  ;;  %v2140_v9 = vld [vmem:[%s3145_s10 + $0x268] sm:$0xf]  ;;  %v2141_v10 = vld [vmem:[%s3145_s10 + $0x280] sm:$0xf] }
  0x84   : > { %600 = vst [vmem:[%s3150_s27 + $0x60] sm:$0xf] %v2139_v8  ;;  %602 = vst [vmem:[%s3150_s27 + $0x64] sm:$0xf] %v2140_v9  ;;  %v2142_v11 = vld [vmem:[%s3145_s10 + $0x298] sm:$0xf] }
  0x85   : > { %604 = vst [vmem:[%s3150_s27 + $0x68] sm:$0xf] %v2141_v10  ;;  %v2143_v12 = vld [vmem:[%s3145_s10 + $0x2b0] sm:$0xf]  ;;  %v2144_v13 = vld [vmem:[%s3145_s10 + $0x2c8] sm:$0xf] }
  0x86   : > { %606 = vst [vmem:[%s3150_s27 + $0x6c] sm:$0xf] %v2142_v11  ;;  %608 = vst [vmem:[%s3150_s27 + $0x70] sm:$0xf] %v2143_v12  ;;  %v2145_v14 = vld [vmem:[%s3145_s10 + $0x2e0] sm:$0xf] }
  0x87   : > { %610 = vst [vmem:[%s3150_s27 + $0x74] sm:$0xf] %v2144_v13  ;;  %v2146_v15 = vld [vmem:[%s3145_s10 + $0x2f8] sm:$0xf]  ;;  %612 = vst [vmem:[%s3150_s27 + $0x78] sm:$0xf] %v2145_v14 }
  0x88   : > { %614 = vst [vmem:[%s3150_s27 + $0x7c] sm:$0xf] %v2146_v15 }
  0x89 PF: > { %p2147_p4 = scmp.ge.s32.totalorder %s2818_s8, 1  ;;  %p715_p7 = scmp.lt.s32.totalorder %s2818_s8, 9 }
  0x8b   : > { %p716_p10 = pnand %p2147_p4, %p715_p7 }
  0x8c   : > { %s3753_s12 = sld [smem:[#allocation9_spill]] (!%p716_p10)  ;;  %s722_s16 = sand.u32 (!%p716_p10), 1, %s2786_s25  }
  0x8d   : > { %719 = sbr.rel (%p716_p10) target bundleno = 1032 (0x408), region = 147  ;;  %s3224_s17 = sshll.u32 (!%p716_p10), %s722_s16, 6 }
  0x8e   : > { %s3229_s2 = scalar_lea.vmem (!%p716_p10), [#allocation2], %s3224_s17  ;;  %s3754_s25 = sld [smem:[#allocation10_spill]] (!%p716_p10) }
  0x8f   : > { %s3755_s13 = sld [smem:[#allocation11_spill]] (!%p716_p10)  ;;  %s736_s16 = sand.u32 (!%p716_p10), 1, %s2770_s21  }
  0x90   : > { %s782_s21 = sand.u32 (!%p716_p10), 1, %s2762_s19  }
  0x92   : > { %s729_s14 = sand.u32 1, %s3753_s12   ;;  %v2542_v23 = vld [vmem:[%s3229_s2] sm:$0xff]   ;;  %v2543_v33 = vld [vmem:[%s3229_s2 + $0x8] sm:$0xff]   ;;  %v2544_v34 = vld [vmem:[%s3229_s2 + $0x10] sm:$0xff]  }
  0x93   : > { %s2149_s4 = sshll.u32 %s729_s14, 7  ;;  %2307 = vmatprep.mubr.bf16.mxu0 %v2542_v23  ;;  %v2545_v35 = vld [vmem:[%s3229_s2 + $0x18] sm:$0xff]   ;;  %v2546_v36 = vld [vmem:[%s3229_s2 + $0x20] sm:$0xff]   ;;  %v2547_v37 = vld [vmem:[%s3229_s2 + $0x28] sm:$0xff]  }
  0x94   : > { %s3216_s11 = scalar_lea.vmem [#allocation3], %s2149_s4  ;;  %v2548_v38 = vld [vmem:[%s3229_s2 + $0x30] sm:$0xff]   ;;  %v2549_v39 = vld [vmem:[%s3229_s2 + $0x38] sm:$0xff]   ;;  %s2153_s3 = sshll.u32 %s3754_s25, 4 }
  0x95   : > { %v2526_v16 = vld [vmem:[%s3216_s11 + $0x78] sm:$0xff]   ;;  %v2528_v18 = vld [vmem:[%s3216_s11 + $0x70] sm:$0xff]   ;;  %v2530_v20 = vld [vmem:[%s3216_s11 + $0x68] sm:$0xff]   ;;  %p789_p11 = scmp.lt.s32.totalorder %s3755_s13, 1  ;;  %p791_p12 = scmp.lt.s32.totalorder %s2153_s3, 31 }
  0x96   : > { %v2527_v17 = vld [vmem:[%s3216_s11 + $0x38] sm:$0xff]   ;;  %2291 = vmatprep.subr.bf16.mxu0 %v2526_v16  ;;  %v2529_v19 = vld [vmem:[%s3216_s11 + $0x30] sm:$0xff]   ;;  %v2531_v21 = vld [vmem:[%s3216_s11 + $0x28] sm:$0xff]   ;;  %s3756_s4 = sld [smem:[#allocation22_spill]]  ;;  %s2150_s2 = sshll.u32 %s736_s16, 7 }
  0x97   : > { %2292 = vmatpush3.bf16.xpose.msra.mxu0 %v2527_v17  ;;  %v2532_v22 = vld [vmem:[%s3216_s11 + $0x60] sm:$0xff]   ;;  %v2534_v25 = vld [vmem:[%s3216_s11 + $0x58] sm:$0xff]   ;;  %v2536_v27 = vld [vmem:[%s3216_s11 + $0x50] sm:$0xff]   ;;  %s3800_s13 = smov (!%p789_p11, %s3755_s13), 1  ;;  %s3802_s3 = smov (!%p791_p12, %s2153_s3), 31 }
  0x98   : > { %2293 = vmatprep.subr.bf16.mxu0 %v2528_v18  ;;  %v2533_v24 = vld [vmem:[%s3216_s11 + $0x20] sm:$0xff]   ;;  %v2535_v26 = vld [vmem:[%s3216_s11 + $0x18] sm:$0xff]   ;;  %v2537_v28 = vld [vmem:[%s3216_s11 + $0x10] sm:$0xff]   ;;  %s2154_s9 = sshll.u32 %s3802_s3, 1  ;;  %s2155_s15 = sshll.u32 %s3800_s13, 6 }
  0x99   : > { %v2538_v29 = vld [vmem:[%s3216_s11 + $0x48] sm:$0xff]   ;;  %v2540_v31 = vld [vmem:[%s3216_s11 + $0x40] sm:$0xff]   ;;  %s795_s10 = sadd.s32 %s2155_s15, %s2154_s9  ;;  %s3369_s25 = scalar_lea.vmem [#allocation4], %s2150_s2 }
  0x9a   : > { %v2539_v30 = vld [vmem:[%s3216_s11 + $0x8] sm:$0xff]   ;;  %v2541_v32 = vld [vmem:[%s3216_s11] sm:$0xff]   ;;  %s2156_s27 = sshll.u32 %s795_s10, 2  ;;  %s2152_s13 = sshll.u32 %s782_s21, 8 }
  0x9b   : > { %s3520_s3 = scalar_lea.vmem [#allocation6], %s2152_s13  ;;  %s3585_s9 = scalar_lea.vmem [#allocation5], %s3224_s17 }
  0x9c   : > { %s3254_s11 = scalar_lea.vmem %s3756_s4, %s2156_s27  ;;  %s3597_s17 = scalar_lea.sflag [#allocation7], %s782_s21 }
  0x9d   : > { %v882_v40 = vld [vmem:[%s3254_s11] sm:$0xff]  ;;  %v883_v44 = vld [vmem:[%s3254_s11 + $0x8] sm:$0xff]  ;;  %v884_v51 = vld [vmem:[%s3254_s11 + $0x10] sm:$0xff]  ;;  %s3757_s15 = sld [smem:[#allocation10_spill]] (%p3009_p0) }
  0x9e   : > { %v898_v41 = vunpack.c.l.bf16 %v882_v40  ;;  %v899_v42 = vunpack.c.h.bf16 %v882_v40  ;;  %v900_v48 = vunpack.c.l.bf16 %v883_v44  ;;  %v901_v49 = vunpack.c.h.bf16 %v883_v44  ;;  %v885_v59 = vld [vmem:[%s3254_s11 + $0x18] sm:$0xff]  ;;  %v886_v3 = vld [vmem:[%s3254_s11 + $0x20] sm:$0xff]  ;;  %v887_v11 = vld [vmem:[%s3254_s11 + $0x28] sm:$0xff]  ;;  %s3758_s10 = sld [smem:[#allocation12_spill]] (%p3009_p0) }
  0x9f   : > { %2294 = vmatpush3.bf16.xpose.msra.mxu0 %v2529_v19  ;;  %v902_v56 = vunpack.c.l.bf16 %v884_v51  ;;  %v903_v57 = vunpack.c.h.bf16 %v884_v51  ;;  %v904_v0 = vunpack.c.l.bf16 %v885_v59  ;;  %v905_v1 = vunpack.c.h.bf16 %v885_v59  ;;  %v888_v19 = vld [vmem:[%s3254_s11 + $0x30] sm:$0xff]  ;;  %s3759_s27 = sld [smem:[#allocation11_spill]] (%p3009_p0) }
  0xa0   : > { %2295 = vmatprep.subr.bf16.mxu0 %v2530_v20  ;;  %v906_v8 = vunpack.c.l.bf16 %v886_v3  ;;  %v907_v9 = vunpack.c.h.bf16 %v886_v3  ;;  %v908_v16 = vunpack.c.l.bf16 %v887_v11  ;;  %v909_v17 = vunpack.c.h.bf16 %v887_v11  ;;  %v894_v11 = vld [vmem:[%s3254_s11 + $0x60] sm:$0xff] }
  0xa3   : > { %s2242_s12 = sshll.u32 (%p3009_p0), %s3757_s15, 5 }
  0xa4   : > { %s2217_s14 = sshll.u32 (%p3009_p0), %s3758_s10, 6 }
  0xa5   : > { %s1762_s28 = sadd.s32 (%p3009_p0), %s3759_s27, %s2242_s12 }
  0xa6   : > { %s1764_s4 = sadd.s32 (%p3009_p0), %s2217_s14, %s1762_s28 }
  0xa7   : > { %2296 = vmatpush3.bf16.xpose.msra.mxu0 %v2531_v21 }
  0xa8   : > { %2297 = vmatprep.subr.bf16.mxu0 %v2532_v22 }
  0xaf   : > { %2298 = vmatpush3.bf16.xpose.msra.mxu0 %v2533_v24  ;;  %v910_v24 = vunpack.c.l.bf16 %v888_v19 }
  0xb0   : > { %2299 = vmatprep.subr.bf16.mxu0 %v2534_v25  ;;  %v911_v25 = vunpack.c.h.bf16 %v888_v19  ;;  %v923_v19 = vunpack.c.h.bf16 %v894_v11 }
  0xb7   : > { %2300 = vmatpush3.bf16.xpose.msra.mxu0 %v2535_v26 }
  0xb8   : > { %2301 = vmatprep.subr.bf16.mxu0 %v2536_v27  ;;  %v889_v27 = vld [vmem:[%s3254_s11 + $0x38] sm:$0xff] }
  0xbf   : > { %2302 = vmatpush3.bf16.xpose.msra.mxu0 %v2537_v28 }
  0xc0   : > { %2303 = vmatprep.subr.bf16.mxu0 %v2538_v29 }
  0xc7   : > { %2304 = vmatpush3.bf16.xpose.msra.mxu0 %v2539_v30 }
  0xc8   : > { %2305 = vmatprep.subr.bf16.mxu0 %v2540_v31 }
  0xcf   : > { %2306 = vmatpush3.bf16.xpose.msra.mxu0 %v2541_v32  ;;  %v912_v32 = vunpack.c.l.bf16 %v889_v27 }
  0xd6   : > { %2308 = vmatmul.mubr.bf16.vlgmr.msra.gmra.mxu0 %v2542_v23 }
  0xd7   : > { %2309 = vmatprep.mubr.bf16.mxu0 %v2543_v33 }
  0xde   : > { %2310 = vmatmul.mubr.bf16.gmra.mxu0 %v2543_v33  ;;  %v913_v33 = vunpack.c.h.bf16 %v889_v27 }
  0xdf   : > { %2311 = vmatprep.mubr.bf16.mxu0 %v2544_v34 }
  0xe6   : > { %2312 = vmatmul.mubr.bf16.gmra.mxu0 %v2544_v34 }
  0xe7   : > { %2313 = vmatprep.mubr.bf16.mxu0 %v2545_v35 }
  0xee   : > { %2314 = vmatmul.mubr.bf16.gmra.mxu0 %v2545_v35  ;;  %v890_v35 = vld [vmem:[%s3254_s11 + $0x40] sm:$0xff] }
  0xef   : > { %2315 = vmatprep.mubr.bf16.mxu0 %v2546_v36  ;;  %v914_v40 = vunpack.c.l.bf16 %v890_v35 }
  0xf6   : > { %2316 = vmatmul.mubr.bf16.gmra.mxu0 %v2546_v36 }
  0xf7   : > { %2317 = vmatprep.mubr.bf16.mxu0 %v2547_v37 }
  0xfe   : > { %2318 = vmatmul.mubr.bf16.gmra.mxu0 %v2547_v37 }
  0xff   : > { %2319 = vmatprep.mubr.bf16.mxu0 %v2548_v38 }
 0x106   : > { %2320 = vmatmul.mubr.bf16.gmra.mxu0 %v2548_v38 }
 0x107   : > { %2321 = vmatprep.mubr.bf16.mxu0 %v2549_v39 }
 0x10e   : > { %2322 = vmatmul.mubr.bf16.gmra.mxu0 %v2549_v39 }
 0x196   : > { %v1108_v43 = vpop.f32.mrf.mxu0 }
 0x197   : > { %v3258_v46 = vadd.f32 %v1108_v43, %v898_v41  ;;  %v915_v41 = vunpack.c.h.bf16 %v890_v35  ;;  %v891_v43 = vld [vmem:[%s3254_s11 + $0x48] sm:$0xff] }
 0x198   : > { %v1110_v45 = vpop.f32.mrf.mxu0  ;;  %v917_v51 = vunpack.c.h.bf16 %v891_v43 }
 0x199   : > { %v3260_v47 = vadd.f32 %v1110_v45, %v899_v42 }
 0x19a   : > { %v1112_v50 = vpop.f32.mrf.mxu0 }
 0x19b   : > { %v1187_v52 = vmax.f32 %v3258_v46, %v3260_v47  ;;  %v3265_v54 = vadd.f32 %v1112_v50, %v900_v48  ;;  %v916_v50 = vunpack.c.l.bf16 %v891_v43  ;;  %v897_v43 = vld [vmem:[%s3254_s11 + $0x78] sm:$0xff] }
 0x19c   : > { %v1114_v53 = vpop.f32.mrf.mxu0 }
 0x19d   : > { %v3267_v55 = vadd.f32 %v1114_v53, %v901_v49  ;;  %1188 = vmax.xlane.f32.xlu0 %v1187_v52  ;;  %v892_v53 = vld [vmem:[%s3254_s11 + $0x50] sm:$0xff] }
 0x19e   : > { %v1118_v58 = vpop.f32.mrf.mxu0 }
 0x19f   : > { %v1190_v60 = vmax.f32 %v3265_v54, %v3267_v55  ;;  %v3272_v62 = vadd.f32 %v1118_v58, %v902_v56 }
 0x1a0   : > { %v1120_v61 = vpop.f32.mrf.mxu0 }
 0x1a1   : > { %v3274_v63 = vadd.f32 %v1120_v61, %v903_v57  ;;  %1191 = vmax.xlane.f32.xlu0 %v1190_v60  ;;  %v918_v60 = vunpack.c.l.bf16 %v892_v53  ;;  %v919_v61 = vunpack.c.h.bf16 %v892_v53  ;;  %v929_v53 = vunpack.c.h.bf16 %v897_v43 }
 0x1a2   : > { %v1122_v2 = vpop.f32.mrf.mxu0 }
 0x1a3   : > { %v1193_v4 = vmax.f32 %v3272_v62, %v3274_v63  ;;  %v3279_v6 = vadd.f32 %v1122_v2, %v904_v0 }
 0x1a4   : > { %v1124_v5 = vpop.f32.mrf.mxu0 }
 0x1a5   : > { %v3281_v7 = vadd.f32 %v1124_v5, %v905_v1  ;;  %1194 = vmax.xlane.f32.xlu1 %v1193_v4  ;;  %v893_v1 = vld [vmem:[%s3254_s11 + $0x58] sm:$0xff] }
 0x1a6   : > { %v1128_v10 = vpop.f32.mrf.mxu0 }
 0x1a7   : > { %v1196_v12 = vmax.f32 %v3279_v6, %v3281_v7  ;;  %v3286_v14 = vadd.f32 %v1128_v10, %v906_v8  ;;  %v920_v8 = vunpack.c.l.bf16 %v893_v1 }
 0x1a8   : > { %v1130_v13 = vpop.f32.mrf.mxu0 }
 0x1a9   : > { %v3288_v15 = vadd.f32 %v1130_v13, %v907_v9  ;;  %1197 = vmax.xlane.f32.xlu1 %v1196_v12  ;;  %v921_v9 = vunpack.c.h.bf16 %v893_v1 }
 0x1aa   : > { %v1132_v18 = vpop.f32.mrf.mxu0 }
 0x1ab   : > { %v1199_v20 = vmax.f32 %v3286_v14, %v3288_v15  ;;  %v3293_v22 = vadd.f32 %v1132_v18, %v908_v16  ;;  %v922_v18 = vunpack.c.l.bf16 %v894_v11 }
 0x1ac   : > { %v1134_v21 = vpop.f32.mrf.mxu0 }
 0x1ad   : > { %v3295_v23 = vadd.f32 %v1134_v21, %v909_v17  ;;  %1200 = vmax.xlane.f32.xlu0 %v1199_v20  ;;  %v895_v21 = vld [vmem:[%s3254_s11 + $0x68] sm:$0xff] }
 0x1ae   : > { %v1138_v26 = vpop.f32.mrf.mxu0 }
 0x1af   : > { %v1202_v28 = vmax.f32 %v3293_v22, %v3295_v23  ;;  %v3300_v30 = vadd.f32 %v1138_v26, %v910_v24 }
 0x1b0   : > { %v1140_v29 = vpop.f32.mrf.mxu0 }
 0x1b1   : > { %v3302_v31 = vadd.f32 %v1140_v29, %v911_v25  ;;  %1203 = vmax.xlane.f32.xlu1 %v1202_v28  ;;  %v924_v28 = vunpack.c.l.bf16 %v895_v21  ;;  %v925_v29 = vunpack.c.h.bf16 %v895_v21 }
 0x1b2   : > { %v1142_v34 = vpop.f32.mrf.mxu0 }
 0x1b3   : > { %v1205_v36 = vmax.f32 %v3300_v30, %v3302_v31  ;;  %v3307_v38 = vadd.f32 %v1142_v34, %v912_v32 }
 0x1b4   : > { %v1144_v37 = vpop.f32.mrf.mxu0 }
 0x1b5   : > { %v3309_v39 = vadd.f32 %v1144_v37, %v913_v33  ;;  %1206 = vmax.xlane.f32.xlu0 %v1205_v36  ;;  %v896_v33 = vld [vmem:[%s3254_s11 + $0x70] sm:$0xff]  ;;  %s2218_s11 = sshll.u32 (%p3009_p0), %s1764_s4, 2 }
 0x1b6   : > { %v1148_v42 = vpop.f32.mrf.mxu0 }
 0x1b7   : > { %v1208_v44 = vmax.f32 %v3307_v38, %v3309_v39  ;;  %v3314_v48 = vadd.f32 %v1148_v42, %v914_v40  ;;  %v926_v40 = vunpack.c.l.bf16 %v896_v33 }
 0x1b8   : > { %v1150_v45 = vpop.f32.mrf.mxu0 }
 0x1b9   : > { %v3316_v49 = vadd.f32 %v1150_v45, %v915_v41  ;;  %1209 = vmax.xlane.f32.xlu1 %v1208_v44  ;;  %v927_v41 = vunpack.c.h.bf16 %v896_v33 }
 0x1ba   : > { %v1152_v52 = vpop.f32.mrf.mxu0 }
 0x1bb   : > { %v1211_v56 = vmax.f32 %v3314_v48, %v3316_v49  ;;  %v3321_v58 = vadd.f32 %v1152_v52, %v916_v50  ;;  %v928_v52 = vunpack.c.l.bf16 %v897_v43 }
 0x1bc   : > { %v1154_v57 = vpop.f32.mrf.mxu0 }
 0x1bd   : > { %v3323_v59 = vadd.f32 %v1154_v57, %v917_v51  ;;  %1212 = vmax.xlane.f32.xlu0 %v1211_v56 }
 0x1be   : > { %v1158_v0 = vpop.f32.mrf.mxu0 }
 0x1bf   : > { %v1214_v2 = vmax.f32 %v3321_v58, %v3323_v59  ;;  %v3328_v4 = vadd.f32 %v1158_v0, %v918_v60 }
 0x1c0   : > { %v1160_v3 = vpop.f32.mrf.mxu0 }
 0x1c1   : > { %v3330_v5 = vadd.f32 %v1160_v3, %v919_v61  ;;  %1215 = vmax.xlane.f32.xlu1 %v1214_v2  ;;  %v2550_v2 = vld [vmem:[%s3369_s25 + $0x78] sm:$0xff]  }
 0x1c2   : > { %v1162_v10 = vpop.f32.mrf.mxu0  ;;  %v2551_v3 = vld [vmem:[%s3369_s25 + $0x38] sm:$0xff]   ;;  %2323 = vmatprep.subr.bf16.mxu1 %v2550_v2 }
 0x1c3   : > { %v1217_v12 = vmax.f32 %v3328_v4, %v3330_v5  ;;  %v3335_v16 = vadd.f32 %v1162_v10, %v920_v8  ;;  %v2552_v8 = vld [vmem:[%s3369_s25 + $0x70] sm:$0xff]   ;;  %2324 = vmatpush3.bf16.msra.mxu1 %v2551_v3  ;;  %v2554_v10 = vld [vmem:[%s3369_s25 + $0x68] sm:$0xff]  }
 0x1c4   : > { %v1164_v13 = vpop.f32.mrf.mxu0  ;;  %2325 = vmatprep.subr.bf16.mxu1 %v2552_v8 }
 0x1c5   : > { %v3337_v17 = vadd.f32 %v1164_v13, %v921_v9  ;;  %1218 = vmax.xlane.f32.xlu0 %v1217_v12  ;;  %v2553_v9 = vld [vmem:[%s3369_s25 + $0x30] sm:$0xff]  }
 0x1c6   : > { %v1168_v20 = vpop.f32.mrf.mxu0 }
 0x1c7   : > { %v1220_v24 = vmax.f32 %v3335_v16, %v3337_v17  ;;  %v3342_v26 = vadd.f32 %v1168_v20, %v922_v18  ;;  %2326 = vmatpush3.bf16.msra.mxu1 %v2553_v9 }
 0x1c8   : > { %v1170_v25 = vpop.f32.mrf.mxu0  ;;  %2327 = vmatprep.subr.bf16.mxu1 %v2554_v10 }
 0x1c9   : > { %v3344_v27 = vadd.f32 %v1170_v25, %v923_v19  ;;  %1221 = vmax.xlane.f32.xlu1 %v1220_v24 }
 0x1ca   : > { %v1172_v32 = vpop.f32.mrf.mxu0 }
 0x1cb   : > { %v1223_v34 = vmax.f32 %v3342_v26, %v3344_v27  ;;  %v3349_v36 = vadd.f32 %v1172_v32, %v924_v28 }
 0x1cc   : > { %v1174_v35 = vpop.f32.mrf.mxu0 }
 0x1cd   : > { %v3351_v37 = vadd.f32 %v1174_v35, %v925_v29  ;;  %1224 = vmax.xlane.f32.xlu0 %v1223_v34 }
 0x1ce   : > { %v1178_v42 = vpop.f32.mrf.mxu0 }
 0x1cf   : > { %v1226_v44 = vmax.f32 %v3349_v36, %v3351_v37  ;;  %v3356_v50 = vadd.f32 %v1178_v42, %v926_v40 }
 0x1d0   : > { %v1180_v45 = vpop.f32.mrf.mxu0 }
 0x1d1   : > { %v3358_v51 = vadd.f32 %v1180_v45, %v927_v41  ;;  %1227 = vmax.xlane.f32.xlu1 %v1226_v44 }
 0x1d2   : > { %v1182_v56 = vpop.f32.mrf.mxu0 }
 0x1d3   : > { %v1229_v57 = vmax.f32 %v3356_v50, %v3358_v51  ;;  %v3362_v61 = vadd.f32 %v1182_v56, %v928_v52 }
 0x1d4   : > { %v1184_v60 = vpop.f32.mrf.mxu0 }
 0x1d5   : > { %v3364_v0 = vadd.f32 %v1184_v60, %v929_v53  ;;  %1230 = vmax.xlane.f32.xlu0 %v1229_v57 }
 0x1d7   : > { %v1232_v1 = vmax.f32 %v3362_v61, %v3364_v0 }
 0x1d9   : > { %1233 = vmax.xlane.f32.xlu1 %v1232_v1 }
 0x226   : > { %v1189_v11 = vpop.xlane.xlu0 %1188 }
 0x227   : > { %v1235_v12 = vsub.f32 %v3258_v46, %v1189_v11  ;;  %v1236_v13 = vsub.f32 %v3260_v47, %v1189_v11 }
 0x229   : > { %v1267_v18 = vmul.f32 1.442695, %v1235_v12  ;;  %v1269_v19 = vmul.f32 1.442695, %v1236_v13 }
 0x22a   : > { %v1192_v20 = vpop.xlane.xlu0 %1191 }
 0x22b   : > { %2566 = vpow2.f32 %v1267_v18  ;;  %v1237_v21 = vsub.f32 %v3265_v54, %v1192_v20  ;;  %v1238_v24 = vsub.f32 %v3267_v55, %v1192_v20 }
 0x22c   : > { %2568 = vpow2.f32 %v1269_v19 }
 0x22d   : > { %v1271_v25 = vmul.f32 1.442695, %v1237_v21  ;;  %v1273_v28 = vmul.f32 1.442695, %v1238_v24 }
 0x22e   : > { %v1195_v29 = vpop.xlane.xlu1 %1194 }
 0x22f   : > { %2570 = vpow2.f32 %v1271_v25  ;;  %v1239_v32 = vsub.f32 %v3272_v62, %v1195_v29  ;;  %v1240_v33 = vsub.f32 %v3274_v63, %v1195_v29  ;;  %v2556_v25 = vld [vmem:[%s3369_s25 + $0x60] sm:$0xff]  }
 0x230   : > { %2572 = vpow2.f32 %v1273_v28  ;;  %v2557_v29 = vld [vmem:[%s3369_s25 + $0x20] sm:$0xff]  }
 0x231   : > { %v1275_v46 = vmul.f32 1.442695, %v1239_v32  ;;  %v1277_v47 = vmul.f32 1.442695, %v1240_v33 }
 0x232   : > { %v1198_v34 = vpop.xlane.xlu1 %1197 }
 0x233   : > { %2574 = vpow2.f32 %v1275_v46  ;;  %v1241_v35 = vsub.f32 %v3279_v6, %v1198_v34  ;;  %v1242_v54 = vsub.f32 %v3281_v7, %v1198_v34 }
 0x234   : > { %2576 = vpow2.f32 %v1277_v47 }
 0x235   : > { %v1279_v55 = vmul.f32 1.442695, %v1241_v35  ;;  %v1281_v40 = vmul.f32 1.442695, %v1242_v54 }
 0x236   : > { %v1201_v41 = vpop.xlane.xlu0 %1200 }
 0x237   : > { %2578 = vpow2.f32 %v1279_v55  ;;  %v1243_v42 = vsub.f32 %v3286_v14, %v1201_v41  ;;  %v1244_v62 = vsub.f32 %v3288_v15, %v1201_v41  ;;  %v2559_v55 = vld [vmem:[%s3369_s25 + $0x18] sm:$0xff]  }
 0x238   : > { %v3386_v43 = vpop.eup %2566  ;;  %2580 = vpow2.f32 %v1281_v40 }
 0x239   : > { %v3388_v63 = vpop.eup %2568  ;;  %v1283_v44 = vmul.f32 1.442695, %v1243_v42  ;;  %v1285_v45 = vmul.f32 1.442695, %v1244_v62 }
 0x23a   : > { %v1204_v52 = vpop.xlane.xlu1 %1203  ;;  %v1331_v6 = vadd.f32 %v3388_v63, %v3386_v43 }
 0x23b   : > { %2582 = vpow2.f32 %v1283_v44  ;;  %v1245_v7 = vsub.f32 %v3293_v22, %v1204_v52  ;;  %v1246_v53 = vsub.f32 %v3295_v23, %v1204_v52 }
 0x23c   : > { %v3394_v56 = vpop.eup %2570  ;;  %2584 = vpow2.f32 %v1285_v45  ;;  %1332 = vadd.xlane.f32.xlu0 %v1331_v6  ;;  %v2561_v6 = vld [vmem:[%s3369_s25 + $0x10] sm:$0xff]  }
 0x23d   : > { %v3396_v14 = vpop.eup %2572  ;;  %v1287_v15 = vmul.f32 1.442695, %v1245_v7  ;;  %v1289_v57 = vmul.f32 1.442695, %v1246_v53 }
 0x23e   : > { %v1207_v60 = vpop.xlane.xlu0 %1206  ;;  %v1334_v1 = vadd.f32 %v3396_v14, %v3394_v56 }
 0x23f   : > { %2586 = vpow2.f32 %v1287_v15  ;;  %v1247_v2 = vsub.f32 %v3300_v30, %v1207_v60  ;;  %v1248_v22 = vsub.f32 %v3302_v31, %v1207_v60  ;;  %v2555_v31 = vld [vmem:[%s3369_s25 + $0x28] sm:$0xff]  }
 0x240   : > { %v3402_v3 = vpop.eup %2574  ;;  %2588 = vpow2.f32 %v1289_v57  ;;  %1335 = vadd.xlane.f32.xlu1 %v1334_v1  ;;  %2328 = vmatpush3.bf16.msra.mxu1 %v2555_v31 }
 0x241   : > { %v3404_v23 = vpop.eup %2576  ;;  %v1291_v8 = vmul.f32 1.442695, %v1247_v2  ;;  %v1293_v9 = vmul.f32 1.442695, %v1248_v22  ;;  %2329 = vmatprep.subr.bf16.mxu1 %v2556_v25  ;;  %v2563_v22 = vld [vmem:[%s3369_s25 + $0x8] sm:$0xff]  }
 0x242   : > { %v1210_v10 = vpop.xlane.xlu1 %1209  ;;  %v1337_v11 = vadd.f32 %v3404_v23, %v3402_v3 }
 0x243   : > { %2590 = vpow2.f32 %v1291_v8  ;;  %v1249_v12 = vsub.f32 %v3307_v38, %v1210_v10  ;;  %v1250_v30 = vsub.f32 %v3309_v39, %v1210_v10 }
 0x244   : > { %v3410_v13 = vpop.eup %2578  ;;  %2592 = vpow2.f32 %v1293_v9  ;;  %1338 = vadd.xlane.f32.xlu0 %v1337_v11  ;;  %2330 = vmatpush3.bf16.msra.mxu1 %v2557_v29 }
 0x245   : > { %v3413_v18 = vpop.eup %2580  ;;  %v1295_v19 = vmul.f32 1.442695, %v1249_v12  ;;  %v1297_v20 = vmul.f32 1.442695, %v1250_v30  ;;  %v2564_v30 = vld [vmem:[%s3369_s25 + $0x40] sm:$0xff]  }
 0x246   : > { %v1213_v21 = vpop.xlane.xlu0 %1212  ;;  %v1340_v24 = vadd.f32 %v3413_v18, %v3410_v13 }
 0x247   : > { %2594 = vpow2.f32 %v1295_v19  ;;  %v1251_v38 = vsub.f32 %v3314_v48, %v1213_v21  ;;  %v1252_v39 = vsub.f32 %v3316_v49, %v1213_v21  ;;  %v2558_v48 = vld [vmem:[%s3369_s25 + $0x58] sm:$0xff]   ;;  %v2565_v19 = vld [vmem:[%s3369_s25] sm:$0xff]  }
 0x248   : > { %v3420_v28 = vpop.eup %2582  ;;  %2596 = vpow2.f32 %v1297_v20  ;;  %1341 = vadd.xlane.f32.xlu1 %v1340_v24  ;;  %2331 = vmatprep.subr.bf16.mxu1 %v2558_v48 }
 0x249   : > { %v3423_v32 = vpop.eup %2584  ;;  %v1299_v33 = vmul.f32 1.442695, %v1251_v38  ;;  %v1301_v46 = vmul.f32 1.442695, %v1252_v39  ;;  %2332 = vmatpush3.bf16.msra.mxu1 %v2559_v55 }
 0x24a   : > { %v1216_v47 = vpop.xlane.xlu1 %1215  ;;  %v1343_v34 = vadd.f32 %v3423_v32, %v3420_v28 }
 0x24b   : > { %2598 = vpow2.f32 %v1299_v33  ;;  %v1253_v49 = vsub.f32 %v3321_v58, %v1216_v47  ;;  %v1254_v35 = vsub.f32 %v3323_v59, %v1216_v47  ;;  %v2560_v58 = vld [vmem:[%s3369_s25 + $0x50] sm:$0xff]  }
 0x24c   : > { %v3430_v54 = vpop.eup %2586  ;;  %2600 = vpow2.f32 %v1301_v46  ;;  %1344 = vadd.xlane.f32.xlu0 %v1343_v34  ;;  %2333 = vmatprep.subr.bf16.mxu1 %v2560_v58 }
 0x24d   : > { %v3433_v40 = vpop.eup %2588  ;;  %v1303_v41 = vmul.f32 1.442695, %v1253_v49  ;;  %v1305_v42 = vmul.f32 1.442695, %v1254_v35  ;;  %2334 = vmatpush3.bf16.msra.mxu1 %v2561_v6 }
 0x24e   : > { %v1219_v62 = vpop.xlane.xlu0 %1218  ;;  %v1346_v44 = vadd.f32 %v3433_v40, %v3430_v54 }
 0x24f   : > { %2602 = vpow2.f32 %v1303_v41  ;;  %v1255_v59 = vsub.f32 %v3328_v4, %v1219_v62  ;;  %v1256_v45 = vsub.f32 %v3330_v5, %v1219_v62  ;;  %v2562_v4 = vld [vmem:[%s3369_s25 + $0x48] sm:$0xff]   ;;  %s3760_s25 = sld [smem:[#allocation23_spill]] (%p3009_p0) }
 0x250   : > { %v3440_v52 = vpop.eup %2590  ;;  %2604 = vpow2.f32 %v1305_v42  ;;  %1347 = vadd.xlane.f32.xlu1 %v1346_v44  ;;  %2335 = vmatprep.subr.bf16.mxu1 %v2562_v4 }
 0x251   : > { %v3443_v7 = vpop.eup %2592  ;;  %v1307_v53 = vmul.f32 1.442695, %v1255_v59  ;;  %v1309_v15 = vmul.f32 1.442695, %v1256_v45  ;;  %2336 = vmatpush3.bf16.msra.mxu1 %v2563_v22 }
 0x252   : > { %v1222_v57 = vpop.xlane.xlu1 %1221  ;;  %v1349_v60 = vadd.f32 %v3443_v7, %v3440_v52  ;;  %2337 = vmatprep.subr.bf16.mxu1 %v2564_v30 }
 0x253   : > { %2606 = vpow2.f32 %v1307_v53  ;;  %v1257_v5 = vsub.f32 %v3335_v16, %v1222_v57  ;;  %v1258_v1 = vsub.f32 %v3337_v17, %v1222_v57 }
 0x254   : > { %v3450_v2 = vpop.eup %2594  ;;  %2608 = vpow2.f32 %v1309_v15  ;;  %1350 = vadd.xlane.f32.xlu0 %v1349_v60 }
 0x255   : > { %v3453_v8 = vpop.eup %2596  ;;  %v1311_v9 = vmul.f32 1.442695, %v1257_v5  ;;  %v1313_v10 = vmul.f32 1.442695, %v1258_v1  ;;  %2338 = vmatpush3.bf16.msra.mxu1 %v2565_v19  ;;  %s1766_s21 = scalar_lea.vmem (%p3009_p0), %s3760_s25, %s2218_s11 }
 0x256   : > { %v1225_v11 = vpop.xlane.xlu0 %1224  ;;  %v1352_v12 = vadd.f32 %v3453_v8, %v3450_v2 }
 0x257   : > { %2610 = vpow2.f32 %v1311_v9  ;;  %v1259_v16 = vsub.f32 %v3342_v26, %v1225_v11  ;;  %v1260_v17 = vsub.f32 %v3344_v27, %v1225_v11 }
 0x258   : > { %v3460_v31 = vpop.eup %2598  ;;  %2612 = vpow2.f32 %v1313_v10  ;;  %1353 = vadd.xlane.f32.xlu1 %v1352_v12 }
 0x259   : > { %v3463_v20 = vpop.eup %2600  ;;  %v1315_v21 = vmul.f32 1.442695, %v1259_v16  ;;  %v1317_v24 = vmul.f32 1.442695, %v1260_v17 }
 0x25a   : > { %v1228_v25 = vpop.xlane.xlu1 %1227  ;;  %v1355_v38 = vadd.f32 %v3463_v20, %v3460_v31 }
 0x25b   : > { %2614 = vpow2.f32 %v1315_v21  ;;  %v1261_v26 = vsub.f32 %v3349_v36, %v1228_v25  ;;  %v1262_v27 = vsub.f32 %v3351_v37, %v1228_v25 }
 0x25c   : > { %v3470_v39 = vpop.eup %2602  ;;  %2616 = vpow2.f32 %v1317_v24  ;;  %1356 = vadd.xlane.f32.xlu0 %v1355_v38 }
 0x25d   : > { %v3472_v29 = vpop.eup %2604  ;;  %v1319_v33 = vmul.f32 1.442695, %v1261_v26  ;;  %v1321_v46 = vmul.f32 1.442695, %v1262_v27 }
 0x25e   : > { %v1231_v47 = vpop.xlane.xlu0 %1230  ;;  %v1358_v34 = vadd.f32 %v3472_v29, %v3470_v39 }
 0x25f   : > { %2618 = vpow2.f32 %v1319_v33  ;;  %v1263_v48 = vsub.f32 %v3356_v50, %v1231_v47  ;;  %v1264_v36 = vsub.f32 %v3358_v51, %v1231_v47 }
 0x260   : > { %v3478_v49 = vpop.eup %2606  ;;  %2620 = vpow2.f32 %v1321_v46  ;;  %1359 = vadd.xlane.f32.xlu1 %v1358_v34 }
 0x261   : > { %v3480_v37 = vpop.eup %2608  ;;  %v1323_v35 = vmul.f32 1.442695, %v1263_v48  ;;  %v1325_v55 = vmul.f32 1.442695, %v1264_v36 }
 0x262   : > { %v1234_v41 = vpop.xlane.xlu1 %1233  ;;  %v1361_v42 = vadd.f32 %v3480_v37, %v3478_v49 }
 0x263   : > { %2622 = vpow2.f32 %v1323_v35  ;;  %v1265_v62 = vsub.f32 %v3362_v61, %v1234_v41  ;;  %v1266_v44 = vsub.f32 %v3364_v0, %v1234_v41 }
 0x264   : > { %v3486_v50 = vpop.eup %2610  ;;  %2624 = vpow2.f32 %v1325_v55  ;;  %1362 = vadd.xlane.f32.xlu0 %v1361_v42 }
 0x265   : > { %v3488_v51 = vpop.eup %2612  ;;  %v1327_v58 = vmul.f32 1.442695, %v1265_v62  ;;  %v1329_v59 = vmul.f32 1.442695, %v1266_v44 }
 0x266   : > { %v1364_v45 = vadd.f32 %v3488_v51, %v3486_v50 }
 0x267   : > { %2626 = vpow2.f32 %v1327_v58 }
 0x268   : > { %v3492_v6 = vpop.eup %2614  ;;  %2628 = vpow2.f32 %v1329_v59  ;;  %1365 = vadd.xlane.f32.xlu1 %v1364_v45 }
 0x269   : > { %v3494_v53 = vpop.eup %2616 }
 0x26a   : > { %v1367_v61 = vadd.f32 %v3494_v53, %v3492_v6 }
 0x26c   : > { %v3498_v0 = vpop.eup %2618  ;;  %1368 = vadd.xlane.f32.xlu0 %v1367_v61 }
 0x26d   : > { %v3500_v15 = vpop.eup %2620 }
 0x26e   : > { %v1370_v57 = vadd.f32 %v3500_v15, %v3498_v0 }
 0x270   : > { %v3504_v60 = vpop.eup %2622  ;;  %1371 = vadd.xlane.f32.xlu1 %v1370_v57 }
 0x271   : > { %v3506_v4 = vpop.eup %2624 }
 0x272   : > { %v1373_v5 = vadd.f32 %v3506_v4, %v3504_v60 }
 0x274   : > { %v3510_v1 = vpop.eup %2626  ;;  %1374 = vadd.xlane.f32.xlu0 %v1373_v5 }
 0x275   : > { %v3512_v22 = vpop.eup %2628 }
 0x276   : > { %v1376_v9 = vadd.f32 %v3512_v22, %v3510_v1 }
 0x278   : > { %1377 = vadd.xlane.f32.xlu1 %v1376_v9 }
 0x2c5   : > { %v1333_v10 = vpop.xlane.xlu0 %1332 }
 0x2c6   : > { %2630 = vrcp.f32 %v1333_v10 }
 0x2c9   : > { %v1336_v11 = vpop.xlane.xlu1 %1335 }
 0x2ca   : > { %2632 = vrcp.f32 %v1336_v11 }
 0x2cd   : > { %v1339_v12 = vpop.xlane.xlu0 %1338 }
 0x2ce   : > { %2634 = vrcp.f32 %v1339_v12 }
 0x2d1   : > { %v1342_v30 = vpop.xlane.xlu1 %1341 }
 0x2d2   : > { %2636 = vrcp.f32 %v1342_v30 }
 0x2d3   : > { %v2631_v16 = vpop.eup %2630 }
 0x2d4   : > { %v1396_v17 = vmul.f32 %v2631_v16, %v3388_v63  ;;  %v1395_v19 = vmul.f32 %v2631_v16, %v3386_v43 }
 0x2d5   : > { %v1345_v21 = vpop.xlane.xlu0 %1344 }
 0x2d6   : > { %2638 = vrcp.f32 %v1345_v21  ;;  %1428 = vst [vmem:[%s3520_s3 + $0x8] sm:$0xff] %v1396_v17  ;;  %1427 = vst [vmem:[%s3520_s3] sm:$0xff] %v1395_v19 }
 0x2d7   : > { %v2633_v24 = vpop.eup %2632 }
 0x2d8   : > { %v1398_v25 = vmul.f32 %v2633_v24, %v3396_v14  ;;  %v1397_v38 = vmul.f32 %v2633_v24, %v3394_v56 }
 0x2d9   : > { %v1348_v63 = vpop.xlane.xlu1 %1347 }
 0x2da   : > { %2640 = vrcp.f32 %v1348_v63  ;;  %1430 = vst [vmem:[%s3520_s3 + $0x18] sm:$0xff] %v1398_v25  ;;  %v1460_v43 = vpack.c.bf16 %v1398_v25, %v1396_v17  ;;  %1429 = vst [vmem:[%s3520_s3 + $0x10] sm:$0xff] %v1397_v38  ;;  %v1459_v26 = vpack.c.bf16 %v1397_v38, %v1395_v19 }
 0x2db   : > { %v2635_v27 = vpop.eup %2634 }
 0x2dc   : > { %1603 = vmatprep.mubr.bf16.mxu1 %v1460_v43  ;;  %v1400_v33 = vmul.f32 %v2635_v27, %v3404_v23  ;;  %v1399_v46 = vmul.f32 %v2635_v27, %v3402_v3 }
 0x2dd   : > { %1604 = vmatmul.mubr.bf16.vlgmr.msra.gmra.mxu1 %v1459_v26  ;;  %v1351_v47 = vpop.xlane.xlu0 %1350 }
 0x2de   : > { %2642 = vrcp.f32 %v1351_v47  ;;  %1432 = vst [vmem:[%s3520_s3 + $0x28] sm:$0xff] %v1400_v33  ;;  %1431 = vst [vmem:[%s3520_s3 + $0x20] sm:$0xff] %v1399_v46 }
 0x2df   : > { %v2637_v56 = vpop.eup %2636 }
 0x2e0   : > { %v1402_v14 = vmul.f32 %v2637_v56, %v3413_v18  ;;  %v1401_v34 = vmul.f32 %v2637_v56, %v3410_v13 }
 0x2e1   : > { %v1354_v48 = vpop.xlane.xlu1 %1353 }
 0x2e2   : > { %2644 = vrcp.f32 %v1354_v48  ;;  %1434 = vst [vmem:[%s3520_s3 + $0x38] sm:$0xff] %v1402_v14  ;;  %v1462_v36 = vpack.c.bf16 %v1402_v14, %v1400_v33  ;;  %1433 = vst [vmem:[%s3520_s3 + $0x30] sm:$0xff] %v1401_v34  ;;  %v1461_v23 = vpack.c.bf16 %v1401_v34, %v1399_v46 }
 0x2e3   : > { %v2639_v3 = vpop.eup %2638 }
 0x2e4   : > { %1611 = vmatprep.mubr.bf16.mxu1 %v1462_v36  ;;  %v1404_v35 = vmul.f32 %v2639_v3, %v3423_v32  ;;  %v1403_v55 = vmul.f32 %v2639_v3, %v3420_v28 }
 0x2e5   : > { %1612 = vmatmul.mubr.bf16.gmra.mxu1 %v1461_v23  ;;  %v1357_v41 = vpop.xlane.xlu0 %1356 }
 0x2e6   : > { %2646 = vrcp.f32 %v1357_v41  ;;  %1436 = vst [vmem:[%s3520_s3 + $0x48] sm:$0xff] %v1404_v35  ;;  %1435 = vst [vmem:[%s3520_s3 + $0x40] sm:$0xff] %v1403_v55 }
 0x2e7   : > { %v2641_v13 = vpop.eup %2640 }
 0x2e8   : > { %v1406_v18 = vmul.f32 %v2641_v13, %v3433_v40  ;;  %v1405_v42 = vmul.f32 %v2641_v13, %v3430_v54 }
 0x2e9   : > { %v1360_v62 = vpop.xlane.xlu1 %1359 }
 0x2ea   : > { %2648 = vrcp.f32 %v1360_v62  ;;  %1438 = vst [vmem:[%s3520_s3 + $0x58] sm:$0xff] %v1406_v18  ;;  %v1464_v44 = vpack.c.bf16 %v1406_v18, %v1404_v35  ;;  %1437 = vst [vmem:[%s3520_s3 + $0x50] sm:$0xff] %v1405_v42  ;;  %v1463_v32 = vpack.c.bf16 %v1405_v42, %v1403_v55 }
 0x2eb   : > { %v2643_v28 = vpop.eup %2642 }
 0x2ec   : > { %1619 = vmatprep.mubr.bf16.mxu1 %v1464_v44  ;;  %v1408_v58 = vmul.f32 %v2643_v28, %v3443_v7  ;;  %v1407_v59 = vmul.f32 %v2643_v28, %v3440_v52 }
 0x2ed   : > { %1620 = vmatmul.mubr.bf16.gmra.mxu1 %v1463_v32  ;;  %v1363_v45 = vpop.xlane.xlu0 %1362 }
 0x2ee   : > { %2650 = vrcp.f32 %v1363_v45  ;;  %1440 = vst [vmem:[%s3520_s3 + $0x68] sm:$0xff] %v1408_v58  ;;  %1439 = vst [vmem:[%s3520_s3 + $0x60] sm:$0xff] %v1407_v59 }
 0x2ef   : > { %v2645_v54 = vpop.eup %2644 }
 0x2f0   : > { %v1410_v40 = vmul.f32 %v2645_v54, %v3453_v8  ;;  %v1409_v61 = vmul.f32 %v2645_v54, %v3450_v2 }
 0x2f1   : > { %v1366_v57 = vpop.xlane.xlu1 %1365 }
 0x2f2   : > { %2652 = vrcp.f32 %v1366_v57  ;;  %1442 = vst [vmem:[%s3520_s3 + $0x78] sm:$0xff] %v1410_v40  ;;  %v1466_v5 = vpack.c.bf16 %v1410_v40, %v1408_v58  ;;  %1441 = vst [vmem:[%s3520_s3 + $0x70] sm:$0xff] %v1409_v61  ;;  %v1465_v7 = vpack.c.bf16 %v1409_v61, %v1407_v59 }
 0x2f3   : > { %v2647_v52 = vpop.eup %2646 }
 0x2f4   : > { %1627 = vmatprep.mubr.bf16.mxu1 %v1466_v5  ;;  %v1412_v9 = vmul.f32 %v2647_v52, %v3463_v20  ;;  %v1411_v10 = vmul.f32 %v2647_v52, %v3460_v31 }
 0x2f5   : > { %1628 = vmatmul.mubr.bf16.gmra.mxu1 %v1465_v7  ;;  %v1369_v11 = vpop.xlane.xlu0 %1368 }
 0x2f6   : > { %2654 = vrcp.f32 %v1369_v11  ;;  %1444 = vst [vmem:[%s3520_s3 + $0x88] sm:$0xff] %v1412_v9  ;;  %1443 = vst [vmem:[%s3520_s3 + $0x80] sm:$0xff] %v1411_v10 }
 0x2f7   : > { %v2649_v2 = vpop.eup %2648 }
 0x2f8   : > { %v1414_v8 = vmul.f32 %v2649_v2, %v3472_v29  ;;  %v1413_v12 = vmul.f32 %v2649_v2, %v3470_v39 }
 0x2f9   : > { %v1372_v30 = vpop.xlane.xlu1 %1371 }
 0x2fa   : > { %2656 = vrcp.f32 %v1372_v30  ;;  %1446 = vst [vmem:[%s3520_s3 + $0x98] sm:$0xff] %v1414_v8  ;;  %v1468_v16 = vpack.c.bf16 %v1414_v8, %v1412_v9  ;;  %1445 = vst [vmem:[%s3520_s3 + $0x90] sm:$0xff] %v1413_v12  ;;  %v1467_v20 = vpack.c.bf16 %v1413_v12, %v1411_v10 }
 0x2fb   : > { %v2651_v31 = vpop.eup %2650 }
 0x2fc   : > { %1635 = vmatprep.mubr.bf16.mxu1 %v1468_v16  ;;  %v1416_v17 = vmul.f32 %v2651_v31, %v3480_v37  ;;  %v1415_v19 = vmul.f32 %v2651_v31, %v3478_v49 }
 0x2fd   : > { %1636 = vmatmul.mubr.bf16.gmra.mxu1 %v1467_v20  ;;  %v1375_v21 = vpop.xlane.xlu0 %1374 }
 0x2fe   : > { %2658 = vrcp.f32 %v1375_v21  ;;  %1448 = vst [vmem:[%s3520_s3 + $0xa8] sm:$0xff] %v1416_v17  ;;  %1447 = vst [vmem:[%s3520_s3 + $0xa0] sm:$0xff] %v1415_v19 }
 0x2ff   : > { %v2653_v39 = vpop.eup %2652 }
 0x300   : > { %v1418_v29 = vmul.f32 %v2653_v39, %v3488_v51  ;;  %v1417_v24 = vmul.f32 %v2653_v39, %v3486_v50 }
 0x301   : > { %v1378_v25 = vpop.xlane.xlu1 %1377 }
 0x302   : > { %2660 = vrcp.f32 %v1378_v25  ;;  %1450 = vst [vmem:[%s3520_s3 + $0xb8] sm:$0xff] %v1418_v29  ;;  %v1470_v37 = vpack.c.bf16 %v1418_v29, %v1416_v17  ;;  %1449 = vst [vmem:[%s3520_s3 + $0xb0] sm:$0xff] %v1417_v24  ;;  %v1469_v49 = vpack.c.bf16 %v1417_v24, %v1415_v19 }
 0x303   : > { %v2655_v38 = vpop.eup %2654 }
 0x304   : > { %1643 = vmatprep.mubr.bf16.mxu1 %v1470_v37  ;;  %v1420_v63 = vmul.f32 %v2655_v38, %v3494_v53  ;;  %v1419_v43 = vmul.f32 %v2655_v38, %v3492_v6 }
 0x305   : > { %1644 = vmatmul.mubr.bf16.gmra.mxu1 %v1469_v49 }
 0x306   : > { %1452 = vst [vmem:[%s3520_s3 + $0xc8] sm:$0xff] %v1420_v63  ;;  %1451 = vst [vmem:[%s3520_s3 + $0xc0] sm:$0xff] %v1419_v43 }
 0x307   : > { %v2657_v50 = vpop.eup %2656 }
 0x308   : > { %v1422_v51 = vmul.f32 %v2657_v50, %v3500_v15  ;;  %v1421_v26 = vmul.f32 %v2657_v50, %v3498_v0 }
 0x30a   : > { %1454 = vst [vmem:[%s3520_s3 + $0xd8] sm:$0xff] %v1422_v51  ;;  %v1472_v27 = vpack.c.bf16 %v1422_v51, %v1420_v63  ;;  %1453 = vst [vmem:[%s3520_s3 + $0xd0] sm:$0xff] %v1421_v26  ;;  %v1471_v33 = vpack.c.bf16 %v1421_v26, %v1419_v43 }
 0x30b   : > { %v2659_v46 = vpop.eup %2658 }
 0x30c   : > { %1651 = vmatprep.mubr.bf16.mxu1 %v1472_v27  ;;  %v1424_v6 = vmul.f32 %v2659_v46, %v3506_v4  ;;  %v1423_v53 = vmul.f32 %v2659_v46, %v3504_v60 }
 0x30d   : > { %1652 = vmatmul.mubr.bf16.gmra.mxu1 %v1471_v33 }
 0x30e   : > { %1456 = vst [vmem:[%s3520_s3 + $0xe8] sm:$0xff] %v1424_v6  ;;  %1455 = vst [vmem:[%s3520_s3 + $0xe0] sm:$0xff] %v1423_v53 }
 0x30f   : > { %v2661_v47 = vpop.eup %2660 }
 0x310   : > { %v1426_v15 = vmul.f32 %v2661_v47, %v3512_v22  ;;  %v1425_v56 = vmul.f32 %v2661_v47, %v3510_v1 }
 0x312   : > { %1458 = vst [vmem:[%s3520_s3 + $0xf8] sm:$0xff] %v1426_v15  ;;  %v1474_v0 = vpack.c.bf16 %v1426_v15, %v1424_v6  ;;  %1457 = vst [vmem:[%s3520_s3 + $0xf0] sm:$0xff] %v1425_v56  ;;  %v1473_v14 = vpack.c.bf16 %v1425_v56, %v1423_v53 }
 0x314   : > { %1659 = vmatprep.mubr.bf16.mxu1 %v1474_v0 }
 0x315   : > { %1660 = vmatmul.mubr.bf16.gmra.mxu1 %v1473_v14 }
 0x39d   : > { %v2339_v34 = vpop.f32.mrf.mxu1 }
 0x39f   : > { %v2340_v48 = vpop.f32.mrf.mxu1 }
 0x3a0   : > { %v2341_v60 = vadd.f32 %v2340_v48, %v2339_v34 }
 0x3a1   : > { %v2342_v4 = vpop.f32.mrf.mxu1 }
 0x3a3   : > { %v2343_v36 = vpop.f32.mrf.mxu1 }
 0x3a4   : > { %v2344_v23 = vadd.f32 %v2343_v36, %v2342_v4 }
 0x3a5   : > { %v2345_v3 = vpop.f32.mrf.mxu1 }
 0x3a6   : > { %v2247_v35 = vpack.c.bf16 %v2344_v23, %v2341_v60 }
 0x3a7   : > { %v2346_v55 = vpop.f32.mrf.mxu1 }
 0x3a8   : > { %2248 = vst [vmem:[%s3585_s9] sm:$0xff] %v2247_v35   ;;  %v2347_v41 = vadd.f32 %v2346_v55, %v2345_v3 }
 0x3a9   : > { %v2348_v1 = vpop.f32.mrf.mxu1 }
 0x3ab   : > { %v2349_v22 = vpop.f32.mrf.mxu1 }
 0x3ac   : > { %v2350_v13 = vadd.f32 %v2349_v22, %v2348_v1 }
 0x3ad   : > { %v2351_v18 = vpop.f32.mrf.mxu1 }
 0x3ae   : > { %v2252_v42 = vpack.c.bf16 %v2350_v13, %v2347_v41 }
 0x3af   : > { %v2352_v62 = vpop.f32.mrf.mxu1  ;;  %v1783_v46 = vld [vmem:[%s3585_s9] sm:$0xf] (%p3009_p0)  ;;  %v1785_v6 = vld [vmem:[%s3585_s9 + $0x4] sm:$0xf] (%p3009_p0) }
 0x3b0   : > { %2284 = vst [vmem:[%s3585_s9 + $0x8] sm:$0xff] %v2252_v42   ;;  %v2353_v28 = vadd.f32 %v2352_v62, %v2351_v18  ;;  %1784 = vst [vmem:[%s1766_s21] sm:$0xf] (%p3009_p0), %v1783_v46 }
 0x3b1   : > { %v2354_v44 = vpop.f32.mrf.mxu1  ;;  %1786 = vst [vmem:[%s1766_s21 + $0x8] sm:$0xf] (%p3009_p0), %v1785_v6 }
 0x3b3   : > { %v2355_v32 = vpop.f32.mrf.mxu1 }
 0x3b4   : > { %v2356_v58 = vadd.f32 %v2355_v32, %v2354_v44 }
 0x3b5   : > { %v2357_v59 = vpop.f32.mrf.mxu1 }
 0x3b6   : > { %v2257_v45 = vpack.c.bf16 %v2356_v58, %v2353_v28 }
 0x3b7   : > { %v2358_v54 = vpop.f32.mrf.mxu1  ;;  %v1787_v53 = vld [vmem:[%s3585_s9 + $0x8] sm:$0xf] (%p3009_p0)  ;;  %v1789_v47 = vld [vmem:[%s3585_s9 + $0xc] sm:$0xf] (%p3009_p0) }
 0x3b8   : > { %2285 = vst [vmem:[%s3585_s9 + $0x10] sm:$0xff] %v2257_v45   ;;  %v2359_v57 = vadd.f32 %v2358_v54, %v2357_v59  ;;  %1788 = vst [vmem:[%s1766_s21 + $0x10] sm:$0xf] (%p3009_p0), %v1787_v53 }
 0x3b9   : > { %v2360_v40 = vpop.f32.mrf.mxu1  ;;  %1790 = vst [vmem:[%s1766_s21 + $0x18] sm:$0xf] (%p3009_p0), %v1789_v47 }
 0x3bb   : > { %v2361_v61 = vpop.f32.mrf.mxu1 }
 0x3bc   : > { %v2362_v5 = vadd.f32 %v2361_v61, %v2360_v40 }
 0x3bd   : > { %v2363_v7 = vpop.f32.mrf.mxu1 }
 0x3be   : > { %v2262_v52 = vpack.c.bf16 %v2362_v5, %v2359_v57 }
 0x3bf   : > { %v2364_v9 = vpop.f32.mrf.mxu1  ;;  %v1791_v15 = vld [vmem:[%s3585_s9 + $0x10] sm:$0xf] (%p3009_p0)  ;;  %v1793_v56 = vld [vmem:[%s3585_s9 + $0x14] sm:$0xf] (%p3009_p0) }
 0x3c0   : > { %2286 = vst [vmem:[%s3585_s9 + $0x18] sm:$0xff] %v2262_v52   ;;  %v2365_v2 = vadd.f32 %v2364_v9, %v2363_v7  ;;  %1792 = vst [vmem:[%s1766_s21 + $0x20] sm:$0xf] (%p3009_p0), %v1791_v15 }
 0x3c1   : > { %v2366_v10 = vpop.f32.mrf.mxu1  ;;  %1794 = vst [vmem:[%s1766_s21 + $0x28] sm:$0xf] (%p3009_p0), %v1793_v56 }
 0x3c3   : > { %v2367_v11 = vpop.f32.mrf.mxu1 }
 0x3c4   : > { %v2368_v8 = vadd.f32 %v2367_v11, %v2366_v10 }
 0x3c5   : > { %v2369_v12 = vpop.f32.mrf.mxu1 }
 0x3c6   : > { %v2267_v30 = vpack.c.bf16 %v2368_v8, %v2365_v2 }
 0x3c7   : > { %v2370_v16 = vpop.f32.mrf.mxu1  ;;  %v1795_v0 = vld [vmem:[%s3585_s9 + $0x18] sm:$0xf] (%p3009_p0)  ;;  %v1797_v14 = vld [vmem:[%s3585_s9 + $0x1c] sm:$0xf] (%p3009_p0) }
 0x3c8   : > { %2287 = vst [vmem:[%s3585_s9 + $0x20] sm:$0xff] %v2267_v30   ;;  %v2371_v17 = vadd.f32 %v2370_v16, %v2369_v12  ;;  %1796 = vst [vmem:[%s1766_s21 + $0x30] sm:$0xf] (%p3009_p0), %v1795_v0 }
 0x3c9   : > { %v2372_v20 = vpop.f32.mrf.mxu1  ;;  %1798 = vst [vmem:[%s1766_s21 + $0x38] sm:$0xf] (%p3009_p0), %v1797_v14 }
 0x3cb   : > { %v2373_v31 = vpop.f32.mrf.mxu1 }
 0x3cc   : > { %v2374_v19 = vadd.f32 %v2373_v31, %v2372_v20 }
 0x3cd   : > { %v2375_v21 = vpop.f32.mrf.mxu1 }
 0x3ce   : > { %v2272_v39 = vpack.c.bf16 %v2374_v19, %v2371_v17 }
 0x3cf   : > { %v2376_v29 = vpop.f32.mrf.mxu1  ;;  %v1799_v34 = vld [vmem:[%s3585_s9 + $0x20] sm:$0xf] (%p3009_p0)  ;;  %v1801_v48 = vld [vmem:[%s3585_s9 + $0x24] sm:$0xf] (%p3009_p0) }
 0x3d0   : > { %2288 = vst [vmem:[%s3585_s9 + $0x28] sm:$0xff] %v2272_v39   ;;  %v2377_v37 = vadd.f32 %v2376_v29, %v2375_v21  ;;  %1800 = vst [vmem:[%s1766_s21 + $0x40] sm:$0xf] (%p3009_p0), %v1799_v34 }
 0x3d1   : > { %v2378_v24 = vpop.f32.mrf.mxu1  ;;  %1802 = vst [vmem:[%s1766_s21 + $0x48] sm:$0xf] (%p3009_p0), %v1801_v48 }
 0x3d3   : > { %v2379_v25 = vpop.f32.mrf.mxu1 }
 0x3d4   : > { %v2380_v49 = vadd.f32 %v2379_v25, %v2378_v24 }
 0x3d5   : > { %v2381_v38 = vpop.f32.mrf.mxu1 }
 0x3d6   : > { %v2277_v63 = vpack.c.bf16 %v2380_v49, %v2377_v37 }
 0x3d7   : > { %v2382_v43 = vpop.f32.mrf.mxu1  ;;  %v1803_v4 = vld [vmem:[%s3585_s9 + $0x28] sm:$0xf] (%p3009_p0)  ;;  %v1805_v36 = vld [vmem:[%s3585_s9 + $0x2c] sm:$0xf] (%p3009_p0) }
 0x3d8   : > { %2289 = vst [vmem:[%s3585_s9 + $0x30] sm:$0xff] %v2277_v63   ;;  %v2383_v26 = vadd.f32 %v2382_v43, %v2381_v38  ;;  %1804 = vst [vmem:[%s1766_s21 + $0x50] sm:$0xf] (%p3009_p0), %v1803_v4 }
 0x3d9   : > { %v2384_v50 = vpop.f32.mrf.mxu1  ;;  %1806 = vst [vmem:[%s1766_s21 + $0x58] sm:$0xf] (%p3009_p0), %v1805_v36 }
 0x3db   : > { %v2385_v51 = vpop.f32.mrf.mxu1 }
 0x3dc   : > { %v2386_v27 = vadd.f32 %v2385_v51, %v2384_v50  ;;  %1759 = sbr.rel (!%p3009_p0) target bundleno = 1001 (0x3e9), region = 163 }
 0x3de   : > { %v2282_v33 = vpack.c.bf16 %v2386_v27, %v2383_v26 }
 0x3df   : > { %v1807_v60 = vld [vmem:[%s3585_s9 + $0x30] sm:$0xf] (%p3009_p0)  ;;  %v1809_v23 = vld [vmem:[%s3585_s9 + $0x34] sm:$0xf] (%p3009_p0) }
 0x3e0   : > { %2290 = vst [vmem:[%s3585_s9 + $0x38] sm:$0xff] %v2282_v33   ;;  %1808 = vst [vmem:[%s1766_s21 + $0x60] sm:$0xf] (%p3009_p0), %v1807_v60 }
 0x3e1   : > { %1810 = vst [vmem:[%s1766_s21 + $0x68] sm:$0xf] %v1809_v23 }
 0x3e7   : > { %v1811_v3 = vld [vmem:[%s3585_s9 + $0x38] sm:$0xf]  ;;  %v1813_v35 = vld [vmem:[%s3585_s9 + $0x3c] sm:$0xf] }
 0x3e8   : > { %1812 = vst [vmem:[%s1766_s21 + $0x70] sm:$0xf] %v1811_v3  ;;  %1814 = vst [vmem:[%s1766_s21 + $0x78] sm:$0xf] %v1813_v35 }
 0x3e9 PF: > { %s3761_s13 = sld [smem:[#allocation10_spill]]  ;;  %s1882_s11 = sshll.u32 %s3520_s3, 4  ;;  %s3627_s11 = int_to_ptr.vmem [resolvable:$true] %s1882_s11 }
 0x3ea   : > { %s3762_s15 = sld [smem:[#allocation11_spill]]  ;;  %s2662_s1 = scalar_lea.vmem %s3627_s11, 4096 }
 0x3eb   : > { %s3763_s10 = sld [smem:[#allocation12_spill]]  ;;  %p2663_p13 = scmp.ne.s32.totalorder %s3627_s11, %s2662_s1 }
 0x3ec   : > { %s3764_s25 = sld [smem:[#allocation24_spill]] }
 0x3ed   : > { %p2664_p0 = pnand %p2663_p13, %p3020_p8 }
 0x3ef   : > { %s2243_s27 = sshll.u32 %s3761_s13, 5  ;;  %p2665_p3 = pneg %p2664_p0 }
 0x3f0   : > { %s2221_s12 = sshll.u32 %s3762_s15, 6  ;;  %s2820_s13 = smov [#allocation6]  }
 0x3f1   : > { %s1877_s14 = sadd.s32 %s2243_s27, %s2221_s12  ;;  %s2222_s28 = sshll.u32 %s3763_s10, 7 }
 0x3f2   : > { %s1879_s4 = sadd.s32 %s2222_s28, %s1877_s14  ;;  %s3765_s0 = smov %s3764_s25 }
 0x3f3   : > { %s2223_s16 = sshll.u32 %s1879_s4, 7  ;;  %s2666_s15 = sshll.u32 %s2820_s13, 4  ;;  %s2667_s15 = int_to_ptr.vmem [resolvable:$false] %s2666_s15 }
 0x3f4   : > { %s3632_s21 = scalar_lea.hbm %s3764_s25, %s2223_s16  ;;  %s2668_s3 = scalar_lea.vmem %s2667_s15, 8192 }
 0x3f5   : > { %p2669_p5 = scmp.lt.s32.totalorder %s3627_s11, %s2667_s15  ;;  %p2670_p6 = scmp.lt.s32.totalorder %s2668_s3, %s2662_s1 }
 0x3f7   : > { %p2671_p2 = por %p2670_p6, %p2669_p5 }
 0x3f9   : > { %p2672_p1 = pnand %p2671_p2, %p2665_p3 }
 0x3fb   : > { %2675 = shalt.err (!%p2672_p1)
}
 0x3fc   : > { %s2676_s10 = scalar_lea.hbm %s3632_s21, 4096  ;;  %s2680_s14 = scalar_lea.hbm %s3765_s0, 32768 }
 0x3fd   : > { %p2677_p4 = scmp.ne.s32.totalorder %s3632_s21, %s2676_s10  ;;  %p2681_p11 = scmp.lt.s32.totalorder %s3632_s21, %s3765_s0 }
 0x3fe   : > { %p2682_p12 = scmp.lt.s32.totalorder %s2680_s14, %s2676_s10 }
 0x3ff   : > { %p2678_p7 = pnand %p2677_p4, %p3020_p8 }
 0x400   : > { %p2683_p13 = por %p2682_p12, %p2681_p11 }
 0x401   : > { %p2679_p10 = pneg %p2678_p7 }
 0x403   : > { %p2684_p0 = pnand %p2683_p13, %p2679_p10 }
 0x405   : > { %2687 = shalt.err (!%p2684_p0)
}
 0x406   : > { %s2821_s1 = smov 256   ;;  %s2822_s16 = smov 16  }
 0x407   : > { %2389 = dma.vmem_to_hbm [thread:$0]  (%p3020_p8), %s3627_s11, 4096, %s3632_s21, %s3597_s17, %s2821_s1, %s2821_s1, %s2822_s16  }
 0x408 PF: > { %p2395_p3 = scmp.ge.s32.totalorder %s2818_s8, 2  ;;  %s1904_s2 = sand.u32 1, %s2758_s18  }
 0x409   : > { %s1905_s9 = scalar_lea.sflag [#allocation7], %s1904_s2 }
 0x40a   : > { %p2392_p5 = pnand %p2395_p3, %p3029_p9 }
 0x40c   : > { %p2393_p6 = pneg %p2392_p5 }
 0x40e   : > { %2753 = dma.done.wait (%p2393_p6), %s1905_s9, 4096  }
 0x40f   : > { %2755 = vsyncadd (%p2393_p6), %s1905_s9, 4294963200  ;;  %s19_s8 = sadd.s32 1, %s2818_s8   ;;  %s3767_s23 = sld [smem:[#allocation18_spill]] }
 0x410   : > { %p3660_p2 = scmp.ge.s32.totalorder %s19_s8, 10   ;;  %s3768_s17 = sld [smem:[#allocation16_spill]] }
 0x411   : > { %s3769_s29 = sld [smem:[#allocation17_spill]]  ;;  %s3773_s18 = smov %s2762_s19 }
 0x412   : > { %s3770_s11 = sld [smem:[#allocation13_spill]]  ;;  %s3775_s19 = smov %s2766_s20 }
 0x413   : > { %s3771_s13 = sld [smem:[#allocation14_spill]]  ;;  %s3776_s20 = smov %s3027_s5 }
 0x414   : > { %s3772_s15 = sld [smem:[#allocation15_spill]]  ;;  %s3777_s21 = smov %s2774_s22 }
 0x415   : > { %s3778_s22 = smov %s3767_s23  ;;  %s3779_s23 = smov %s2782_s24 }
 0x416   : > { %s3780_s24 = smov %s3768_s17  ;;  %s3781_s25 = smov %s2790_s26 }
 0x417   : > { %s3782_s26 = smov %s3769_s29  ;;  %s3783_s27 = smov %s2806_s30 }
 0x418   : > { %s3784_s28 = smov %s2810_s6  ;;  %s3785_s29 = smov %s2814_s7 }
 0x419   : > { %s3786_s30 = smov %s3770_s11  ;;  %s3787_s6 = smov %s3771_s13 }
 0x41a   : > { %s3788_s7 = smov %s3772_s15  ;;  %18 = sbr.rel (!%p3660_p2) target bundleno = 16 (0x10), region = 271 }
 0x41f   :  { %1910 = vsyncpa [#allocation7], 1 }
 0x420   :  { %1912 = vsyncpa [#allocation7 + $0x1], 1 }

// kernel: t5_attention_forward.3
= control target key start
LH: loop header
LB: loop body
LE: loop exit
PB: predicated region body
PF: predicated region fallthrough
CT: control target
= control target key end

     0   :  { %s3033_s12 = smov 0   ;;  %s3035_s13 = smov 0   ;;  %s3850_s0 = inlined_call_operand.vmem [shape: bf16[512,256], index: 0, kind: input, shape index: {}]   ;;  %s3851_s1 = inlined_call_operand.vmem [shape: bf16[256,768], index: 1, kind: input, shape index: {}]   ;;  %s3852_s2 = inlined_call_operand.vmem [shape: f32[1,768], index: 2, kind: input, shape index: {}]   ;;  %s3853_s3 = inlined_call_operand.vmem [shape: bf16[512,768], index: 3, kind: output, shape index: {}]  }
   0x1   :  { %s3037_s14 = smov 0  }
   0x2 LB: > { %s25_s15 = sadd.s32 1, %s3007_s13  ;;  %p2411_p0 = scmp.ge.s32.totalorder %s3011_s14, 1  ;;  %s3011_s14 = sphi %s3037_s14, %s13_s14   ;;  %s3007_s13 = sphi %s3035_s13, %s3855_s13   ;;  %s3003_s12 = sphi %s3033_s12, %s3854_s12  }
   0x3   : > { %p27_p1 = scmp.ge.s32.totalorder %s25_s15, 2  ;;  %p174_p2 = scmp.lt.s32.totalorder %s3011_s14, 3 }
   0x5   : > { %s3857_s15 = smov (%p27_p1, %s25_s15), 0  ;;  %p175_p3 = pnand %p2411_p0, %p174_p2 }
   0x6   : > { %s2412_s26 = sshll.u32 (!%p175_p3), %s3003_s12, 5 }
   0x7   : > { %178 = sbr.rel (%p175_p3) target bundleno = 465 (0x1d1), region = 32  ;;  %p214_p4 = scmp.lt.s32.totalorder (!%p175_p3), %s2412_s26, 63 }
   0xc   : > { %v2797_v0 = vld [vmem:[%s3851_s1 + $0x154] ss:$24 sps:$4 sm:$0xff]   ;;  %v2799_v1 = vld [vmem:[%s3851_s1 + $0x150] ss:$24 sps:$4 sm:$0xff]   ;;  %v2800_v2 = vld [vmem:[%s3851_s1 + $0x124] ss:$24 sps:$4 sm:$0xff]  }
   0xd   : > { %1043 = vmatprep.subr.bf16.mxu0 %v2797_v0  ;;  %2740 = vmatprep.subr.bf16.mxu1 %v2797_v0  ;;  %v2802_v3 = vld [vmem:[%s3851_s1 + $0x120] ss:$24 sps:$4 sm:$0xff]   ;;  %v2803_v4 = vld [vmem:[%s3851_s1 + $0xf4] ss:$24 sps:$4 sm:$0xff]   ;;  %v2805_v5 = vld [vmem:[%s3851_s1 + $0xf0] ss:$24 sps:$4 sm:$0xff]  }
   0xe   : > { %1044 = vmatpush1.bf16.msra.mxu0 %v2799_v1  ;;  %2756 = vmatpush1.bf16.msra.mxu1 %v2799_v1  ;;  %v2806_v6 = vld [vmem:[%s3851_s1 + $0xc4] ss:$24 sps:$4 sm:$0xff]   ;;  %v2808_v7 = vld [vmem:[%s3851_s1 + $0xc0] ss:$24 sps:$4 sm:$0xff]   ;;  %v2809_v8 = vld [vmem:[%s3851_s1 + $0x94] ss:$24 sps:$4 sm:$0xff]  }
   0xf   : > { %1045 = vmatprep.subr.bf16.mxu0 %v2800_v2  ;;  %2741 = vmatprep.subr.bf16.mxu1 %v2800_v2  ;;  %s3859_s26 = smov (!%p214_p4, %s2412_s26), 63  ;;  %v2811_v9 = vld [vmem:[%s3851_s1 + $0x90] ss:$24 sps:$4 sm:$0xff]   ;;  %v2812_v10 = vld [vmem:[%s3851_s1 + $0x64] ss:$24 sps:$4 sm:$0xff]  }
  0x10   : > { %s2643_s12 = sshll.u32 %s3859_s26, 3  ;;  %v2814_v11 = vld [vmem:[%s3851_s1 + $0x60] ss:$24 sps:$4 sm:$0xff]   ;;  %v2815_v12 = vld [vmem:[%s3851_s1 + $0x34] ss:$24 sps:$4 sm:$0xff]   ;;  %s2772_s10 = smul.u32 24, %s3859_s26 }
  0x11   : > { %s3096_s20 = scalar_lea.vmem %s3850_s0, %s2643_s12  ;;  %v2817_v14 = vld [vmem:[%s3851_s1 + $0x30] ss:$24 sps:$4 sm:$0xff]   ;;  %v2818_v16 = vld [vmem:[%s3851_s1 + $0x4] ss:$24 sps:$4 sm:$0xff]   ;;  %v2820_v17 = vld [vmem:[%s3851_s1] ss:$24 sps:$4 sm:$0xff]  }
  0x12   : > { %1046 = vmatpush1.bf16.msra.mxu0 %v2802_v3  ;;  %2757 = vmatpush1.bf16.msra.mxu1 %v2802_v3  ;;  %v3102_v13 = vld [vmem:[%s3096_s20 + $0x4] ss:$8 sps:$4 sm:$0xff]   ;;  %v2823_v19 = vld [vmem:[%s3851_s1 + $0x2d0] ss:$24 sps:$4 sm:$0xff]   ;;  %v2826_v21 = vld [vmem:[%s3851_s1 + $0x2a0] ss:$24 sps:$4 sm:$0xff]   ;;  %s3555_s16 = scalar_lea.vmem %s3853_s3, %s2772_s10 }
  0x13   : > { %1047 = vmatprep.subr.bf16.mxu0 %v2803_v4  ;;  %2742 = vmatprep.subr.bf16.mxu1 %v2803_v4  ;;  %v3108_v15 = vld [vmem:[%s3096_s20 + $0x84] ss:$8 sps:$4 sm:$0xff]   ;;  %v2829_v23 = vld [vmem:[%s3851_s1 + $0x270] ss:$24 sps:$4 sm:$0xff]   ;;  %v2832_v25 = vld [vmem:[%s3851_s1 + $0x240] ss:$24 sps:$4 sm:$0xff]  }
  0x14   : > { %1075 = vmatprep.mubr.bf16.mxu0 %v3102_v13  ;;  %1155 = vmatprep.mubr.bf16.mxu1 %v3108_v15  ;;  %v2821_v18 = vld [vmem:[%s3851_s1 + $0x2d4] ss:$24 sps:$4 sm:$0xff]   ;;  %v2824_v20 = vld [vmem:[%s3851_s1 + $0x2a4] ss:$24 sps:$4 sm:$0xff]   ;;  %v2835_v27 = vld [vmem:[%s3851_s1 + $0x210] ss:$24 sps:$4 sm:$0xff]  }
  0x15   : > { %v2827_v22 = vld [vmem:[%s3851_s1 + $0x274] ss:$24 sps:$4 sm:$0xff]   ;;  %v2830_v24 = vld [vmem:[%s3851_s1 + $0x244] ss:$24 sps:$4 sm:$0xff]   ;;  %v2838_v29 = vld [vmem:[%s3851_s1 + $0x1e0] ss:$24 sps:$4 sm:$0xff]  }
  0x16   : > { %1048 = vmatpush1.bf16.msra.mxu0 %v2805_v5  ;;  %2758 = vmatpush1.bf16.msra.mxu1 %v2805_v5  ;;  %v2833_v26 = vld [vmem:[%s3851_s1 + $0x214] ss:$24 sps:$4 sm:$0xff]   ;;  %v2836_v28 = vld [vmem:[%s3851_s1 + $0x1e4] ss:$24 sps:$4 sm:$0xff]   ;;  %v2841_v31 = vld [vmem:[%s3851_s1 + $0x1b0] ss:$24 sps:$4 sm:$0xff]  }
  0x17   : > { %1049 = vmatprep.subr.bf16.mxu0 %v2806_v6  ;;  %2743 = vmatprep.subr.bf16.mxu1 %v2806_v6  ;;  %v2839_v30 = vld [vmem:[%s3851_s1 + $0x1b4] ss:$24 sps:$4 sm:$0xff]   ;;  %v2842_v32 = vld [vmem:[%s3851_s1 + $0x184] ss:$24 sps:$4 sm:$0xff]   ;;  %v2844_v33 = vld [vmem:[%s3851_s1 + $0x180] ss:$24 sps:$4 sm:$0xff]  }
  0x18   : > { %v2853_v34 = vld [vmem:[%s3851_s1 + $0x15c] ss:$24 sps:$4 sm:$0xff]   ;;  %v3170_v35 = vld [vmem:[%s3096_s20] ss:$8 sps:$4 sm:$0xff]   ;;  %v2851_v38 = vld [vmem:[%s3851_s1 + $0x158] ss:$24 sps:$4 sm:$0xff]  }
  0x19   : > { %v2856_v36 = vld [vmem:[%s3851_s1 + $0x164] ss:$24 sps:$4 sm:$0xff]   ;;  %v3176_v37 = vld [vmem:[%s3096_s20 + $0x80] ss:$8 sps:$4 sm:$0xff]   ;;  %v2862_v41 = vld [vmem:[%s3851_s1 + $0x134] ss:$24 sps:$4 sm:$0xff]  }
  0x1a   : > { %1050 = vmatpush1.bf16.msra.mxu0 %v2808_v7  ;;  %2759 = vmatpush1.bf16.msra.mxu1 %v2808_v7  ;;  %v2854_v39 = vld [vmem:[%s3851_s1 + $0x160] ss:$24 sps:$4 sm:$0xff]   ;;  %v2859_v40 = vld [vmem:[%s3851_s1 + $0x12c] ss:$24 sps:$4 sm:$0xff]   ;;  %v3191_v42 = vld [vmem:[%s3096_s20 + $0x14] ss:$8 sps:$4 sm:$0xff]  }
  0x1b   : > { %1051 = vmatprep.subr.bf16.mxu0 %v2809_v8  ;;  %2744 = vmatprep.subr.bf16.mxu1 %v2809_v8  ;;  %v3194_v43 = vld [vmem:[%s3096_s20 + $0x94] ss:$8 sps:$4 sm:$0xff]   ;;  %v2857_v44 = vld [vmem:[%s3851_s1 + $0x128] ss:$24 sps:$4 sm:$0xff]   ;;  %v3208_v47 = vld [vmem:[%s3096_s20 + $0x10] ss:$8 sps:$4 sm:$0xff]  }
  0x1c   : > { %v2860_v45 = vld [vmem:[%s3851_s1 + $0x130] ss:$24 sps:$4 sm:$0xff]   ;;  %v2871_v46 = vld [vmem:[%s3851_s1 + $0xfc] ss:$24 sps:$4 sm:$0xff]   ;;  %v2872_v51 = vld [vmem:[%s3851_s1 + $0x100] ss:$24 sps:$4 sm:$0xff]  }
  0x1d   : > { %v2874_v48 = vld [vmem:[%s3851_s1 + $0x104] ss:$24 sps:$4 sm:$0xff]   ;;  %v3216_v49 = vld [vmem:[%s3096_s20 + $0x90] ss:$8 sps:$4 sm:$0xff]   ;;  %v2880_v53 = vld [vmem:[%s3851_s1 + $0xd4] ss:$24 sps:$4 sm:$0xff]  }
  0x1e   : > { %1052 = vmatpush1.bf16.msra.mxu0 %v2811_v9  ;;  %2760 = vmatpush1.bf16.msra.mxu1 %v2811_v9  ;;  %v2869_v50 = vld [vmem:[%s3851_s1 + $0xf8] ss:$24 sps:$4 sm:$0xff]   ;;  %v2877_v52 = vld [vmem:[%s3851_s1 + $0xcc] ss:$24 sps:$4 sm:$0xff]   ;;  %v2875_v56 = vld [vmem:[%s3851_s1 + $0xc8] ss:$24 sps:$4 sm:$0xff]  }
  0x1f   : > { %1053 = vmatprep.subr.bf16.mxu0 %v2812_v10  ;;  %2745 = vmatprep.subr.bf16.mxu1 %v2812_v10  ;;  %v3231_v54 = vld [vmem:[%s3096_s20 + $0x24] ss:$8 sps:$4 sm:$0xff]   ;;  %v2878_v57 = vld [vmem:[%s3851_s1 + $0xd0] ss:$24 sps:$4 sm:$0xff]   ;;  %v2889_v58 = vld [vmem:[%s3851_s1 + $0x9c] ss:$24 sps:$4 sm:$0xff]  }
  0x20   : > { %v3234_v55 = vld [vmem:[%s3096_s20 + $0xa4] ss:$8 sps:$4 sm:$0xff]   ;;  %v3248_v59 = vld [vmem:[%s3096_s20 + $0x20] ss:$8 sps:$4 sm:$0xff]   ;;  %v2887_v62 = vld [vmem:[%s3851_s1 + $0x98] ss:$24 sps:$4 sm:$0xff]  }
  0x21   : > { %v2892_v60 = vld [vmem:[%s3851_s1 + $0xa4] ss:$24 sps:$4 sm:$0xff]   ;;  %v3256_v61 = vld [vmem:[%s3096_s20 + $0xa0] ss:$8 sps:$4 sm:$0xff]   ;;  %v2898_v1 = vld [vmem:[%s3851_s1 + $0x74] ss:$24 sps:$4 sm:$0xff]  }
  0x22   : > { %1054 = vmatpush1.bf16.msra.mxu0 %v2814_v11  ;;  %2761 = vmatpush1.bf16.msra.mxu1 %v2814_v11  ;;  %v2890_v63 = vld [vmem:[%s3851_s1 + $0xa0] ss:$24 sps:$4 sm:$0xff]   ;;  %v2895_v0 = vld [vmem:[%s3851_s1 + $0x6c] ss:$24 sps:$4 sm:$0xff]   ;;  %v3271_v2 = vld [vmem:[%s3096_s20 + $0x34] ss:$8 sps:$4 sm:$0xff]  }
  0x23   : > { %1055 = vmatprep.subr.bf16.mxu0 %v2815_v12  ;;  %2746 = vmatprep.subr.bf16.mxu1 %v2815_v12  ;;  %v3274_v3 = vld [vmem:[%s3096_s20 + $0xb4] ss:$8 sps:$4 sm:$0xff]   ;;  %v2893_v4 = vld [vmem:[%s3851_s1 + $0x68] ss:$24 sps:$4 sm:$0xff]   ;;  %v3293_v8 = vld [vmem:[%s3096_s20 + $0x30] ss:$8 sps:$4 sm:$0xff]  }
  0x24   : > { %v2896_v5 = vld [vmem:[%s3851_s1 + $0x70] ss:$24 sps:$4 sm:$0xff]   ;;  %v2907_v6 = vld [vmem:[%s3851_s1 + $0x3c] ss:$24 sps:$4 sm:$0xff]   ;;  %v2908_v11 = vld [vmem:[%s3851_s1 + $0x40] ss:$24 sps:$4 sm:$0xff]  }
  0x25   : > { %v2910_v7 = vld [vmem:[%s3851_s1 + $0x44] ss:$24 sps:$4 sm:$0xff]   ;;  %v3296_v9 = vld [vmem:[%s3096_s20 + $0xb0] ss:$8 sps:$4 sm:$0xff]  }
  0x26   : > { %1056 = vmatpush1.bf16.msra.mxu0 %v2817_v14  ;;  %2762 = vmatpush1.bf16.msra.mxu1 %v2817_v14  ;;  %v2905_v10 = vld [vmem:[%s3851_s1 + $0x38] ss:$24 sps:$4 sm:$0xff]   ;;  %v2913_v12 = vld [vmem:[%s3851_s1 + $0xc] ss:$24 sps:$4 sm:$0xff]  }
  0x27   : > { %1057 = vmatprep.subr.bf16.mxu0 %v2818_v16  ;;  %2747 = vmatprep.subr.bf16.mxu1 %v2818_v16  ;;  %v2916_v14 = vld [vmem:[%s3851_s1 + $0x14] ss:$24 sps:$4 sm:$0xff]  }
  0x28   : > { %v3311_v16 = vld [vmem:[%s3096_s20 + $0x44] ss:$8 sps:$4 sm:$0xff]  }
  0x2a   : > { %1058 = vmatpush1.bf16.msra.mxu0 %v2820_v17  ;;  %2763 = vmatpush1.bf16.msra.mxu1 %v2820_v17  ;;  %v3314_v17 = vld [vmem:[%s3096_s20 + $0xc4] ss:$8 sps:$4 sm:$0xff]  }
  0x2b   : > { %1059 = vmatprep.subr.bf16.mxu0 %v2821_v18  ;;  %2748 = vmatprep.subr.bf16.mxu1 %v2821_v18  ;;  %v2911_v18 = vld [vmem:[%s3851_s1 + $0x8] ss:$24 sps:$4 sm:$0xff]  }
  0x2e   : > { %1060 = vmatpush2.bf16.msra.mxu0 %v2823_v19  ;;  %2764 = vmatpush2.bf16.msra.mxu1 %v2823_v19  ;;  %v2914_v19 = vld [vmem:[%s3851_s1 + $0x10] ss:$24 sps:$4 sm:$0xff]  }
  0x2f   : > { %1061 = vmatprep.subr.bf16.mxu0 %v2824_v20  ;;  %2749 = vmatprep.subr.bf16.mxu1 %v2824_v20  ;;  %v2925_v20 = vld [vmem:[%s3851_s1 + $0x2dc] ss:$24 sps:$4 sm:$0xff]  }
  0x32   : > { %1062 = vmatpush2.bf16.msra.mxu0 %v2826_v21  ;;  %2765 = vmatpush2.bf16.msra.mxu1 %v2826_v21  ;;  %v2928_v21 = vld [vmem:[%s3851_s1 + $0x2e4] ss:$24 sps:$4 sm:$0xff]  }
  0x33   : > { %1063 = vmatprep.subr.bf16.mxu0 %v2827_v22  ;;  %2750 = vmatprep.subr.bf16.mxu1 %v2827_v22  ;;  %v3333_v22 = vld [vmem:[%s3096_s20 + $0x40] ss:$8 sps:$4 sm:$0xff]  }
  0x36   : > { %1064 = vmatpush2.bf16.msra.mxu0 %v2829_v23  ;;  %2766 = vmatpush2.bf16.msra.mxu1 %v2829_v23  ;;  %v3336_v23 = vld [vmem:[%s3096_s20 + $0xc0] ss:$8 sps:$4 sm:$0xff]  }
  0x37   : > { %1065 = vmatprep.subr.bf16.mxu0 %v2830_v24  ;;  %2751 = vmatprep.subr.bf16.mxu1 %v2830_v24  ;;  %v2923_v24 = vld [vmem:[%s3851_s1 + $0x2d8] ss:$24 sps:$4 sm:$0xff]  }
  0x3a   : > { %1066 = vmatpush2.bf16.msra.mxu0 %v2832_v25  ;;  %2767 = vmatpush2.bf16.msra.mxu1 %v2832_v25  ;;  %v2926_v25 = vld [vmem:[%s3851_s1 + $0x2e0] ss:$24 sps:$4 sm:$0xff]  }
  0x3b   : > { %1067 = vmatprep.subr.bf16.mxu0 %v2833_v26  ;;  %2752 = vmatprep.subr.bf16.mxu1 %v2833_v26  ;;  %v2931_v26 = vld [vmem:[%s3851_s1 + $0x2ac] ss:$24 sps:$4 sm:$0xff]  }
  0x3e   : > { %1068 = vmatpush2.bf16.msra.mxu0 %v2835_v27  ;;  %2768 = vmatpush2.bf16.msra.mxu1 %v2835_v27  ;;  %v2934_v27 = vld [vmem:[%s3851_s1 + $0x2b4] ss:$24 sps:$4 sm:$0xff]  }
  0x3f   : > { %1069 = vmatprep.subr.bf16.mxu0 %v2836_v28  ;;  %2753 = vmatprep.subr.bf16.mxu1 %v2836_v28  ;;  %v3351_v28 = vld [vmem:[%s3096_s20 + $0x54] ss:$8 sps:$4 sm:$0xff]  }
  0x42   : > { %1070 = vmatpush2.bf16.msra.mxu0 %v2838_v29  ;;  %2769 = vmatpush2.bf16.msra.mxu1 %v2838_v29  ;;  %v3354_v29 = vld [vmem:[%s3096_s20 + $0xd4] ss:$8 sps:$4 sm:$0xff]  }
  0x43   : > { %1071 = vmatprep.subr.bf16.mxu0 %v2839_v30  ;;  %2754 = vmatprep.subr.bf16.mxu1 %v2839_v30  ;;  %v2929_v30 = vld [vmem:[%s3851_s1 + $0x2a8] ss:$24 sps:$4 sm:$0xff]  }
  0x46   : > { %1072 = vmatpush2.bf16.msra.mxu0 %v2841_v31  ;;  %2770 = vmatpush2.bf16.msra.mxu1 %v2841_v31  ;;  %v2932_v31 = vld [vmem:[%s3851_s1 + $0x2b0] ss:$24 sps:$4 sm:$0xff]  }
  0x47   : > { %1073 = vmatprep.subr.bf16.mxu0 %v2842_v32  ;;  %2755 = vmatprep.subr.bf16.mxu1 %v2842_v32  ;;  %v2943_v32 = vld [vmem:[%s3851_s1 + $0x27c] ss:$24 sps:$4 sm:$0xff]  }
  0x4a   : > { %1074 = vmatpush2.bf16.msra.mxu0 %v2844_v33  ;;  %2771 = vmatpush2.bf16.msra.mxu1 %v2844_v33  ;;  %v2946_v33 = vld [vmem:[%s3851_s1 + $0x284] ss:$24 sps:$4 sm:$0xff]  }
  0x4b   : > { %1236 = vmatprep.subr.bf16.mxu1 %v2853_v34  ;;  %1429 = vmatprep.subr.bf16.mxu0 %v2856_v36  ;;  %v3373_v34 = vld [vmem:[%s3096_s20 + $0x50] ss:$8 sps:$4 sm:$0xff]  }
  0x4c   : > { %v3376_v36 = vld [vmem:[%s3096_s20 + $0xd0] ss:$8 sps:$4 sm:$0xff]  }
  0x4d   : > { %1076 = vmatmul.mubr.bf16.vlgmr.msra.gmra.mxu0 %v3170_v35  ;;  %1156 = vmatmul.mubr.bf16.vlgmr.msra.gmra.mxu1 %v3176_v37 }
  0x4e   : > { %1237 = vmatpush1.bf16.msra.mxu1 %v2851_v38  ;;  %1430 = vmatpush1.bf16.msra.mxu0 %v2854_v39  ;;  %v2941_v38 = vld [vmem:[%s3851_s1 + $0x278] ss:$24 sps:$4 sm:$0xff]  }
  0x4f   : > { %1238 = vmatprep.subr.bf16.mxu1 %v2859_v40  ;;  %1431 = vmatprep.subr.bf16.mxu0 %v2862_v41  ;;  %v2944_v39 = vld [vmem:[%s3851_s1 + $0x280] ss:$24 sps:$4 sm:$0xff]   ;;  %v2949_v40 = vld [vmem:[%s3851_s1 + $0x24c] ss:$24 sps:$4 sm:$0xff]  }
  0x50   : > { %1085 = vmatprep.mubr.bf16.mxu0 %v3191_v42  ;;  %1165 = vmatprep.mubr.bf16.mxu1 %v3194_v43  ;;  %v2952_v41 = vld [vmem:[%s3851_s1 + $0x254] ss:$24 sps:$4 sm:$0xff]  }
  0x52   : > { %1239 = vmatpush1.bf16.msra.mxu1 %v2857_v44  ;;  %1432 = vmatpush1.bf16.msra.mxu0 %v2860_v45  ;;  %v3391_v44 = vld [vmem:[%s3096_s20 + $0x64] ss:$8 sps:$4 sm:$0xff]  }
  0x53   : > { %1240 = vmatprep.subr.bf16.mxu1 %v2871_v46  ;;  %1433 = vmatprep.subr.bf16.mxu0 %v2874_v48  ;;  %v3394_v45 = vld [vmem:[%s3096_s20 + $0xe4] ss:$8 sps:$4 sm:$0xff]   ;;  %v2947_v46 = vld [vmem:[%s3851_s1 + $0x248] ss:$24 sps:$4 sm:$0xff]  }
  0x54   : > { %v2950_v48 = vld [vmem:[%s3851_s1 + $0x250] ss:$24 sps:$4 sm:$0xff]  }
  0x55   : > { %1086 = vmatmul.mubr.bf16.gmra.mxu0 %v3208_v47  ;;  %1166 = vmatmul.mubr.bf16.gmra.mxu1 %v3216_v49 }
  0x56   : > { %1241 = vmatpush1.bf16.msra.mxu1 %v2869_v50  ;;  %1434 = vmatpush1.bf16.msra.mxu0 %v2872_v51  ;;  %v2961_v50 = vld [vmem:[%s3851_s1 + $0x21c] ss:$24 sps:$4 sm:$0xff]  }
  0x57   : > { %1242 = vmatprep.subr.bf16.mxu1 %v2877_v52  ;;  %1435 = vmatprep.subr.bf16.mxu0 %v2880_v53  ;;  %v2964_v51 = vld [vmem:[%s3851_s1 + $0x224] ss:$24 sps:$4 sm:$0xff]   ;;  %v3413_v52 = vld [vmem:[%s3096_s20 + $0x60] ss:$8 sps:$4 sm:$0xff]  }
  0x58   : > { %1095 = vmatprep.mubr.bf16.mxu0 %v3231_v54  ;;  %1175 = vmatprep.mubr.bf16.mxu1 %v3234_v55  ;;  %v3416_v53 = vld [vmem:[%s3096_s20 + $0xe0] ss:$8 sps:$4 sm:$0xff]  }
  0x5a   : > { %1243 = vmatpush1.bf16.msra.mxu1 %v2875_v56  ;;  %1436 = vmatpush1.bf16.msra.mxu0 %v2878_v57  ;;  %v2959_v56 = vld [vmem:[%s3851_s1 + $0x218] ss:$24 sps:$4 sm:$0xff]  }
  0x5b   : > { %1244 = vmatprep.subr.bf16.mxu1 %v2889_v58  ;;  %1437 = vmatprep.subr.bf16.mxu0 %v2892_v60  ;;  %v2962_v57 = vld [vmem:[%s3851_s1 + $0x220] ss:$24 sps:$4 sm:$0xff]   ;;  %v2967_v58 = vld [vmem:[%s3851_s1 + $0x1ec] ss:$24 sps:$4 sm:$0xff]  }
  0x5c   : > { %v2970_v60 = vld [vmem:[%s3851_s1 + $0x1f4] ss:$24 sps:$4 sm:$0xff]  }
  0x5d   : > { %1096 = vmatmul.mubr.bf16.gmra.mxu0 %v3248_v59  ;;  %1176 = vmatmul.mubr.bf16.gmra.mxu1 %v3256_v61 }
  0x5e   : > { %1245 = vmatpush1.bf16.msra.mxu1 %v2887_v62  ;;  %1438 = vmatpush1.bf16.msra.mxu0 %v2890_v63  ;;  %v2971_v62 = vld [vmem:[%s3096_s20 + $0x74] ss:$8 sps:$4 sm:$0xff]  }
  0x5f   : > { %1246 = vmatprep.subr.bf16.mxu1 %v2895_v0  ;;  %1439 = vmatprep.subr.bf16.mxu0 %v2898_v1  ;;  %v3432_v63 = vld [vmem:[%s3096_s20 + $0xf4] ss:$8 sps:$4 sm:$0xff]   ;;  %v2965_v0 = vld [vmem:[%s3851_s1 + $0x1e8] ss:$24 sps:$4 sm:$0xff]  }
  0x60   : > { %1105 = vmatprep.mubr.bf16.mxu0 %v3271_v2  ;;  %1185 = vmatprep.mubr.bf16.mxu1 %v3274_v3  ;;  %v2968_v1 = vld [vmem:[%s3851_s1 + $0x1f0] ss:$24 sps:$4 sm:$0xff]  }
  0x62   : > { %1247 = vmatpush1.bf16.msra.mxu1 %v2893_v4  ;;  %1440 = vmatpush1.bf16.msra.mxu0 %v2896_v5  ;;  %v2979_v4 = vld [vmem:[%s3851_s1 + $0x1bc] ss:$24 sps:$4 sm:$0xff]  }
  0x63   : > { %1248 = vmatprep.subr.bf16.mxu1 %v2907_v6  ;;  %1441 = vmatprep.subr.bf16.mxu0 %v2910_v7  ;;  %v2982_v5 = vld [vmem:[%s3851_s1 + $0x1c4] ss:$24 sps:$4 sm:$0xff]   ;;  %v2975_v6 = vld [vmem:[%s3096_s20 + $0x70] ss:$8 sps:$4 sm:$0xff]  }
  0x64   : > { %v3451_v7 = vld [vmem:[%s3096_s20 + $0xf0] ss:$8 sps:$4 sm:$0xff]  }
  0x65   : > { %1106 = vmatmul.mubr.bf16.gmra.mxu0 %v3293_v8  ;;  %1186 = vmatmul.mubr.bf16.gmra.mxu1 %v3296_v9 }
  0x66   : > { %1249 = vmatpush1.bf16.msra.mxu1 %v2905_v10  ;;  %1442 = vmatpush1.bf16.msra.mxu0 %v2908_v11  ;;  %v2977_v10 = vld [vmem:[%s3851_s1 + $0x1b8] ss:$24 sps:$4 sm:$0xff]  }
  0x67   : > { %1250 = vmatprep.subr.bf16.mxu1 %v2913_v12  ;;  %1443 = vmatprep.subr.bf16.mxu0 %v2916_v14  ;;  %v2980_v11 = vld [vmem:[%s3851_s1 + $0x1c0] ss:$24 sps:$4 sm:$0xff]   ;;  %v2985_v12 = vld [vmem:[%s3851_s1 + $0x18c] ss:$24 sps:$4 sm:$0xff]  }
  0x68   : > { %1115 = vmatprep.mubr.bf16.mxu0 %v3311_v16  ;;  %1195 = vmatprep.mubr.bf16.mxu1 %v3314_v17  ;;  %v2988_v14 = vld [vmem:[%s3851_s1 + $0x194] ss:$24 sps:$4 sm:$0xff]  }
  0x6a   : > { %1251 = vmatpush1.bf16.msra.mxu1 %v2911_v18  ;;  %1444 = vmatpush1.bf16.msra.mxu0 %v2914_v19  ;;  %v2983_v18 = vld [vmem:[%s3851_s1 + $0x188] ss:$24 sps:$4 sm:$0xff]  }
  0x6b   : > { %1252 = vmatprep.subr.bf16.mxu1 %v2925_v20  ;;  %1445 = vmatprep.subr.bf16.mxu0 %v2928_v21  ;;  %v2986_v19 = vld [vmem:[%s3851_s1 + $0x190] ss:$24 sps:$4 sm:$0xff]  }
  0x6d   : > { %1116 = vmatmul.mubr.bf16.gmra.mxu0 %v3333_v22  ;;  %1196 = vmatmul.mubr.bf16.gmra.mxu1 %v3336_v23 }
  0x6e   : > { %1253 = vmatpush2.bf16.msra.mxu1 %v2923_v24  ;;  %1446 = vmatpush2.bf16.msra.mxu0 %v2926_v25 }
  0x6f   : > { %1254 = vmatprep.subr.bf16.mxu1 %v2931_v26  ;;  %1447 = vmatprep.subr.bf16.mxu0 %v2934_v27 }
  0x70   : > { %1125 = vmatprep.mubr.bf16.mxu0 %v3351_v28  ;;  %1205 = vmatprep.mubr.bf16.mxu1 %v3354_v29 }
  0x72   : > { %1255 = vmatpush2.bf16.msra.mxu1 %v2929_v30  ;;  %1448 = vmatpush2.bf16.msra.mxu0 %v2932_v31 }
  0x73   : > { %1256 = vmatprep.subr.bf16.mxu1 %v2943_v32  ;;  %1449 = vmatprep.subr.bf16.mxu0 %v2946_v33 }
  0x75   : > { %1126 = vmatmul.mubr.bf16.gmra.mxu0 %v3373_v34  ;;  %1206 = vmatmul.mubr.bf16.gmra.mxu1 %v3376_v36 }
  0x76   : > { %1257 = vmatpush2.bf16.msra.mxu1 %v2941_v38  ;;  %1450 = vmatpush2.bf16.msra.mxu0 %v2944_v39 }
  0x77   : > { %1258 = vmatprep.subr.bf16.mxu1 %v2949_v40  ;;  %1451 = vmatprep.subr.bf16.mxu0 %v2952_v41 }
  0x78   : > { %1135 = vmatprep.mubr.bf16.mxu0 %v3391_v44  ;;  %1215 = vmatprep.mubr.bf16.mxu1 %v3394_v45 }
  0x7a   : > { %1259 = vmatpush2.bf16.msra.mxu1 %v2947_v46  ;;  %1452 = vmatpush2.bf16.msra.mxu0 %v2950_v48 }
  0x7b   : > { %1260 = vmatprep.subr.bf16.mxu1 %v2961_v50  ;;  %1453 = vmatprep.subr.bf16.mxu0 %v2964_v51 }
  0x7d   : > { %1136 = vmatmul.mubr.bf16.gmra.mxu0 %v3413_v52  ;;  %1216 = vmatmul.mubr.bf16.gmra.mxu1 %v3416_v53 }
  0x7e   : > { %1261 = vmatpush2.bf16.msra.mxu1 %v2959_v56  ;;  %1454 = vmatpush2.bf16.msra.mxu0 %v2962_v57 }
  0x7f   : > { %1262 = vmatprep.subr.bf16.mxu1 %v2967_v58  ;;  %1455 = vmatprep.subr.bf16.mxu0 %v2970_v60 }
  0x80   : > { %1145 = vmatprep.mubr.bf16.mxu0 %v2971_v62  ;;  %1225 = vmatprep.mubr.bf16.mxu1 %v3432_v63 }
  0x82   : > { %1263 = vmatpush2.bf16.msra.mxu1 %v2965_v0  ;;  %1456 = vmatpush2.bf16.msra.mxu0 %v2968_v1 }
  0x83   : > { %1264 = vmatprep.subr.bf16.mxu1 %v2979_v4  ;;  %1457 = vmatprep.subr.bf16.mxu0 %v2982_v5 }
  0x85   : > { %1146 = vmatmul.mubr.bf16.gmra.mxu0 %v2975_v6  ;;  %1226 = vmatmul.mubr.bf16.gmra.mxu1 %v3451_v7 }
  0x86   : > { %1265 = vmatpush2.bf16.msra.mxu1 %v2977_v10  ;;  %1458 = vmatpush2.bf16.msra.mxu0 %v2980_v11 }
  0x87   : > { %1266 = vmatprep.subr.bf16.mxu1 %v2985_v12  ;;  %1459 = vmatprep.subr.bf16.mxu0 %v2988_v14 }
  0x88   : > { %1268 = vmatprep.mubr.bf16.mxu1 %v3102_v13  ;;  %1461 = vmatprep.mubr.bf16.mxu0 %v3102_v13  ;;  %v373_v13 = vlaneseq }
  0x8a   : > { %1267 = vmatpush2.bf16.msra.mxu1 %v2983_v18  ;;  %1460 = vmatpush2.bf16.msra.mxu0 %v2986_v19 }
  0x8d   : > { %1269 = vmatmul.mubr.bf16.vlgmr.msra.gmra.mxu1 %v3170_v35  ;;  %1462 = vmatmul.mubr.bf16.vlgmr.msra.gmra.mxu0 %v3170_v35  ;;  %v374_v35 = vshrl.u32 %v373_v13, 7 }
  0x8e   : > { %1278 = vmatprep.mubr.bf16.mxu1 %v3191_v42  ;;  %1471 = vmatprep.mubr.bf16.mxu0 %v3191_v42 }
  0x8f   : > { %v383_v42 = vsub.s32 2, %v374_v35 }
  0x95   : > { %1279 = vmatmul.mubr.bf16.gmra.mxu1 %v3208_v47  ;;  %1472 = vmatmul.mubr.bf16.gmra.mxu0 %v3208_v47  ;;  %v391_v47 = vsub.s32 4, %v374_v35 }
  0x96   : > { %1288 = vmatprep.mubr.bf16.mxu1 %v3231_v54  ;;  %1481 = vmatprep.mubr.bf16.mxu0 %v3231_v54  ;;  %v371_v54 = vld [vmem:[%s3852_s2] sm:$0x3f] }
  0x9d   : > { %1289 = vmatmul.mubr.bf16.gmra.mxu1 %v3248_v59  ;;  %1482 = vmatmul.mubr.bf16.gmra.mxu0 %v3248_v59  ;;  %v3505_v59 = vrot.slane %v371_v54, %v383_v42 }
  0x9e   : > { %1298 = vmatprep.mubr.bf16.mxu1 %v3271_v2  ;;  %1491 = vmatprep.mubr.bf16.mxu0 %v3271_v2  ;;  %v3507_v2 = vrot.slane %v371_v54, %v391_v47 }
  0xa5   : > { %1299 = vmatmul.mubr.bf16.gmra.mxu1 %v3293_v8  ;;  %1492 = vmatmul.mubr.bf16.gmra.mxu0 %v3293_v8  ;;  %v387_v8 = vsub.s32 3, %v374_v35 }
  0xa6   : > { %1308 = vmatprep.mubr.bf16.mxu1 %v3311_v16  ;;  %1501 = vmatprep.mubr.bf16.mxu0 %v3311_v16  ;;  %v395_v16 = vsub.s32 5, %v374_v35 }
  0xa8   : > { %v3515_v20 = vrot.slane %v371_v54, %v395_v16 }
  0xad   : > { %1309 = vmatmul.mubr.bf16.gmra.mxu1 %v3333_v22  ;;  %1502 = vmatmul.mubr.bf16.gmra.mxu0 %v3333_v22 }
  0xae   : > { %1318 = vmatprep.mubr.bf16.mxu1 %v3351_v28  ;;  %1511 = vmatprep.mubr.bf16.mxu0 %v3351_v28 }
  0xb5   : > { %1319 = vmatmul.mubr.bf16.gmra.mxu1 %v3373_v34  ;;  %1512 = vmatmul.mubr.bf16.gmra.mxu0 %v3373_v34 }
  0xb6   : > { %1328 = vmatprep.mubr.bf16.mxu1 %v3391_v44  ;;  %1521 = vmatprep.mubr.bf16.mxu0 %v3391_v44 }
  0xbd   : > { %1329 = vmatmul.mubr.bf16.gmra.mxu1 %v3413_v52  ;;  %1522 = vmatmul.mubr.bf16.gmra.mxu0 %v3413_v52 }
  0xbe   : > { %1338 = vmatprep.mubr.bf16.mxu1 %v2971_v62  ;;  %1531 = vmatprep.mubr.bf16.mxu0 %v2971_v62 }
  0xc5   : > { %1339 = vmatmul.mubr.bf16.gmra.mxu1 %v2975_v6  ;;  %1532 = vmatmul.mubr.bf16.gmra.mxu0 %v2975_v6 }
  0xc6   : > { %1348 = vmatprep.mubr.bf16.mxu1 %v3108_v15  ;;  %1541 = vmatprep.mubr.bf16.mxu0 %v3108_v15  ;;  %v3513_v15 = vrot.slane %v371_v54, %v387_v8 }
  0xcd   : > { %1349 = vmatmul.mubr.bf16.gmra.mxu1 %v3176_v37  ;;  %1542 = vmatmul.mubr.bf16.gmra.mxu0 %v3176_v37  ;;  %v375_v37 = vsub.s32 0, %v374_v35 }
  0xce   : > { %1358 = vmatprep.mubr.bf16.mxu1 %v3194_v43  ;;  %1551 = vmatprep.mubr.bf16.mxu0 %v3194_v43  ;;  %v379_v43 = vsub.s32 1, %v374_v35 }
  0xd5   : > { %1359 = vmatmul.mubr.bf16.gmra.mxu1 %v3216_v49  ;;  %1552 = vmatmul.mubr.bf16.gmra.mxu0 %v3216_v49  ;;  %v3543_v49 = vrot.slane %v371_v54, %v375_v37 }
  0xd6   : > { %1368 = vmatprep.mubr.bf16.mxu1 %v3234_v55  ;;  %1561 = vmatprep.mubr.bf16.mxu0 %v3234_v55  ;;  %v3545_v55 = vrot.slane %v371_v54, %v379_v43 }
  0xdd   : > { %1369 = vmatmul.mubr.bf16.gmra.mxu1 %v3256_v61  ;;  %1562 = vmatmul.mubr.bf16.gmra.mxu0 %v3256_v61 }
  0xde   : > { %1378 = vmatprep.mubr.bf16.mxu1 %v3274_v3  ;;  %1571 = vmatprep.mubr.bf16.mxu0 %v3274_v3 }
  0xe5   : > { %1379 = vmatmul.mubr.bf16.gmra.mxu1 %v3296_v9  ;;  %1572 = vmatmul.mubr.bf16.gmra.mxu0 %v3296_v9 }
  0xe6   : > { %1388 = vmatprep.mubr.bf16.mxu1 %v3314_v17  ;;  %1581 = vmatprep.mubr.bf16.mxu0 %v3314_v17 }
  0xed   : > { %1389 = vmatmul.mubr.bf16.gmra.mxu1 %v3336_v23  ;;  %1582 = vmatmul.mubr.bf16.gmra.mxu0 %v3336_v23 }
  0xee   : > { %1398 = vmatprep.mubr.bf16.mxu1 %v3354_v29  ;;  %1591 = vmatprep.mubr.bf16.mxu0 %v3354_v29 }
  0xf5   : > { %1399 = vmatmul.mubr.bf16.gmra.mxu1 %v3376_v36  ;;  %1592 = vmatmul.mubr.bf16.gmra.mxu0 %v3376_v36 }
  0xf6   : > { %1408 = vmatprep.mubr.bf16.mxu1 %v3394_v45  ;;  %1601 = vmatprep.mubr.bf16.mxu0 %v3394_v45 }
  0xfd   : > { %1409 = vmatmul.mubr.bf16.gmra.mxu1 %v3416_v53  ;;  %1602 = vmatmul.mubr.bf16.gmra.mxu0 %v3416_v53 }
  0xfe   : > { %1418 = vmatprep.mubr.bf16.mxu1 %v3432_v63  ;;  %1611 = vmatprep.mubr.bf16.mxu0 %v3432_v63 }
 0x105   : > { %1419 = vmatmul.mubr.bf16.gmra.mxu1 %v3451_v7  ;;  %1612 = vmatmul.mubr.bf16.gmra.mxu0 %v3451_v7 }
 0x10d   : > { %v1077_v61 = vpop.f32.mrf.mxu0  ;;  %v1157_v3 = vpop.f32.mrf.mxu1 }
 0x10e   : > { %v1078_v21 = vadd.f32 %v1077_v61, %v3543_v49  ;;  %v1158_v22 = vadd.f32 %v1157_v3, %v3543_v49 }
 0x10f   : > { %v1079_v9 = vpop.f32.mrf.mxu0  ;;  %v1159_v17 = vpop.f32.mrf.mxu1 }
 0x110   : > { %v1080_v23 = vadd.f32 %v1079_v9, %v3545_v55  ;;  %v1160_v24 = vadd.f32 %v1159_v17, %v3545_v55 }
 0x111   : > { %v1081_v25 = vpop.f32.mrf.mxu0  ;;  %v1161_v26 = vpop.f32.mrf.mxu1 }
 0x112   : > { %v2644_v27 = vpack.c.bf16 %v1080_v23, %v1078_v21  ;;  %v2692_v28 = vpack.c.bf16 %v1160_v24, %v1158_v22  ;;  %v1082_v31 = vadd.f32 %v1081_v25, %v3543_v49  ;;  %v1162_v32 = vadd.f32 %v1161_v26, %v3543_v49 }
 0x113   : > { %v1083_v29 = vpop.f32.mrf.mxu0  ;;  %v1163_v30 = vpop.f32.mrf.mxu1 }
 0x114   : > { %2198 = vst [vmem:[%s3555_s16] sm:$0xff] %v2644_v27  ;;  %2246 = vst [vmem:[%s3555_s16 + $0x180] sm:$0xff] %v2692_v28  ;;  %v1084_v33 = vadd.f32 %v1083_v29, %v3545_v55  ;;  %v1164_v34 = vadd.f32 %v1163_v30, %v3545_v55 }
 0x115   : > { %v1087_v36 = vpop.f32.mrf.mxu0  ;;  %v1167_v38 = vpop.f32.mrf.mxu1 }
 0x116   : > { %v2647_v39 = vpack.c.bf16 %v1084_v33, %v1082_v31  ;;  %v2695_v40 = vpack.c.bf16 %v1164_v34, %v1162_v32  ;;  %v1088_v45 = vadd.f32 %v1087_v36, %v3543_v49  ;;  %v1168_v46 = vadd.f32 %v1167_v38, %v3543_v49 }
 0x117   : > { %v1089_v41 = vpop.f32.mrf.mxu0  ;;  %v1169_v44 = vpop.f32.mrf.mxu1 }
 0x118   : > { %2201 = vst [vmem:[%s3555_s16 + $0x18] sm:$0xff] %v2647_v39  ;;  %2249 = vst [vmem:[%s3555_s16 + $0x198] sm:$0xff] %v2695_v40  ;;  %v1090_v48 = vadd.f32 %v1089_v41, %v3545_v55  ;;  %v1170_v50 = vadd.f32 %v1169_v44, %v3545_v55 }
 0x119   : > { %v1091_v51 = vpop.f32.mrf.mxu0  ;;  %v1171_v52 = vpop.f32.mrf.mxu1 }
 0x11a   : > { %v2650_v53 = vpack.c.bf16 %v1090_v48, %v1088_v45  ;;  %v2698_v56 = vpack.c.bf16 %v1170_v50, %v1168_v46  ;;  %v1092_v60 = vadd.f32 %v1091_v51, %v3543_v49  ;;  %v1172_v62 = vadd.f32 %v1171_v52, %v3543_v49 }
 0x11b   : > { %v1093_v57 = vpop.f32.mrf.mxu0  ;;  %v1173_v58 = vpop.f32.mrf.mxu1 }
 0x11c   : > { %2204 = vst [vmem:[%s3555_s16 + $0x30] sm:$0xff] %v2650_v53  ;;  %2252 = vst [vmem:[%s3555_s16 + $0x1b0] sm:$0xff] %v2698_v56  ;;  %v1094_v63 = vadd.f32 %v1093_v57, %v3545_v55  ;;  %v1174_v0 = vadd.f32 %v1173_v58, %v3545_v55 }
 0x11d   : > { %v1097_v1 = vpop.f32.mrf.mxu0  ;;  %v1177_v4 = vpop.f32.mrf.mxu1 }
 0x11e   : > { %v2653_v5 = vpack.c.bf16 %v1094_v63, %v1092_v60  ;;  %v2701_v6 = vpack.c.bf16 %v1174_v0, %v1172_v62  ;;  %v1098_v11 = vadd.f32 %v1097_v1, %v3543_v49  ;;  %v1178_v12 = vadd.f32 %v1177_v4, %v3543_v49 }
 0x11f   : > { %v1099_v7 = vpop.f32.mrf.mxu0  ;;  %v1179_v10 = vpop.f32.mrf.mxu1 }
 0x120   : > { %2207 = vst [vmem:[%s3555_s16 + $0x48] sm:$0xff] %v2653_v5  ;;  %2255 = vst [vmem:[%s3555_s16 + $0x1c8] sm:$0xff] %v2701_v6  ;;  %v1100_v14 = vadd.f32 %v1099_v7, %v3545_v55  ;;  %v1180_v18 = vadd.f32 %v1179_v10, %v3545_v55 }
 0x121   : > { %v1101_v19 = vpop.f32.mrf.mxu0  ;;  %v1181_v13 = vpop.f32.mrf.mxu1 }
 0x122   : > { %v2656_v35 = vpack.c.bf16 %v1100_v14, %v1098_v11  ;;  %v2704_v42 = vpack.c.bf16 %v1180_v18, %v1178_v12  ;;  %v1102_v8 = vadd.f32 %v1101_v19, %v3543_v49  ;;  %v1182_v16 = vadd.f32 %v1181_v13, %v3543_v49 }
 0x123   : > { %v1103_v47 = vpop.f32.mrf.mxu0  ;;  %v1183_v54 = vpop.f32.mrf.mxu1 }
 0x124   : > { %2210 = vst [vmem:[%s3555_s16 + $0x60] sm:$0xff] %v2656_v35  ;;  %2258 = vst [vmem:[%s3555_s16 + $0x1e0] sm:$0xff] %v2704_v42  ;;  %v1104_v37 = vadd.f32 %v1103_v47, %v3545_v55  ;;  %v1184_v43 = vadd.f32 %v1183_v54, %v3545_v55 }
 0x125   : > { %v1107_v61 = vpop.f32.mrf.mxu0  ;;  %v1187_v3 = vpop.f32.mrf.mxu1 }
 0x126   : > { %v2659_v9 = vpack.c.bf16 %v1104_v37, %v1102_v8  ;;  %v2707_v17 = vpack.c.bf16 %v1184_v43, %v1182_v16  ;;  %v1108_v23 = vadd.f32 %v1107_v61, %v3543_v49  ;;  %v1188_v24 = vadd.f32 %v1187_v3, %v3543_v49 }
 0x127   : > { %v1109_v21 = vpop.f32.mrf.mxu0  ;;  %v1189_v22 = vpop.f32.mrf.mxu1 }
 0x128   : > { %2213 = vst [vmem:[%s3555_s16 + $0x78] sm:$0xff] %v2659_v9  ;;  %2261 = vst [vmem:[%s3555_s16 + $0x1f8] sm:$0xff] %v2707_v17  ;;  %v1110_v25 = vadd.f32 %v1109_v21, %v3545_v55  ;;  %v1190_v26 = vadd.f32 %v1189_v22, %v3545_v55 }
 0x129   : > { %v1111_v27 = vpop.f32.mrf.mxu0  ;;  %v1191_v28 = vpop.f32.mrf.mxu1 }
 0x12a   : > { %v2662_v29 = vpack.c.bf16 %v1110_v25, %v1108_v23  ;;  %v2710_v30 = vpack.c.bf16 %v1190_v26, %v1188_v24  ;;  %v1112_v33 = vadd.f32 %v1111_v27, %v3543_v49  ;;  %v1192_v34 = vadd.f32 %v1191_v28, %v3543_v49 }
 0x12b   : > { %v1113_v31 = vpop.f32.mrf.mxu0  ;;  %v1193_v32 = vpop.f32.mrf.mxu1 }
 0x12c   : > { %2216 = vst [vmem:[%s3555_s16 + $0x90] sm:$0xff] %v2662_v29  ;;  %2264 = vst [vmem:[%s3555_s16 + $0x210] sm:$0xff] %v2710_v30  ;;  %v1114_v36 = vadd.f32 %v1113_v31, %v3545_v55  ;;  %v1194_v38 = vadd.f32 %v1193_v32, %v3545_v55 }
 0x12d   : > { %v1117_v39 = vpop.f32.mrf.mxu0  ;;  %v1197_v40 = vpop.f32.mrf.mxu1 }
 0x12e   : > { %v2665_v41 = vpack.c.bf16 %v1114_v36, %v1112_v33  ;;  %v2713_v44 = vpack.c.bf16 %v1194_v38, %v1192_v34  ;;  %v1118_v48 = vadd.f32 %v1117_v39, %v3543_v49  ;;  %v1198_v50 = vadd.f32 %v1197_v40, %v3543_v49 }
 0x12f   : > { %v1119_v45 = vpop.f32.mrf.mxu0  ;;  %v1199_v46 = vpop.f32.mrf.mxu1 }
 0x130   : > { %2219 = vst [vmem:[%s3555_s16 + $0xa8] sm:$0xff] %v2665_v41  ;;  %2267 = vst [vmem:[%s3555_s16 + $0x228] sm:$0xff] %v2713_v44  ;;  %v1120_v51 = vadd.f32 %v1119_v45, %v3545_v55  ;;  %v1200_v52 = vadd.f32 %v1199_v46, %v3545_v55 }
 0x131   : > { %v1121_v53 = vpop.f32.mrf.mxu0  ;;  %v1201_v56 = vpop.f32.mrf.mxu1 }
 0x132   : > { %v2668_v57 = vpack.c.bf16 %v1120_v51, %v1118_v48  ;;  %v2716_v58 = vpack.c.bf16 %v1200_v52, %v1198_v50  ;;  %v1122_v63 = vadd.f32 %v1121_v53, %v3543_v49  ;;  %v1202_v0 = vadd.f32 %v1201_v56, %v3543_v49 }
 0x133   : > { %v1123_v60 = vpop.f32.mrf.mxu0  ;;  %v1203_v62 = vpop.f32.mrf.mxu1 }
 0x134   : > { %2222 = vst [vmem:[%s3555_s16 + $0xc0] sm:$0xff] %v2668_v57  ;;  %2270 = vst [vmem:[%s3555_s16 + $0x240] sm:$0xff] %v2716_v58  ;;  %v1124_v1 = vadd.f32 %v1123_v60, %v3545_v55  ;;  %v1204_v4 = vadd.f32 %v1203_v62, %v3545_v55 }
 0x135   : > { %v1127_v5 = vpop.f32.mrf.mxu0  ;;  %v1207_v6 = vpop.f32.mrf.mxu1 }
 0x136   : > { %v2671_v7 = vpack.c.bf16 %v1124_v1, %v1122_v63  ;;  %v2719_v10 = vpack.c.bf16 %v1204_v4, %v1202_v0  ;;  %v1128_v14 = vadd.f32 %v1127_v5, %v3543_v49  ;;  %v1208_v18 = vadd.f32 %v1207_v6, %v3543_v49 }
 0x137   : > { %v1129_v11 = vpop.f32.mrf.mxu0  ;;  %v1209_v12 = vpop.f32.mrf.mxu1 }
 0x138   : > { %2225 = vst [vmem:[%s3555_s16 + $0xd8] sm:$0xff] %v2671_v7  ;;  %2273 = vst [vmem:[%s3555_s16 + $0x258] sm:$0xff] %v2719_v10  ;;  %v1130_v19 = vadd.f32 %v1129_v11, %v3545_v55  ;;  %v1210_v13 = vadd.f32 %v1209_v12, %v3545_v55 }
 0x139   : > { %v1131_v35 = vpop.f32.mrf.mxu0  ;;  %v1211_v42 = vpop.f32.mrf.mxu1 }
 0x13a   : > { %v2674_v47 = vpack.c.bf16 %v1130_v19, %v1128_v14  ;;  %v2722_v54 = vpack.c.bf16 %v1210_v13, %v1208_v18  ;;  %v1132_v37 = vadd.f32 %v1131_v35, %v3543_v49  ;;  %v1212_v43 = vadd.f32 %v1211_v42, %v3543_v49 }
 0x13b   : > { %v1133_v8 = vpop.f32.mrf.mxu0  ;;  %v1213_v16 = vpop.f32.mrf.mxu1 }
 0x13c   : > { %2228 = vst [vmem:[%s3555_s16 + $0xf0] sm:$0xff] %v2674_v47  ;;  %2276 = vst [vmem:[%s3555_s16 + $0x270] sm:$0xff] %v2722_v54  ;;  %v1134_v61 = vadd.f32 %v1133_v8, %v3545_v55  ;;  %v1214_v3 = vadd.f32 %v1213_v16, %v3545_v55 }
 0x13d   : > { %v1137_v9 = vpop.f32.mrf.mxu0  ;;  %v1217_v17 = vpop.f32.mrf.mxu1 }
 0x13e   : > { %v2677_v21 = vpack.c.bf16 %v1134_v61, %v1132_v37  ;;  %v2725_v22 = vpack.c.bf16 %v1214_v3, %v1212_v43  ;;  %v1138_v25 = vadd.f32 %v1137_v9, %v3543_v49  ;;  %v1218_v26 = vadd.f32 %v1217_v17, %v3543_v49 }
 0x13f   : > { %v1139_v23 = vpop.f32.mrf.mxu0  ;;  %v1219_v24 = vpop.f32.mrf.mxu1 }
 0x140   : > { %2231 = vst [vmem:[%s3555_s16 + $0x108] sm:$0xff] %v2677_v21  ;;  %2279 = vst [vmem:[%s3555_s16 + $0x288] sm:$0xff] %v2725_v22  ;;  %v1140_v27 = vadd.f32 %v1139_v23, %v3545_v55  ;;  %v1220_v28 = vadd.f32 %v1219_v24, %v3545_v55 }
 0x141   : > { %v1141_v29 = vpop.f32.mrf.mxu0  ;;  %v1221_v30 = vpop.f32.mrf.mxu1 }
 0x142   : > { %v2680_v31 = vpack.c.bf16 %v1140_v27, %v1138_v25  ;;  %v2728_v32 = vpack.c.bf16 %v1220_v28, %v1218_v26  ;;  %v1142_v36 = vadd.f32 %v1141_v29, %v3543_v49  ;;  %v1222_v38 = vadd.f32 %v1221_v30, %v3543_v49 }
 0x143   : > { %v1143_v33 = vpop.f32.mrf.mxu0  ;;  %v1223_v34 = vpop.f32.mrf.mxu1 }
 0x144   : > { %2234 = vst [vmem:[%s3555_s16 + $0x120] sm:$0xff] %v2680_v31  ;;  %2282 = vst [vmem:[%s3555_s16 + $0x2a0] sm:$0xff] %v2728_v32  ;;  %v1144_v39 = vadd.f32 %v1143_v33, %v3545_v55  ;;  %v1224_v40 = vadd.f32 %v1223_v34, %v3545_v55 }
 0x145   : > { %v1147_v41 = vpop.f32.mrf.mxu0  ;;  %v1227_v44 = vpop.f32.mrf.mxu1 }
 0x146   : > { %v2683_v45 = vpack.c.bf16 %v1144_v39, %v1142_v36  ;;  %v2731_v46 = vpack.c.bf16 %v1224_v40, %v1222_v38  ;;  %v1148_v51 = vadd.f32 %v1147_v41, %v3543_v49  ;;  %v1228_v52 = vadd.f32 %v1227_v44, %v3543_v49 }
 0x147   : > { %v1149_v48 = vpop.f32.mrf.mxu0  ;;  %v1229_v50 = vpop.f32.mrf.mxu1 }
 0x148   : > { %2237 = vst [vmem:[%s3555_s16 + $0x138] sm:$0xff] %v2683_v45  ;;  %2285 = vst [vmem:[%s3555_s16 + $0x2b8] sm:$0xff] %v2731_v46  ;;  %v1150_v53 = vadd.f32 %v1149_v48, %v3545_v55  ;;  %v1230_v56 = vadd.f32 %v1229_v50, %v3545_v55 }
 0x149   : > { %v1151_v57 = vpop.f32.mrf.mxu0  ;;  %v1231_v58 = vpop.f32.mrf.mxu1 }
 0x14a   : > { %v2686_v60 = vpack.c.bf16 %v1150_v53, %v1148_v51  ;;  %v2734_v62 = vpack.c.bf16 %v1230_v56, %v1228_v52  ;;  %v1152_v1 = vadd.f32 %v1151_v57, %v3543_v49  ;;  %v1232_v4 = vadd.f32 %v1231_v58, %v3543_v49 }
 0x14b   : > { %v1153_v63 = vpop.f32.mrf.mxu0  ;;  %v1233_v0 = vpop.f32.mrf.mxu1 }
 0x14c   : > { %2240 = vst [vmem:[%s3555_s16 + $0x150] sm:$0xff] %v2686_v60  ;;  %2288 = vst [vmem:[%s3555_s16 + $0x2d0] sm:$0xff] %v2734_v62  ;;  %v1154_v5 = vadd.f32 %v1153_v63, %v3545_v55  ;;  %v1234_v6 = vadd.f32 %v1233_v0, %v3545_v55 }
 0x14d   : > { %v1270_v7 = vpop.f32.mrf.mxu1  ;;  %v1463_v10 = vpop.f32.mrf.mxu0 }
 0x14e   : > { %v2689_v11 = vpack.c.bf16 %v1154_v5, %v1152_v1  ;;  %v2737_v12 = vpack.c.bf16 %v1234_v6, %v1232_v4  ;;  %v1271_v19 = vadd.f32 %v1270_v7, %v3505_v59  ;;  %v1464_v13 = vadd.f32 %v1463_v10, %v3507_v2 }
 0x14f   : > { %v1272_v14 = vpop.f32.mrf.mxu1  ;;  %v1465_v18 = vpop.f32.mrf.mxu0 }
 0x150   : > { %2243 = vst [vmem:[%s3555_s16 + $0x168] sm:$0xff] %v2689_v11  ;;  %2291 = vst [vmem:[%s3555_s16 + $0x2e8] sm:$0xff] %v2737_v12  ;;  %v1273_v49 = vadd.f32 %v1272_v14, %v3513_v15  ;;  %v1466_v35 = vadd.f32 %v1465_v18, %v3515_v20 }
 0x151   : > { %v1274_v42 = vpop.f32.mrf.mxu1  ;;  %v1467_v55 = vpop.f32.mrf.mxu0 }
 0x152   : > { %v2645_v47 = vpack.c.bf16 %v1273_v49, %v1271_v19  ;;  %v2646_v54 = vpack.c.bf16 %v1466_v35, %v1464_v13  ;;  %v1275_v37 = vadd.f32 %v1274_v42, %v3505_v59  ;;  %v1468_v43 = vadd.f32 %v1467_v55, %v3507_v2 }
 0x153   : > { %v1276_v8 = vpop.f32.mrf.mxu1  ;;  %v1469_v16 = vpop.f32.mrf.mxu0 }
 0x154   : > { %2199 = vst [vmem:[%s3555_s16 + $0x8] sm:$0xff] %v2645_v47  ;;  %2200 = vst [vmem:[%s3555_s16 + $0x10] sm:$0xff] %v2646_v54  ;;  %v1277_v61 = vadd.f32 %v1276_v8, %v3513_v15  ;;  %v1470_v3 = vadd.f32 %v1469_v16, %v3515_v20 }
 0x155   : > { %v1280_v9 = vpop.f32.mrf.mxu1  ;;  %v1473_v17 = vpop.f32.mrf.mxu0 }
 0x156   : > { %v2648_v21 = vpack.c.bf16 %v1277_v61, %v1275_v37  ;;  %v2649_v22 = vpack.c.bf16 %v1470_v3, %v1468_v43  ;;  %v1281_v25 = vadd.f32 %v1280_v9, %v3505_v59  ;;  %v1474_v26 = vadd.f32 %v1473_v17, %v3507_v2 }
 0x157   : > { %v1282_v23 = vpop.f32.mrf.mxu1  ;;  %v1475_v24 = vpop.f32.mrf.mxu0 }
 0x158   : > { %2202 = vst [vmem:[%s3555_s16 + $0x20] sm:$0xff] %v2648_v21  ;;  %2203 = vst [vmem:[%s3555_s16 + $0x28] sm:$0xff] %v2649_v22  ;;  %v1283_v27 = vadd.f32 %v1282_v23, %v3513_v15  ;;  %v1476_v28 = vadd.f32 %v1475_v24, %v3515_v20 }
 0x159   : > { %v1284_v29 = vpop.f32.mrf.mxu1  ;;  %v1477_v30 = vpop.f32.mrf.mxu0 }
 0x15a   : > { %v2651_v31 = vpack.c.bf16 %v1283_v27, %v1281_v25  ;;  %v2652_v32 = vpack.c.bf16 %v1476_v28, %v1474_v26  ;;  %v1285_v36 = vadd.f32 %v1284_v29, %v3505_v59  ;;  %v1478_v38 = vadd.f32 %v1477_v30, %v3507_v2 }
 0x15b   : > { %v1286_v33 = vpop.f32.mrf.mxu1  ;;  %v1479_v34 = vpop.f32.mrf.mxu0 }
 0x15c   : > { %2205 = vst [vmem:[%s3555_s16 + $0x38] sm:$0xff] %v2651_v31  ;;  %2206 = vst [vmem:[%s3555_s16 + $0x40] sm:$0xff] %v2652_v32  ;;  %v1287_v39 = vadd.f32 %v1286_v33, %v3513_v15  ;;  %v1480_v40 = vadd.f32 %v1479_v34, %v3515_v20 }
 0x15d   : > { %v1290_v41 = vpop.f32.mrf.mxu1  ;;  %v1483_v44 = vpop.f32.mrf.mxu0 }
 0x15e   : > { %v2654_v45 = vpack.c.bf16 %v1287_v39, %v1285_v36  ;;  %v2655_v46 = vpack.c.bf16 %v1480_v40, %v1478_v38  ;;  %v1291_v51 = vadd.f32 %v1290_v41, %v3505_v59  ;;  %v1484_v52 = vadd.f32 %v1483_v44, %v3507_v2 }
 0x15f   : > { %v1292_v48 = vpop.f32.mrf.mxu1  ;;  %v1485_v50 = vpop.f32.mrf.mxu0 }
 0x160   : > { %2208 = vst [vmem:[%s3555_s16 + $0x50] sm:$0xff] %v2654_v45  ;;  %2209 = vst [vmem:[%s3555_s16 + $0x58] sm:$0xff] %v2655_v46  ;;  %v1293_v53 = vadd.f32 %v1292_v48, %v3513_v15  ;;  %v1486_v56 = vadd.f32 %v1485_v50, %v3515_v20 }
 0x161   : > { %v1294_v57 = vpop.f32.mrf.mxu1  ;;  %v1487_v58 = vpop.f32.mrf.mxu0 }
 0x162   : > { %v2657_v60 = vpack.c.bf16 %v1293_v53, %v1291_v51  ;;  %v2658_v62 = vpack.c.bf16 %v1486_v56, %v1484_v52  ;;  %v1295_v1 = vadd.f32 %v1294_v57, %v3505_v59  ;;  %v1488_v4 = vadd.f32 %v1487_v58, %v3507_v2 }
 0x163   : > { %v1296_v63 = vpop.f32.mrf.mxu1  ;;  %v1489_v0 = vpop.f32.mrf.mxu0 }
 0x164   : > { %2211 = vst [vmem:[%s3555_s16 + $0x68] sm:$0xff] %v2657_v60  ;;  %2212 = vst [vmem:[%s3555_s16 + $0x70] sm:$0xff] %v2658_v62  ;;  %v1297_v5 = vadd.f32 %v1296_v63, %v3513_v15  ;;  %v1490_v6 = vadd.f32 %v1489_v0, %v3515_v20 }
 0x165   : > { %v1300_v7 = vpop.f32.mrf.mxu1  ;;  %v1493_v10 = vpop.f32.mrf.mxu0 }
 0x166   : > { %v2660_v11 = vpack.c.bf16 %v1297_v5, %v1295_v1  ;;  %v2661_v12 = vpack.c.bf16 %v1490_v6, %v1488_v4  ;;  %v1301_v19 = vadd.f32 %v1300_v7, %v3505_v59  ;;  %v1494_v13 = vadd.f32 %v1493_v10, %v3507_v2 }
 0x167   : > { %v1302_v14 = vpop.f32.mrf.mxu1  ;;  %v1495_v18 = vpop.f32.mrf.mxu0 }
 0x168   : > { %2214 = vst [vmem:[%s3555_s16 + $0x80] sm:$0xff] %v2660_v11  ;;  %2215 = vst [vmem:[%s3555_s16 + $0x88] sm:$0xff] %v2661_v12  ;;  %v1303_v49 = vadd.f32 %v1302_v14, %v3513_v15  ;;  %v1496_v35 = vadd.f32 %v1495_v18, %v3515_v20 }
 0x169   : > { %v1304_v42 = vpop.f32.mrf.mxu1  ;;  %v1497_v55 = vpop.f32.mrf.mxu0 }
 0x16a   : > { %v2663_v47 = vpack.c.bf16 %v1303_v49, %v1301_v19  ;;  %v2664_v54 = vpack.c.bf16 %v1496_v35, %v1494_v13  ;;  %v1305_v37 = vadd.f32 %v1304_v42, %v3505_v59  ;;  %v1498_v43 = vadd.f32 %v1497_v55, %v3507_v2 }
 0x16b   : > { %v1306_v8 = vpop.f32.mrf.mxu1  ;;  %v1499_v16 = vpop.f32.mrf.mxu0 }
 0x16c   : > { %2217 = vst [vmem:[%s3555_s16 + $0x98] sm:$0xff] %v2663_v47  ;;  %2218 = vst [vmem:[%s3555_s16 + $0xa0] sm:$0xff] %v2664_v54  ;;  %v1307_v61 = vadd.f32 %v1306_v8, %v3513_v15  ;;  %v1500_v3 = vadd.f32 %v1499_v16, %v3515_v20 }
 0x16d   : > { %v1310_v9 = vpop.f32.mrf.mxu1  ;;  %v1503_v17 = vpop.f32.mrf.mxu0 }
 0x16e   : > { %v2666_v21 = vpack.c.bf16 %v1307_v61, %v1305_v37  ;;  %v2667_v22 = vpack.c.bf16 %v1500_v3, %v1498_v43  ;;  %v1311_v25 = vadd.f32 %v1310_v9, %v3505_v59  ;;  %v1504_v26 = vadd.f32 %v1503_v17, %v3507_v2 }
 0x16f   : > { %v1312_v23 = vpop.f32.mrf.mxu1  ;;  %v1505_v24 = vpop.f32.mrf.mxu0 }
 0x170   : > { %2220 = vst [vmem:[%s3555_s16 + $0xb0] sm:$0xff] %v2666_v21  ;;  %2221 = vst [vmem:[%s3555_s16 + $0xb8] sm:$0xff] %v2667_v22  ;;  %v1313_v27 = vadd.f32 %v1312_v23, %v3513_v15  ;;  %v1506_v28 = vadd.f32 %v1505_v24, %v3515_v20 }
 0x171   : > { %v1314_v29 = vpop.f32.mrf.mxu1  ;;  %v1507_v30 = vpop.f32.mrf.mxu0 }
 0x172   : > { %v2669_v31 = vpack.c.bf16 %v1313_v27, %v1311_v25  ;;  %v2670_v32 = vpack.c.bf16 %v1506_v28, %v1504_v26  ;;  %v1315_v36 = vadd.f32 %v1314_v29, %v3505_v59  ;;  %v1508_v38 = vadd.f32 %v1507_v30, %v3507_v2 }
 0x173   : > { %v1316_v33 = vpop.f32.mrf.mxu1  ;;  %v1509_v34 = vpop.f32.mrf.mxu0 }
 0x174   : > { %2223 = vst [vmem:[%s3555_s16 + $0xc8] sm:$0xff] %v2669_v31  ;;  %2224 = vst [vmem:[%s3555_s16 + $0xd0] sm:$0xff] %v2670_v32  ;;  %v1317_v39 = vadd.f32 %v1316_v33, %v3513_v15  ;;  %v1510_v40 = vadd.f32 %v1509_v34, %v3515_v20 }
 0x175   : > { %v1320_v41 = vpop.f32.mrf.mxu1  ;;  %v1513_v44 = vpop.f32.mrf.mxu0 }
 0x176   : > { %v2672_v45 = vpack.c.bf16 %v1317_v39, %v1315_v36  ;;  %v2673_v46 = vpack.c.bf16 %v1510_v40, %v1508_v38  ;;  %v1321_v51 = vadd.f32 %v1320_v41, %v3505_v59  ;;  %v1514_v52 = vadd.f32 %v1513_v44, %v3507_v2 }
 0x177   : > { %v1322_v48 = vpop.f32.mrf.mxu1  ;;  %v1515_v50 = vpop.f32.mrf.mxu0 }
 0x178   : > { %2226 = vst [vmem:[%s3555_s16 + $0xe0] sm:$0xff] %v2672_v45  ;;  %2227 = vst [vmem:[%s3555_s16 + $0xe8] sm:$0xff] %v2673_v46  ;;  %v1323_v53 = vadd.f32 %v1322_v48, %v3513_v15  ;;  %v1516_v56 = vadd.f32 %v1515_v50, %v3515_v20 }
 0x179   : > { %v1324_v57 = vpop.f32.mrf.mxu1  ;;  %v1517_v58 = vpop.f32.mrf.mxu0 }
 0x17a   : > { %v2675_v60 = vpack.c.bf16 %v1323_v53, %v1321_v51  ;;  %v2676_v62 = vpack.c.bf16 %v1516_v56, %v1514_v52  ;;  %v1325_v1 = vadd.f32 %v1324_v57, %v3505_v59  ;;  %v1518_v4 = vadd.f32 %v1517_v58, %v3507_v2 }
 0x17b   : > { %v1326_v63 = vpop.f32.mrf.mxu1  ;;  %v1519_v0 = vpop.f32.mrf.mxu0 }
 0x17c   : > { %2229 = vst [vmem:[%s3555_s16 + $0xf8] sm:$0xff] %v2675_v60  ;;  %2230 = vst [vmem:[%s3555_s16 + $0x100] sm:$0xff] %v2676_v62  ;;  %v1327_v5 = vadd.f32 %v1326_v63, %v3513_v15  ;;  %v1520_v6 = vadd.f32 %v1519_v0, %v3515_v20 }
 0x17d   : > { %v1330_v7 = vpop.f32.mrf.mxu1  ;;  %v1523_v10 = vpop.f32.mrf.mxu0 }
 0x17e   : > { %v2678_v11 = vpack.c.bf16 %v1327_v5, %v1325_v1  ;;  %v2679_v12 = vpack.c.bf16 %v1520_v6, %v1518_v4  ;;  %v1331_v19 = vadd.f32 %v1330_v7, %v3505_v59  ;;  %v1524_v13 = vadd.f32 %v1523_v10, %v3507_v2 }
 0x17f   : > { %v1332_v14 = vpop.f32.mrf.mxu1  ;;  %v1525_v18 = vpop.f32.mrf.mxu0 }
 0x180   : > { %2232 = vst [vmem:[%s3555_s16 + $0x110] sm:$0xff] %v2678_v11  ;;  %2233 = vst [vmem:[%s3555_s16 + $0x118] sm:$0xff] %v2679_v12  ;;  %v1333_v49 = vadd.f32 %v1332_v14, %v3513_v15  ;;  %v1526_v35 = vadd.f32 %v1525_v18, %v3515_v20 }
 0x181   : > { %v1334_v42 = vpop.f32.mrf.mxu1  ;;  %v1527_v55 = vpop.f32.mrf.mxu0 }
 0x182   : > { %v2681_v47 = vpack.c.bf16 %v1333_v49, %v1331_v19  ;;  %v2682_v54 = vpack.c.bf16 %v1526_v35, %v1524_v13  ;;  %v1335_v37 = vadd.f32 %v1334_v42, %v3505_v59  ;;  %v1528_v43 = vadd.f32 %v1527_v55, %v3507_v2 }
 0x183   : > { %v1336_v8 = vpop.f32.mrf.mxu1  ;;  %v1529_v16 = vpop.f32.mrf.mxu0 }
 0x184   : > { %2235 = vst [vmem:[%s3555_s16 + $0x128] sm:$0xff] %v2681_v47  ;;  %2236 = vst [vmem:[%s3555_s16 + $0x130] sm:$0xff] %v2682_v54  ;;  %v1337_v61 = vadd.f32 %v1336_v8, %v3513_v15  ;;  %v1530_v3 = vadd.f32 %v1529_v16, %v3515_v20 }
 0x185   : > { %v1340_v9 = vpop.f32.mrf.mxu1  ;;  %v1533_v17 = vpop.f32.mrf.mxu0 }
 0x186   : > { %v2684_v21 = vpack.c.bf16 %v1337_v61, %v1335_v37  ;;  %v2685_v22 = vpack.c.bf16 %v1530_v3, %v1528_v43  ;;  %v1341_v25 = vadd.f32 %v1340_v9, %v3505_v59  ;;  %v1534_v26 = vadd.f32 %v1533_v17, %v3507_v2 }
 0x187   : > { %v1342_v23 = vpop.f32.mrf.mxu1  ;;  %v1535_v24 = vpop.f32.mrf.mxu0 }
 0x188   : > { %2238 = vst [vmem:[%s3555_s16 + $0x140] sm:$0xff] %v2684_v21  ;;  %2239 = vst [vmem:[%s3555_s16 + $0x148] sm:$0xff] %v2685_v22  ;;  %v1343_v27 = vadd.f32 %v1342_v23, %v3513_v15  ;;  %v1536_v28 = vadd.f32 %v1535_v24, %v3515_v20 }
 0x189   : > { %v1344_v29 = vpop.f32.mrf.mxu1  ;;  %v1537_v30 = vpop.f32.mrf.mxu0 }
 0x18a   : > { %v2687_v31 = vpack.c.bf16 %v1343_v27, %v1341_v25  ;;  %v2688_v32 = vpack.c.bf16 %v1536_v28, %v1534_v26  ;;  %v1345_v36 = vadd.f32 %v1344_v29, %v3505_v59  ;;  %v1538_v38 = vadd.f32 %v1537_v30, %v3507_v2 }
 0x18b   : > { %v1346_v33 = vpop.f32.mrf.mxu1  ;;  %v1539_v34 = vpop.f32.mrf.mxu0 }
 0x18c   : > { %2241 = vst [vmem:[%s3555_s16 + $0x158] sm:$0xff] %v2687_v31  ;;  %2242 = vst [vmem:[%s3555_s16 + $0x160] sm:$0xff] %v2688_v32  ;;  %v1347_v39 = vadd.f32 %v1346_v33, %v3513_v15  ;;  %v1540_v40 = vadd.f32 %v1539_v34, %v3515_v20 }
 0x18d   : > { %v1350_v41 = vpop.f32.mrf.mxu1  ;;  %v1543_v44 = vpop.f32.mrf.mxu0 }
 0x18e   : > { %v2690_v45 = vpack.c.bf16 %v1347_v39, %v1345_v36  ;;  %v2691_v46 = vpack.c.bf16 %v1540_v40, %v1538_v38  ;;  %v1351_v51 = vadd.f32 %v1350_v41, %v3505_v59  ;;  %v1544_v52 = vadd.f32 %v1543_v44, %v3507_v2 }
 0x18f   : > { %v1352_v48 = vpop.f32.mrf.mxu1  ;;  %v1545_v50 = vpop.f32.mrf.mxu0 }
 0x190   : > { %2244 = vst [vmem:[%s3555_s16 + $0x170] sm:$0xff] %v2690_v45  ;;  %2245 = vst [vmem:[%s3555_s16 + $0x178] sm:$0xff] %v2691_v46  ;;  %v1353_v53 = vadd.f32 %v1352_v48, %v3513_v15  ;;  %v1546_v56 = vadd.f32 %v1545_v50, %v3515_v20 }
 0x191   : > { %v1354_v57 = vpop.f32.mrf.mxu1  ;;  %v1547_v58 = vpop.f32.mrf.mxu0 }
 0x192   : > { %v2693_v60 = vpack.c.bf16 %v1353_v53, %v1351_v51  ;;  %v2694_v62 = vpack.c.bf16 %v1546_v56, %v1544_v52  ;;  %v1355_v1 = vadd.f32 %v1354_v57, %v3505_v59  ;;  %v1548_v4 = vadd.f32 %v1547_v58, %v3507_v2 }
 0x193   : > { %v1356_v63 = vpop.f32.mrf.mxu1  ;;  %v1549_v0 = vpop.f32.mrf.mxu0 }
 0x194   : > { %2247 = vst [vmem:[%s3555_s16 + $0x188] sm:$0xff] %v2693_v60  ;;  %2248 = vst [vmem:[%s3555_s16 + $0x190] sm:$0xff] %v2694_v62  ;;  %v1357_v5 = vadd.f32 %v1356_v63, %v3513_v15  ;;  %v1550_v6 = vadd.f32 %v1549_v0, %v3515_v20 }
 0x195   : > { %v1360_v7 = vpop.f32.mrf.mxu1  ;;  %v1553_v10 = vpop.f32.mrf.mxu0 }
 0x196   : > { %v2696_v11 = vpack.c.bf16 %v1357_v5, %v1355_v1  ;;  %v2697_v12 = vpack.c.bf16 %v1550_v6, %v1548_v4  ;;  %v1361_v19 = vadd.f32 %v1360_v7, %v3505_v59  ;;  %v1554_v13 = vadd.f32 %v1553_v10, %v3507_v2 }
 0x197   : > { %v1362_v14 = vpop.f32.mrf.mxu1  ;;  %v1555_v18 = vpop.f32.mrf.mxu0 }
 0x198   : > { %2250 = vst [vmem:[%s3555_s16 + $0x1a0] sm:$0xff] %v2696_v11  ;;  %2251 = vst [vmem:[%s3555_s16 + $0x1a8] sm:$0xff] %v2697_v12  ;;  %v1363_v49 = vadd.f32 %v1362_v14, %v3513_v15  ;;  %v1556_v35 = vadd.f32 %v1555_v18, %v3515_v20 }
 0x199   : > { %v1364_v42 = vpop.f32.mrf.mxu1  ;;  %v1557_v55 = vpop.f32.mrf.mxu0 }
 0x19a   : > { %v2699_v47 = vpack.c.bf16 %v1363_v49, %v1361_v19  ;;  %v2700_v54 = vpack.c.bf16 %v1556_v35, %v1554_v13  ;;  %v1365_v37 = vadd.f32 %v1364_v42, %v3505_v59  ;;  %v1558_v43 = vadd.f32 %v1557_v55, %v3507_v2 }
 0x19b   : > { %v1366_v8 = vpop.f32.mrf.mxu1  ;;  %v1559_v16 = vpop.f32.mrf.mxu0 }
 0x19c   : > { %2253 = vst [vmem:[%s3555_s16 + $0x1b8] sm:$0xff] %v2699_v47  ;;  %2254 = vst [vmem:[%s3555_s16 + $0x1c0] sm:$0xff] %v2700_v54  ;;  %v1367_v61 = vadd.f32 %v1366_v8, %v3513_v15  ;;  %v1560_v3 = vadd.f32 %v1559_v16, %v3515_v20 }
 0x19d   : > { %v1370_v9 = vpop.f32.mrf.mxu1  ;;  %v1563_v17 = vpop.f32.mrf.mxu0 }
 0x19e   : > { %v2702_v21 = vpack.c.bf16 %v1367_v61, %v1365_v37  ;;  %v2703_v22 = vpack.c.bf16 %v1560_v3, %v1558_v43  ;;  %v1371_v25 = vadd.f32 %v1370_v9, %v3505_v59  ;;  %v1564_v26 = vadd.f32 %v1563_v17, %v3507_v2 }
 0x19f   : > { %v1372_v23 = vpop.f32.mrf.mxu1  ;;  %v1565_v24 = vpop.f32.mrf.mxu0 }
 0x1a0   : > { %2256 = vst [vmem:[%s3555_s16 + $0x1d0] sm:$0xff] %v2702_v21  ;;  %2257 = vst [vmem:[%s3555_s16 + $0x1d8] sm:$0xff] %v2703_v22  ;;  %v1373_v27 = vadd.f32 %v1372_v23, %v3513_v15  ;;  %v1566_v28 = vadd.f32 %v1565_v24, %v3515_v20 }
 0x1a1   : > { %v1374_v29 = vpop.f32.mrf.mxu1  ;;  %v1567_v30 = vpop.f32.mrf.mxu0 }
 0x1a2   : > { %v2705_v31 = vpack.c.bf16 %v1373_v27, %v1371_v25  ;;  %v2706_v32 = vpack.c.bf16 %v1566_v28, %v1564_v26  ;;  %v1375_v36 = vadd.f32 %v1374_v29, %v3505_v59  ;;  %v1568_v38 = vadd.f32 %v1567_v30, %v3507_v2 }
 0x1a3   : > { %v1376_v33 = vpop.f32.mrf.mxu1  ;;  %v1569_v34 = vpop.f32.mrf.mxu0 }
 0x1a4   : > { %2259 = vst [vmem:[%s3555_s16 + $0x1e8] sm:$0xff] %v2705_v31  ;;  %2260 = vst [vmem:[%s3555_s16 + $0x1f0] sm:$0xff] %v2706_v32  ;;  %v1377_v39 = vadd.f32 %v1376_v33, %v3513_v15  ;;  %v1570_v40 = vadd.f32 %v1569_v34, %v3515_v20 }
 0x1a5   : > { %v1380_v41 = vpop.f32.mrf.mxu1  ;;  %v1573_v44 = vpop.f32.mrf.mxu0 }
 0x1a6   : > { %v2708_v45 = vpack.c.bf16 %v1377_v39, %v1375_v36  ;;  %v2709_v46 = vpack.c.bf16 %v1570_v40, %v1568_v38  ;;  %v1381_v51 = vadd.f32 %v1380_v41, %v3505_v59  ;;  %v1574_v52 = vadd.f32 %v1573_v44, %v3507_v2 }
 0x1a7   : > { %v1382_v48 = vpop.f32.mrf.mxu1  ;;  %v1575_v50 = vpop.f32.mrf.mxu0 }
 0x1a8   : > { %2262 = vst [vmem:[%s3555_s16 + $0x200] sm:$0xff] %v2708_v45  ;;  %2263 = vst [vmem:[%s3555_s16 + $0x208] sm:$0xff] %v2709_v46  ;;  %v1383_v53 = vadd.f32 %v1382_v48, %v3513_v15  ;;  %v1576_v56 = vadd.f32 %v1575_v50, %v3515_v20 }
 0x1a9   : > { %v1384_v57 = vpop.f32.mrf.mxu1  ;;  %v1577_v58 = vpop.f32.mrf.mxu0 }
 0x1aa   : > { %v2711_v60 = vpack.c.bf16 %v1383_v53, %v1381_v51  ;;  %v2712_v62 = vpack.c.bf16 %v1576_v56, %v1574_v52  ;;  %v1385_v1 = vadd.f32 %v1384_v57, %v3505_v59  ;;  %v1578_v4 = vadd.f32 %v1577_v58, %v3507_v2 }
 0x1ab   : > { %v1386_v63 = vpop.f32.mrf.mxu1  ;;  %v1579_v0 = vpop.f32.mrf.mxu0 }
 0x1ac   : > { %2265 = vst [vmem:[%s3555_s16 + $0x218] sm:$0xff] %v2711_v60  ;;  %2266 = vst [vmem:[%s3555_s16 + $0x220] sm:$0xff] %v2712_v62  ;;  %v1387_v5 = vadd.f32 %v1386_v63, %v3513_v15  ;;  %v1580_v6 = vadd.f32 %v1579_v0, %v3515_v20 }
 0x1ad   : > { %v1390_v7 = vpop.f32.mrf.mxu1  ;;  %v1583_v10 = vpop.f32.mrf.mxu0 }
 0x1ae   : > { %v2714_v11 = vpack.c.bf16 %v1387_v5, %v1385_v1  ;;  %v2715_v12 = vpack.c.bf16 %v1580_v6, %v1578_v4  ;;  %v1391_v19 = vadd.f32 %v1390_v7, %v3505_v59  ;;  %v1584_v13 = vadd.f32 %v1583_v10, %v3507_v2 }
 0x1af   : > { %v1392_v14 = vpop.f32.mrf.mxu1  ;;  %v1585_v18 = vpop.f32.mrf.mxu0 }
 0x1b0   : > { %2268 = vst [vmem:[%s3555_s16 + $0x230] sm:$0xff] %v2714_v11  ;;  %2269 = vst [vmem:[%s3555_s16 + $0x238] sm:$0xff] %v2715_v12  ;;  %v1393_v49 = vadd.f32 %v1392_v14, %v3513_v15  ;;  %v1586_v35 = vadd.f32 %v1585_v18, %v3515_v20 }
 0x1b1   : > { %v1394_v42 = vpop.f32.mrf.mxu1  ;;  %v1587_v55 = vpop.f32.mrf.mxu0 }
 0x1b2   : > { %v2717_v47 = vpack.c.bf16 %v1393_v49, %v1391_v19  ;;  %v2718_v54 = vpack.c.bf16 %v1586_v35, %v1584_v13  ;;  %v1395_v37 = vadd.f32 %v1394_v42, %v3505_v59  ;;  %v1588_v43 = vadd.f32 %v1587_v55, %v3507_v2 }
 0x1b3   : > { %v1396_v8 = vpop.f32.mrf.mxu1  ;;  %v1589_v16 = vpop.f32.mrf.mxu0 }
 0x1b4   : > { %2271 = vst [vmem:[%s3555_s16 + $0x248] sm:$0xff] %v2717_v47  ;;  %2272 = vst [vmem:[%s3555_s16 + $0x250] sm:$0xff] %v2718_v54  ;;  %v1397_v61 = vadd.f32 %v1396_v8, %v3513_v15  ;;  %v1590_v3 = vadd.f32 %v1589_v16, %v3515_v20 }
 0x1b5   : > { %v1400_v9 = vpop.f32.mrf.mxu1  ;;  %v1593_v17 = vpop.f32.mrf.mxu0 }
 0x1b6   : > { %v2720_v21 = vpack.c.bf16 %v1397_v61, %v1395_v37  ;;  %v2721_v22 = vpack.c.bf16 %v1590_v3, %v1588_v43  ;;  %v1401_v25 = vadd.f32 %v1400_v9, %v3505_v59  ;;  %v1594_v26 = vadd.f32 %v1593_v17, %v3507_v2 }
 0x1b7   : > { %v1402_v23 = vpop.f32.mrf.mxu1  ;;  %v1595_v24 = vpop.f32.mrf.mxu0 }
 0x1b8   : > { %2274 = vst [vmem:[%s3555_s16 + $0x260] sm:$0xff] %v2720_v21  ;;  %2275 = vst [vmem:[%s3555_s16 + $0x268] sm:$0xff] %v2721_v22  ;;  %v1403_v27 = vadd.f32 %v1402_v23, %v3513_v15  ;;  %v1596_v28 = vadd.f32 %v1595_v24, %v3515_v20 }
 0x1b9   : > { %v1404_v29 = vpop.f32.mrf.mxu1  ;;  %v1597_v30 = vpop.f32.mrf.mxu0 }
 0x1ba   : > { %v2723_v31 = vpack.c.bf16 %v1403_v27, %v1401_v25  ;;  %v2724_v32 = vpack.c.bf16 %v1596_v28, %v1594_v26  ;;  %v1405_v36 = vadd.f32 %v1404_v29, %v3505_v59  ;;  %v1598_v38 = vadd.f32 %v1597_v30, %v3507_v2 }
 0x1bb   : > { %v1406_v33 = vpop.f32.mrf.mxu1  ;;  %v1599_v34 = vpop.f32.mrf.mxu0 }
 0x1bc   : > { %2277 = vst [vmem:[%s3555_s16 + $0x278] sm:$0xff] %v2723_v31  ;;  %2278 = vst [vmem:[%s3555_s16 + $0x280] sm:$0xff] %v2724_v32  ;;  %v1407_v39 = vadd.f32 %v1406_v33, %v3513_v15  ;;  %v1600_v40 = vadd.f32 %v1599_v34, %v3515_v20 }
 0x1bd   : > { %v1410_v41 = vpop.f32.mrf.mxu1  ;;  %v1603_v44 = vpop.f32.mrf.mxu0 }
 0x1be   : > { %v2726_v45 = vpack.c.bf16 %v1407_v39, %v1405_v36  ;;  %v2727_v46 = vpack.c.bf16 %v1600_v40, %v1598_v38  ;;  %v1411_v51 = vadd.f32 %v1410_v41, %v3505_v59  ;;  %v1604_v52 = vadd.f32 %v1603_v44, %v3507_v2 }
 0x1bf   : > { %v1412_v48 = vpop.f32.mrf.mxu1  ;;  %v1605_v50 = vpop.f32.mrf.mxu0 }
 0x1c0   : > { %2280 = vst [vmem:[%s3555_s16 + $0x290] sm:$0xff] %v2726_v45  ;;  %2281 = vst [vmem:[%s3555_s16 + $0x298] sm:$0xff] %v2727_v46  ;;  %v1413_v53 = vadd.f32 %v1412_v48, %v3513_v15  ;;  %v1606_v56 = vadd.f32 %v1605_v50, %v3515_v20 }
 0x1c1   : > { %v1414_v57 = vpop.f32.mrf.mxu1  ;;  %v1607_v58 = vpop.f32.mrf.mxu0 }
 0x1c2   : > { %v2729_v60 = vpack.c.bf16 %v1413_v53, %v1411_v51  ;;  %v2730_v62 = vpack.c.bf16 %v1606_v56, %v1604_v52  ;;  %v1415_v1 = vadd.f32 %v1414_v57, %v3505_v59  ;;  %v1608_v4 = vadd.f32 %v1607_v58, %v3507_v2 }
 0x1c3   : > { %v1416_v63 = vpop.f32.mrf.mxu1  ;;  %v1609_v0 = vpop.f32.mrf.mxu0 }
 0x1c4   : > { %2283 = vst [vmem:[%s3555_s16 + $0x2a8] sm:$0xff] %v2729_v60  ;;  %2284 = vst [vmem:[%s3555_s16 + $0x2b0] sm:$0xff] %v2730_v62  ;;  %v1417_v5 = vadd.f32 %v1416_v63, %v3513_v15  ;;  %v1610_v6 = vadd.f32 %v1609_v0, %v3515_v20 }
 0x1c5   : > { %v1420_v7 = vpop.f32.mrf.mxu1  ;;  %v1613_v10 = vpop.f32.mrf.mxu0 }
 0x1c6   : > { %v2732_v11 = vpack.c.bf16 %v1417_v5, %v1415_v1  ;;  %v2733_v12 = vpack.c.bf16 %v1610_v6, %v1608_v4  ;;  %v1421_v19 = vadd.f32 %v1420_v7, %v3505_v59  ;;  %v1614_v13 = vadd.f32 %v1613_v10, %v3507_v2 }
 0x1c7   : > { %v1422_v14 = vpop.f32.mrf.mxu1  ;;  %v1615_v18 = vpop.f32.mrf.mxu0 }
 0x1c8   : > { %2286 = vst [vmem:[%s3555_s16 + $0x2c0] sm:$0xff] %v2732_v11  ;;  %2287 = vst [vmem:[%s3555_s16 + $0x2c8] sm:$0xff] %v2733_v12  ;;  %v1423_v49 = vadd.f32 %v1422_v14, %v3513_v15  ;;  %v1616_v35 = vadd.f32 %v1615_v18, %v3515_v20 }
 0x1c9   : > { %v1424_v42 = vpop.f32.mrf.mxu1  ;;  %v1617_v55 = vpop.f32.mrf.mxu0 }
 0x1ca   : > { %v2735_v47 = vpack.c.bf16 %v1423_v49, %v1421_v19  ;;  %v2736_v54 = vpack.c.bf16 %v1616_v35, %v1614_v13  ;;  %v1425_v37 = vadd.f32 %v1424_v42, %v3505_v59  ;;  %v1618_v43 = vadd.f32 %v1617_v55, %v3507_v2 }
 0x1cb   : > { %v1426_v8 = vpop.f32.mrf.mxu1  ;;  %v1619_v16 = vpop.f32.mrf.mxu0 }
 0x1cc   : > { %2289 = vst [vmem:[%s3555_s16 + $0x2d8] sm:$0xff] %v2735_v47  ;;  %2290 = vst [vmem:[%s3555_s16 + $0x2e0] sm:$0xff] %v2736_v54  ;;  %v1427_v61 = vadd.f32 %v1426_v8, %v3513_v15  ;;  %v1620_v3 = vadd.f32 %v1619_v16, %v3515_v20 }
 0x1ce   : > { %v2738_v9 = vpack.c.bf16 %v1427_v61, %v1425_v37  ;;  %v2739_v17 = vpack.c.bf16 %v1620_v3, %v1618_v43 }
 0x1d0   : > { %2292 = vst [vmem:[%s3555_s16 + $0x2f0] sm:$0xff] %v2738_v9  ;;  %2293 = vst [vmem:[%s3555_s16 + $0x2f8] sm:$0xff] %v2739_v17 }
 0x1d1 PF: > { %s13_s14 = sadd.s32 1, %s3011_s14   ;;  %s3854_s12 = smov %s3007_s13 }
 0x1d2   : > { %p10_p5 = scmp.ge.s32.totalorder %s13_s14, 4   ;;  %s3855_s13 = smov %s3857_s15 }
 0x1d4   :  { %12 = sbr.rel (!%p10_p5) target bundleno = 2 (0x2), region = 68 }

</bundles_post_ra>
